<compile_context>
chip_gen: v7x
topology: tpu7x:2x2x1
jax: 0.10.0
libtpu: 0.0.40
codegen_flags: <defaults>
</compile_context>

<pallas_src>
import functools

import jax
import jax.numpy as jnp
from jax import lax
from jax.experimental import pallas as pl
from jax.experimental.pallas import tpu as pltpu


def _round_up(a, m):
    return ((a + m - 1) // m) * m


@functools.lru_cache(maxsize=None)
def _vmem_budgets():
    """(vmem_limit_bytes, per-tile working-set budget) per TPU generation.

    v5e/v6e have 128 MiB VMEM per TensorCore -> large budget; v7x has only
    64 MiB -> keep conservative numbers (also used when the query fails).
    """
    cap = None
    try:
        cap = int(pltpu.get_tpu_info().vmem_capacity_bytes)
    except Exception:
        cap = None
    if cap is not None and cap >= 100 * 1024 * 1024:   # v5e / v6e
        return 100 * 1024 * 1024, 64 * 1024 * 1024
    return 48 * 1024 * 1024, 24 * 1024 * 1024          # v7x / unknown


def _max_tile_rows(c, k_pad, budget_bytes, mm_bytes):
    """Largest tile_s (multiple of 128, <= 2048) whose working set fits VMEM."""
    # Constant blocks, double-buffered by the pipeline: distance codebook
    # (K_pad, C) in matmul dtype, hi/lo bf16 transposed codebooks, 0.5||e||^2.
    const = 2 * k_pad * c * mm_bytes + 2 * 2 * c * k_pad * 2 + 2 * k_pad * 4
    # Per-row bytes: x/q blocks (double-buffered) + (C,)-sized f32 temporaries
    # + ~8 (K_pad,)-sized temporaries (xe, dist, iota, where, onehot, enc, ...).
    per_row = 4 * (4 * c) + 12 * c + 32 * k_pad + 8
    avail = max(budget_bytes - const, 128 * per_row)
    rows = avail // per_row
    for cand in (2048, 1024, 512, 256, 128):
        if cand <= rows:
            return cand
    return 128


def _vq_kernel(x_ref, e_ref, eth_ref, etl_ref, e2_ref,
               q_ref, idx_ref, loss_ref, cnt_ref, *,
               s_valid, masked, matmul_dtype):
    """Quantize one (C, tile_s) block of flattened-spatial positions.

    x_ref   : (1, C, tile_s)     input block, NC(DHW) layout, f32
    e_ref   : (K_pad, C)         codebook in matmul_dtype (distance matmul)
    eth_ref : (C, K_pad) bf16    codebook^T, bf16 "hi" part (gather matmul)
    etl_ref : (C, K_pad) bf16    codebook^T, bf16 "lo" part (gather matmul)
    e2_ref  : (K_pad, 1)  f32    0.5*||e||^2 (1e30 sentinel on padded K rows)
    q_ref   : (1, C, tile_s)     quantized block                 (output)
    idx_ref : (1, 1, 1, tile_s)  argmin code index, lane-dense   (output)
    loss_ref: (1, 1, 1, 1)       per-tile sum of squared error   (output)
    cnt_ref : (1, 1, K_pad, 1)   per-tile code histogram         (output)
    """
    k_pad = e2_ref.shape[0]
    tile_s = x_ref.shape[2]

    x = x_ref[0]                                       # (C, tile_s) f32
    x_mm = x.astype(matmul_dtype)

    # Distance up to the column-constant 0.5*||x||^2:  0.5*||e||^2 - <x, e>.
    # (The factor 2 is folded into e2 wrapper-side.)  MXU, f32 accumulation.
    xe = jnp.dot(e_ref[...], x_mm,
                 preferred_element_type=jnp.float32)   # (K_pad, tile_s)
    dist = e2_ref[...] - xe                            # (K_pad, tile_s) f32

    # argmin over the codebook axis (first occurrence on ties).
    dmin = jnp.min(dist, axis=0, keepdims=True)                    # (1, tile_s)
    iota_k = lax.broadcasted_iota(jnp.int32, dist.shape, 0)        # (K_pad, tile_s)
    idx = jnp.min(jnp.where(dist == dmin, iota_k, k_pad),
                  axis=0, keepdims=True)                           # (1, tile_s)
    idx_ref[...] = idx.reshape(idx_ref.shape)

    # One-hot codebook gather on the MXU.  Two bf16 passes over the hi/lo
    # split codebook (f32 accumulation) keep ~16 mantissa bits while running
    # much faster than a single f32 MXU pass.
    onehot = iota_k == idx                                         # (K_pad, tile_s)
    enc = onehot.astype(jnp.bfloat16)
    quant = jnp.dot(eth_ref[...], enc, preferred_element_type=jnp.float32)
    quant = quant + jnp.dot(etl_ref[...], enc,
                            preferred_element_type=jnp.float32)    # (C, tile_s)
    q_ref[0] = quant.astype(q_ref.dtype)

    diff = quant - x
    cnt = onehot.astype(jnp.float32)
    if masked:
        # Ragged last spatial tile: drop padded positions from loss/histogram.
        pos = pl.program_id(1) * tile_s + lax.broadcasted_iota(
            jnp.int32, (1, tile_s), 1)
        valid = (pos < s_valid).astype(jnp.float32)                # (1, tile_s)
        diff = diff * valid
        cnt = cnt * valid

    loss_ref[...] = jnp.sum(diff * diff).reshape(loss_ref.shape)
    cnt_ref[...] = jnp.sum(cnt, axis=1, keepdims=True).reshape(cnt_ref.shape)


@functools.partial(
    jax.jit,
    static_argnames=("commitment_cost", "tile_s", "matmul_dtype",
                     "return_encodings"))
def vector_quantizer_forward(x, embedding, commitment_cost=0.25, tile_s=None,
                             matmul_dtype=jnp.float32, return_encodings=False):
    """Forward pass of VectorQuantizer.

    x         : (B, C, D, H, W) float32, NCDHW (PyTorch conv3d layout)
    embedding : (K, C) float32 codebook
    returns   : (loss, quantized_NCDHW, perplexity, encodings-or-None)

    `matmul_dtype=jnp.bfloat16` speeds up the distance matmul on all
    generations (may flip argmin on near-ties).  Encodings (the (N, K) one-hot)
    are only materialized if `return_encodings=True`; VQVAE.forward discards
    them anyway.
    """
    B, C, Dd, H, W = x.shape
    K, Ce = embedding.shape
    assert Ce == C, "embedding_dim mismatch"

    S = Dd * H * W
    N = B * S
    K_pad = _round_up(K, 128)

    vmem_limit, tile_budget = _vmem_budgets()
    mm_bytes = jnp.dtype(matmul_dtype).itemsize
    max_rows = _max_tile_rows(C, K_pad, tile_budget, mm_bytes)

    # --- choose the spatial tile size -------------------------------------
    if tile_s is None:
        if S <= max_rows and (B >= 2 or S < 256):
            # Whole spatial axis as one full-extent (unpadded, unmasked) block;
            # the batch grid axis alone already feeds both v7x TensorCores
            # when B >= 2.
            tile_s_eff = S
        else:
            tile_s_eff = min(max_rows, _round_up(S, 128))
            # v7x: keep >= 2 grid steps so both TensorCores get work.
            if B * ((S + tile_s_eff - 1) // tile_s_eff) < 2 and S > 128:
                tile_s_eff = max(128, _round_up((S + 1) // 2, 128))
    else:
        tile_s_eff = S if int(tile_s) >= S else max(128, _round_up(int(tile_s), 128))

    num_s_tiles = (S + tile_s_eff - 1) // tile_s_eff
    S_pad = num_s_tiles * tile_s_eff
    masked = S_pad != S

    # NCDHW -> (B, C, S) is a free reshape (no transpose, no C padding).
    x_f = x.astype(jnp.float32).reshape(B, C, S)
    if masked:
        x_f = jnp.pad(x_f, ((0, 0), (0, 0), (0, S_pad - S)))

    # Codebook preprocessing (tiny, done once wrapper-side).
    emb_f = embedding.astype(jnp.float32)
    emb_p = jnp.pad(emb_f, ((0, K_pad - K), (0, 0)))        # (K_pad, C)
    e_mm = emb_p.astype(matmul_dtype)                       # distance matmul
    e_hi = emb_p.astype(jnp.bfloat16)                       # hi/lo bf16 split
    e_lo = (emb_p - e_hi.astype(jnp.float32)).astype(jnp.bfloat16)
    eT_hi = e_hi.T                                          # (C, K_pad)
    eT_lo = e_lo.T
    # 0.5*||e||^2 (factor 2 of the cross term folded in); padded codebook rows
    # get a huge f32 sentinel so they can never win the argmin (stays f32).
    e2h = 0.5 * jnp.sum(emb_p * emb_p, axis=1)
    e2h = jnp.where(jnp.arange(K_pad) < K, e2h, jnp.float32(1e30))
    e2h = e2h.reshape(K_pad, 1)

    kernel = functools.partial(_vq_kernel, s_valid=S, masked=masked,
                               matmul_dtype=matmul_dtype)

    flops = 6 * B * S_pad * K_pad * C          # distance + 2 bf16 gather passes
    bytes_accessed = (2 * B * C * S_pad * 4 + B * S_pad * 4
                      + K_pad * C * (mm_bytes + 4)
                      + B * num_s_tiles * (K_pad + 1) * 4)

    q, idx, loss_part, cnt_part = pl.pallas_call(
        kernel,
        out_shape=(
            jax.ShapeDtypeStruct((B, C, S_pad), jnp.float32),              # quantized
            jax.ShapeDtypeStruct((B, num_s_tiles, 1, tile_s_eff), jnp.int32),  # indices
            jax.ShapeDtypeStruct((B, num_s_tiles, 1, 1), jnp.float32),     # per-tile SSE
            jax.ShapeDtypeStruct((B, num_s_tiles, K_pad, 1), jnp.float32), # per-tile hist
        ),
        grid_spec=pltpu.PrefetchScalarGridSpec(
            num_scalar_prefetch=0,
            grid=(B, num_s_tiles),
            in_specs=[
                pl.BlockSpec((1, C, tile_s_eff), lambda b, s: (b, 0, s)),
                # Constant blocks (same index every step): codebooks + ||e||^2.
                # TODO(synk): pipeline_mode=pl.Buffered(1) would drop their
                # second buffer; negligible at K=512, revisit for huge codebooks
                # (as would chunking the K axis inside the kernel).
                pl.BlockSpec((K_pad, C), lambda b, s: (0, 0)),
                pl.BlockSpec((C, K_pad), lambda b, s: (0, 0)),
                pl.BlockSpec((C, K_pad), lambda b, s: (0, 0)),
                pl.BlockSpec((K_pad, 1), lambda b, s: (0, 0)),
            ],
            out_specs=[
                pl.BlockSpec((1, C, tile_s_eff), lambda b, s: (b, 0, s)),
                pl.BlockSpec((1, 1, 1, tile_s_eff), lambda b, s: (b, s, 0, 0)),
                pl.BlockSpec((1, 1, 1, 1), lambda b, s: (b, s, 0, 0)),
                pl.BlockSpec((1, 1, K_pad, 1), lambda b, s: (b, s, 0, 0)),
            ],
        ),
        compiler_params=pltpu.CompilerParams(
            # Per-tile partials only (no carried accumulator) -> both grid axes
            # can be split across TensorCores (2x on v7x; neutral on v5e/v6e).
            dimension_semantics=("parallel", "parallel"),
            vmem_limit_bytes=vmem_limit,
        ),
        cost_estimate=pl.CostEstimate(flops=int(flops), transcendentals=0,
                                      bytes_accessed=int(bytes_accessed)),
    )(x_f, e_mm, eT_hi, eT_lo, e2h)

    # --- plain-JAX epilogue (tiny scalar / reshape work) -------------------
    # Forward-value semantics: e_latent_loss == q_latent_loss == mse, so
    # loss = (1 + commitment_cost) * mse; the straight-through estimator makes
    # the returned quantized tensor numerically equal to `quantized`.
    # TODO(synk): training would need a custom_vjp for the stop-gradient /
    # straight-through split; forward values are identical.
    sse = jnp.sum(loss_part)
    mse = sse / jnp.float32(N * C)
    loss = (1.0 + commitment_cost) * mse

    counts = jnp.sum(cnt_part, axis=(0, 1, 3))[:K]             # (K,)
    avg_probs = counts / jnp.float32(N)
    perplexity = jnp.exp(-jnp.sum(avg_probs * jnp.log(avg_probs + 1e-10)))

    q_valid = q[:, :, :S] if masked else q
    quantized = q_valid.reshape(B, C, Dd, H, W)                # already NCDHW

    encodings = None
    if return_encodings:
        indices = idx.reshape(B, S_pad)[:, :S].reshape(-1)
        encodings = jax.nn.one_hot(indices, K, dtype=jnp.float32)
    return loss, quantized, perplexity, encodings


def _reference_forward(x, embedding, commitment_cost):
    """Plain-JAX reference mirroring the PyTorch forward (for verification)."""
    B, C, Dd, H, W = x.shape
    x_cl = jnp.transpose(x, (0, 2, 3, 4, 1))
    flat = x_cl.reshape(-1, C)
    dist = (jnp.sum(embedding ** 2, axis=1)
            - 2.0 * jnp.dot(flat, embedding.T, precision=lax.Precision.HIGHEST))
    idx = jnp.argmin(dist, axis=1)
    enc = jax.nn.one_hot(idx, embedding.shape[0], dtype=jnp.float32)
    quant = embedding[idx].reshape(x_cl.shape)
    mse = jnp.mean((quant - x_cl) ** 2)
    loss = (1.0 + commitment_cost) * mse
    avg = jnp.mean(enc, axis=0)
    perp = jnp.exp(-jnp.sum(avg * jnp.log(avg + 1e-10)))
    return loss, jnp.transpose(quant, (0, 4, 1, 2, 3)), perp, enc


if __name__ == "__main__":
    # module hyper-params (VQVAE defaults: embedding_dim=64, num_embeddings=512)
    num_embeddings = 512          # K
    embedding_dim = 64            # C
    commitment_cost = 0.25

    # deterministic "weights": Embedding.weight ~ U(-1/K, 1/K)
    key = jax.random.PRNGKey(0)
    k_emb, k_x = jax.random.split(key)
    embedding = jax.random.uniform(
        k_emb, (num_embeddings, embedding_dim),
        minval=-1.0 / num_embeddings, maxval=1.0 / num_embeddings,
        dtype=jnp.float32)

    # example VQ input (post pre_vq_conv): (B, C, D, H, W) = (2, 64, 3, 8, 8)
    #   -> S = 3*8*8 = 192 spatial positions, N = 384 flattened rows
    x = jax.random.normal(k_x, (2, embedding_dim, 3, 8, 8), dtype=jnp.float32)

    ref_loss, ref_q, ref_p, ref_e = _reference_forward(x, embedding,
                                                       commitment_cost)

    # 1) default config: one full-extent spatial tile per batch (no padding).
    loss, quantized, perplexity, encodings = vector_quantizer_forward(
        x, embedding, commitment_cost=commitment_cost, return_encodings=True)
    jax.block_until_ready((loss, quantized, perplexity, encodings))
    assert jnp.allclose(loss, ref_loss, rtol=1e-4, atol=1e-6), (loss, ref_loss)
    assert jnp.allclose(quantized, ref_q, rtol=1e-5, atol=1e-6)
    assert jnp.allclose(perplexity, ref_p, rtol=1e-4, atol=1e-5)
    assert jnp.array_equal(encodings, ref_e)

    # 2) explicit small tile -> multi-step spatial grid + ragged-tile masking.
    loss2, q2, p2, enc2 = vector_quantizer_forward(
        x, embedding, commitment_cost=commitment_cost, tile_s=128,
        return_encodings=True)
    jax.block_until_ready((loss2, q2, p2, enc2))
    assert jnp.allclose(loss2, ref_loss, rtol=1e-4, atol=1e-6)
    assert jnp.allclose(q2, ref_q, rtol=1e-5, atol=1e-6)
    assert jnp.allclose(p2, ref_p, rtol=1e-4, atol=1e-5)
    assert jnp.array_equal(enc2, ref_e)

    # 3) bf16 distance matmul (fast path on all generations); loose check only
    #    since near-tie argmin flips are allowed there.
    loss3, q3, p3, _ = vector_quantizer_forward(
        x, embedding, commitment_cost=commitment_cost,
        matmul_dtype=jnp.bfloat16)
    jax.block_until_ready((loss3, q3, p3))
    assert jnp.isfinite(loss3) and jnp.isfinite(p3)
    assert jnp.allclose(loss3, ref_loss, rtol=5e-2, atol=1e-3)

    print("KERNEL_OK")
</pallas_src>

<mosaic_0001>
module attributes {stable_mosaic.version = 11 : i64} {
  func.func @_vq_kernel(%arg0: i32, %arg1: i32, %arg2: memref<1x64x192xf32, #tpu.memory_space<vmem>>, %arg3: memref<512x64xf32, #tpu.memory_space<vmem>>, %arg4: memref<64x512xbf16, #tpu.memory_space<vmem>>, %arg5: memref<64x512xbf16, #tpu.memory_space<vmem>>, %arg6: memref<512x1xf32, #tpu.memory_space<vmem>>, %arg7: memref<1x64x192xf32, #tpu.memory_space<vmem>>, %arg8: memref<1x1x1x192xi32, #tpu.memory_space<vmem>>, %arg9: memref<1x1x1x1xf32, #tpu.memory_space<vmem>>, %arg10: memref<1x1x512x1xf32, #tpu.memory_space<vmem>>) attributes {dimension_semantics = [#tpu.dimension_semantics<parallel>, #tpu.dimension_semantics<parallel>], iteration_bounds = array<i64: 2, 1>, scalar_prefetch = 0 : i64, scratch_operands = 0 : i64, tpu.core_type = #tpu.core_type<tc>, window_params = [{transform_indices = @transform_0, window_bounds = array<i64: 1, 64, 192>}, {pipeline_mode = #tpu.pipeline_mode<synchronous>, transform_indices = @transform_1, window_bounds = array<i64: 512, 64>}, {pipeline_mode = #tpu.pipeline_mode<synchronous>, transform_indices = @transform_2, window_bounds = array<i64: 64, 512>}, {pipeline_mode = #tpu.pipeline_mode<synchronous>, transform_indices = @transform_3, window_bounds = array<i64: 64, 512>}, {pipeline_mode = #tpu.pipeline_mode<synchronous>, transform_indices = @transform_4, window_bounds = array<i64: 512, 1>}, {transform_indices = @transform_5, window_bounds = array<i64: 1, 64, 192>}, {transform_indices = @transform_6, window_bounds = array<i64: 1, 1, 1, 192>}, {transform_indices = @transform_7, window_bounds = array<i64: 1, 1, 1, 1>}, {transform_indices = @transform_8, window_bounds = array<i64: 1, 1, 512, 1>}]} {
    %c0 = arith.constant 0 : index
    %c0_0 = arith.constant 0 : index
    %c0_1 = arith.constant 0 : index
    %0 = vector.load %arg2[%c0, %c0_0, %c0_1] : memref<1x64x192xf32, #tpu.memory_space<vmem>>, vector<1x64x192xf32>
    %1 = vector.shape_cast %0 : vector<1x64x192xf32> to vector<64x192xf32>
    %c0_2 = arith.constant 0 : index
    %c0_3 = arith.constant 0 : index
    %2 = vector.load %arg3[%c0_2, %c0_3] : memref<512x64xf32, #tpu.memory_space<vmem>>, vector<512x64xf32>
    %cst = arith.constant dense<0.000000e+00> : vector<512x192xf32>
    %3 = tpu.matmul %2, %1, %cst {dimension_numbers = #tpu.dot_dimension_numbers<[1], [0], [0], [1], [0, 0, 1, 1], [], []>} : vector<512x64xf32>, vector<64x192xf32>, vector<512x192xf32> -> vector<512x192xf32>
    %c0_4 = arith.constant 0 : index
    %c0_5 = arith.constant 0 : index
    %4 = vector.load %arg6[%c0_4, %c0_5] : memref<512x1xf32, #tpu.memory_space<vmem>>, vector<512x1xf32>
    %5 = vector.broadcast %4 : vector<512x1xf32> to vector<512x192xf32>
    %6 = arith.subf %5, %3 : vector<512x192xf32>
    %cst_6 = arith.constant dense<0x7F800000> : vector<192xf32>
    %7 = vector.multi_reduction <minimumf>, %6, %cst_6 [0] : vector<512x192xf32> to vector<192xf32>
    %8 = vector.shape_cast %7 : vector<192xf32> to vector<1x192xf32>
    %9 = tpu.iota {dimensions = array<i32: 0>} : vector<512x192xi32>
    %10 = vector.broadcast %8 : vector<1x192xf32> to vector<512x192xf32>
    %11 = arith.cmpf oeq, %6, %10 : vector<512x192xf32>
    %c512_i32 = arith.constant 512 : i32
    %12 = vector.broadcast %c512_i32 : i32 to vector<512x192xi32>
    %13 = arith.select %11, %9, %12 : vector<512x192xi1>, vector<512x192xi32>
    %cst_7 = arith.constant dense<2147483647> : vector<192xi32>
    %14 = vector.multi_reduction <minsi>, %13, %cst_7 [0] : vector<512x192xi32> to vector<192xi32>
    %15 = vector.shape_cast %14 : vector<192xi32> to vector<1x192xi32>
    %16 = vector.shape_cast %15 : vector<1x192xi32> to vector<1x1x1x192xi32>
    %c0_8 = arith.constant 0 : index
    %c0_9 = arith.constant 0 : index
    %c0_10 = arith.constant 0 : index
    %c0_11 = arith.constant 0 : index
    %17 = vector.load %arg8[%c0_8, %c0_9, %c0_10, %c0_11] : memref<1x1x1x192xi32, #tpu.memory_space<vmem>>, vector<1x1x1x192xi32>
    tpu.vector_store %arg8[%c0_8, %c0_9, %c0_10, %c0_11], %16 {strides = array<i32>} : memref<1x1x1x192xi32, #tpu.memory_space<vmem>>, vector<1x1x1x192xi32>,
    %18 = vector.broadcast %15 : vector<1x192xi32> to vector<512x192xi32>
    %19 = arith.cmpi eq, %9, %18 : vector<512x192xi32>
    %20 = arith.extui %19 : vector<512x192xi1> to vector<512x192xi32>
    %21 = arith.sitofp %20 : vector<512x192xi32> to vector<512x192xf32>
    %22 = arith.truncf %21 : vector<512x192xf32> to vector<512x192xbf16>
    %c0_12 = arith.constant 0 : index
    %c0_13 = arith.constant 0 : index
    %23 = vector.load %arg4[%c0_12, %c0_13] : memref<64x512xbf16, #tpu.memory_space<vmem>>, vector<64x512xbf16>
    %cst_14 = arith.constant dense<0.000000e+00> : vector<64x192xf32>
    %24 = tpu.matmul %23, %22, %cst_14 {dimension_numbers = #tpu.dot_dimension_numbers<[1], [0], [0], [1], [0, 0, 1, 1], [], []>} : vector<64x512xbf16>, vector<512x192xbf16>, vector<64x192xf32> -> vector<64x192xf32>
    %c0_15 = arith.constant 0 : index
    %c0_16 = arith.constant 0 : index
    %25 = vector.load %arg5[%c0_15, %c0_16] : memref<64x512xbf16, #tpu.memory_space<vmem>>, vector<64x512xbf16>
    %cst_17 = arith.constant dense<0.000000e+00> : vector<64x192xf32>
    %26 = tpu.matmul %25, %22, %cst_17 {dimension_numbers = #tpu.dot_dimension_numbers<[1], [0], [0], [1], [0, 0, 1, 1], [], []>} : vector<64x512xbf16>, vector<512x192xbf16>, vector<64x192xf32> -> vector<64x192xf32>
    %27 = arith.addf %24, %26 : vector<64x192xf32>
    %c0_18 = arith.constant 0 : index
    %c0_19 = arith.constant 0 : index
    %c0_20 = arith.constant 0 : index
    %28 = vector.load %arg7[%c0_18, %c0_19, %c0_20] : memref<1x64x192xf32, #tpu.memory_space<vmem>>, vector<1x64x192xf32>
    %29 = vector.shape_cast %28 : vector<1x64x192xf32> to vector<64x192xf32>
    %30 = vector.shape_cast %27 : vector<64x192xf32> to vector<1x64x192xf32>
    tpu.vector_store %arg7[%c0_18, %c0_19, %c0_20], %30 {strides = array<i32>} : memref<1x64x192xf32, #tpu.memory_space<vmem>>, vector<1x64x192xf32>,
    %31 = arith.subf %27, %1 : vector<64x192xf32>
    %32 = arith.extui %19 : vector<512x192xi1> to vector<512x192xi32>
    %33 = arith.sitofp %32 : vector<512x192xi32> to vector<512x192xf32>
    %34 = arith.mulf %31, %31 : vector<64x192xf32>
    %35 = vector.shape_cast %34 : vector<64x192xf32> to vector<1x64x192xf32>
    %cst_21 = arith.constant dense<0.000000e+00> : vector<1xf32>
    %36 = vector.multi_reduction <add>, %35, %cst_21 [1, 2] : vector<1x64x192xf32> to vector<1xf32>
    %37 = vector.shape_cast %36 : vector<1xf32> to vector<1x1x1xf32>
    %38 = vector.extract %37[0, 0, 0] : f32 from vector<1x1x1xf32>
    %39 = vector.broadcast %38 : f32 to vector<1x1x1x1xf32>
    %c0_22 = arith.constant 0 : index
    %c0_23 = arith.constant 0 : index
    %c0_24 = arith.constant 0 : index
    %c0_25 = arith.constant 0 : index
    %40 = vector.load %arg9[%c0_22, %c0_23, %c0_24, %c0_25] : memref<1x1x1x1xf32, #tpu.memory_space<vmem>>, vector<1x1x1x1xf32>
    tpu.vector_store %arg9[%c0_22, %c0_23, %c0_24, %c0_25], %39 {strides = array<i32>} : memref<1x1x1x1xf32, #tpu.memory_space<vmem>>, vector<1x1x1x1xf32>,
    %cst_26 = arith.constant dense<0.000000e+00> : vector<512xf32>
    %41 = vector.multi_reduction <add>, %33, %cst_26 [1] : vector<512x192xf32> to vector<512xf32>
    %42 = vector.shape_cast %41 : vector<512xf32> to vector<512x1xf32>
    %43 = vector.shape_cast %42 : vector<512x1xf32> to vector<1x1x512x1xf32>
    %c0_27 = arith.constant 0 : index
    %c0_28 = arith.constant 0 : index
    %c0_29 = arith.constant 0 : index
    %c0_30 = arith.constant 0 : index
    %44 = vector.load %arg10[%c0_27, %c0_28, %c0_29, %c0_30] : memref<1x1x512x1xf32, #tpu.memory_space<vmem>>, vector<1x1x512x1xf32>
    tpu.vector_store %arg10[%c0_27, %c0_28, %c0_29, %c0_30], %43 {strides = array<i32>} : memref<1x1x512x1xf32, #tpu.memory_space<vmem>>, vector<1x1x512x1xf32>,
    return
  }
  func.func @transform_0(%arg0: i32, %arg1: i32) -> (i32, i32, i32) {
    %c0_i32 = arith.constant 0 : i32
    %c0_i32_0 = arith.constant 0 : i32
    return %arg0, %c0_i32, %arg1 : i32, i32, i32
  }
  func.func @transform_1(%arg0: i32, %arg1: i32) -> (i32, i32) {
    %c0_i32 = arith.constant 0 : i32
    %c0_i32_0 = arith.constant 0 : i32
    %c0_i32_1 = arith.constant 0 : i32
    return %c0_i32, %c0_i32_0 : i32, i32
  }
  func.func @transform_2(%arg0: i32, %arg1: i32) -> (i32, i32) {
    %c0_i32 = arith.constant 0 : i32
    %c0_i32_0 = arith.constant 0 : i32
    %c0_i32_1 = arith.constant 0 : i32
    return %c0_i32, %c0_i32_0 : i32, i32
  }
  func.func @transform_3(%arg0: i32, %arg1: i32) -> (i32, i32) {
    %c0_i32 = arith.constant 0 : i32
    %c0_i32_0 = arith.constant 0 : i32
    %c0_i32_1 = arith.constant 0 : i32
    return %c0_i32, %c0_i32_0 : i32, i32
  }
  func.func @transform_4(%arg0: i32, %arg1: i32) -> (i32, i32) {
    %c0_i32 = arith.constant 0 : i32
    %c0_i32_0 = arith.constant 0 : i32
    %c0_i32_1 = arith.constant 0 : i32
    return %c0_i32, %c0_i32_0 : i32, i32
  }
  func.func @transform_5(%arg0: i32, %arg1: i32) -> (i32, i32, i32) {
    %c0_i32 = arith.constant 0 : i32
    %c0_i32_0 = arith.constant 0 : i32
    return %arg0, %c0_i32, %arg1 : i32, i32, i32
  }
  func.func @transform_6(%arg0: i32, %arg1: i32) -> (i32, i32, i32, i32) {
    %c0_i32 = arith.constant 0 : i32
    %c0_i32_0 = arith.constant 0 : i32
    %c0_i32_1 = arith.constant 0 : i32
    return %arg0, %arg1, %c0_i32, %c0_i32_0 : i32, i32, i32, i32
  }
  func.func @transform_7(%arg0: i32, %arg1: i32) -> (i32, i32, i32, i32) {
    %c0_i32 = arith.constant 0 : i32
    %c0_i32_0 = arith.constant 0 : i32
    %c0_i32_1 = arith.constant 0 : i32
    return %arg0, %arg1, %c0_i32, %c0_i32_0 : i32, i32, i32, i32
  }
  func.func @transform_8(%arg0: i32, %arg1: i32) -> (i32, i32, i32, i32) {
    %c0_i32 = arith.constant 0 : i32
    %c0_i32_0 = arith.constant 0 : i32
    %c0_i32_1 = arith.constant 0 : i32
    return %arg0, %arg1, %c0_i32, %c0_i32_0 : i32, i32, i32, i32
  }
}

</mosaic_0001>

<bundles_post_ra>
// kernel: eq.1
= control target key start
LH: loop header
LB: loop body
LE: loop exit
PB: predicated region body
PF: predicated region fallthrough
CT: control target
= control target key end

     0   :  { %vm12_vm0 = vcmask 523264   ;;  %s40_s10 = smov 64   ;;  %vm29_vm1 = vcmask 1048064   ;;  %s60_s0 = inlined_call_operand.vmem [shape: s32[2,192], index: 0, kind: input, shape index: {}]   ;;  %s61_s1 = inlined_call_operand.vmem [shape: s32[384], index: 1, kind: output, shape index: {}]  }
   0x1   :  { %v38_v0 = vld [vmem:[%s60_s0 + $0x2] sm:$0x3]  ;;  %v8_v1 = vld [vmem:[%s60_s0] sm:$0x3]  ;;  %s20_s0 = smov 3 }
   0x2   :  { %7 = vst [vmem:[#allocation1 + $0x8] sm:$0x3] %v38_v0  ;;  %9 = vst [vmem:[#allocation1] sm:$0x3] %v8_v1 }
   0x9   :  { %v18_v2 = vld [vmem:[#allocation1 + $0x1] sm:$0x1]   ;;  %v11_v4 = vld [vmem:[#allocation1 + $0x8] sm:$0x1]   ;;  %v15_v6 = vld [vmem:[#allocation1] sm:$0x1]  }
   0xa   :  { %v21_v3 = vld [vmem:[#allocation1 + $0x1] ss:$8 sm:%s20_s0]   ;;  %14 = vst.msk [vmem:[#allocation0 + $0x1] sm:$0x1] %vm12_vm0, %v11_v4   ;;  %16 = vst [vmem:[#allocation0] sm:$0x1] %v15_v6  }
   0xb   :  { %v23_v5 = vsel %vm12_vm0, %v21_v3, %v18_v2 }
   0xc   :  { %24 = vrot.lane.b32.xlu0 %v23_v5, %s40_s10 }
  0x7e   :  { %v25_v7 = vpop.permute.xlu0 %24  }
  0x7f   :  { %28 = vst.msk [vmem:[#allocation0 + $0x2] sm:$0x1] %vm12_vm0, %v25_v7  }
  0x80   :  { %31 = vst.msk [vmem:[#allocation0 + $0x1] sm:$0x3] %vm29_vm1, %v25_v7  }
  0x87   :  { %v35_v8 = vld [vmem:[#allocation0] sm:$0xf] }
  0x88   :  { %37 = vst [vmem:[%s61_s1] sm:$0xf] %v35_v8 }

// kernel: vector_quantizer_forward.1
= control target key start
LH: loop header
LB: loop body
LE: loop exit
PB: predicated region body
PF: predicated region fallthrough
CT: control target
= control target key end

     0   :  { %s4832_s27 = smov 0   ;;  %s4834_s28 = smov 0   ;;  %s10050_s0 = inlined_call_operand.vmem [shape: f32[2,64,192], index: 0, kind: input, shape index: {}]   ;;  %s10051_s1 = inlined_call_operand.vmem [shape: f32[512,64], index: 1, kind: input, shape index: {}]   ;;  %s10052_s2 = inlined_call_operand.vmem [shape: bf16[64,512], index: 2, kind: input, shape index: {}]   ;;  %s10053_s3 = inlined_call_operand.vmem [shape: bf16[64,512], index: 3, kind: input, shape index: {}]   ;;  %s10054_s4 = inlined_call_operand.vmem [shape: f32[512,1], index: 4, kind: input, shape index: {}]   ;;  %s10055_s5 = inlined_call_operand.vmem [shape: f32[2,64,192], index: 5, kind: output, shape index: {0}]   ;;  %s10056_s6 = inlined_call_operand.vmem [shape: s32[2,1,1,192], index: 6, kind: output, shape index: {1}]   ;;  %s10057_s7 = inlined_call_operand.vmem [shape: f32[2,1,1,1], index: 7, kind: output, shape index: {2}]   ;;  %s10058_s8 = inlined_call_operand.vmem [shape: f32[2,1,512,1], index: 8, kind: output, shape index: {3}]  }
   0x1   :  { %s4836_s29 = smov 0  }
   0x2 LB: > { %s31_s30 = sadd.s32 1, %s4777_s28  ;;  %p4077_p0 = scmp.ge.s32.totalorder %s4781_s29, 1  ;;  %s4781_s29 = sphi %s4836_s29, %s19_s29   ;;  %s4777_s28 = sphi %s4834_s28, %s11858_s28   ;;  %s4773_s27 = sphi %s4832_s27, %s11857_s27  }
   0x3   : > { %p33_p1 = scmp.ge.s32.totalorder %s31_s30, 2  ;;  %p296_p2 = scmp.lt.s32.totalorder %s4781_s29, 3 }
   0x5   : > { %s11860_s30 = smov (%p33_p1, %s31_s30), 0  ;;  %p297_p3 = pnand %p4077_p0, %p296_p2 }
   0x7   : > { %300 = sbr.rel (%p297_p3) target bundleno = 1472 (0x5c0), region = 40 }
   0xe   : > { %p362_p4 = scmp.lt.s32.totalorder %s4773_s27, 1  ;;  %v10059_v0 = vmov 0.0   ;;  %v4784_v1 = vmov 0   ;;  %v1126_v21 = vld [vmem:[%s10054_s4] sm:$0xff]  ;;  %v1128_v23 = vld [vmem:[%s10054_s4 + $0x10] sm:$0xff]  ;;  %v1127_v27 = vld [vmem:[%s10054_s4 + $0x8] sm:$0xff] }
   0xf   : > { %741 = vmatprep.mubr.f32.mxu0 %v10059_v0  ;;  %4696 = vset.pattern.permute.xlu0 %v4784_v1  ;;  %v1129_v28 = vld [vmem:[%s10054_s4 + $0x18] sm:$0xff]  ;;  %v1130_v30 = vld [vmem:[%s10054_s4 + $0x20] sm:$0xff]  ;;  %v1131_v31 = vld [vmem:[%s10054_s4 + $0x28] sm:$0xff]  ;;  %vm10325_vm0 = vcmask 523264  }
  0x10   : > { %s11862_s27 = smov (!%p362_p4, %s4773_s27), 1  ;;  %4697 = vset.pattern.permute.xlu1 %v4784_v1  ;;  %1192 = vperm.xlu0 %4696, %v1126_v21   ;;  %v420_v32 = vld [vmem:[%s10051_s1] sm:$0xff]  ;;  %v1133_v33 = vld [vmem:[%s10054_s4 + $0x38] sm:$0xff]  ;;  %v1132_v34 = vld [vmem:[%s10054_s4 + $0x30] sm:$0xff] }
  0x11   : > { %s4567_s9 = sshll.u32 %s11862_s27, 7  ;;  %1202 = vperm.xlu1 %4697, %v1128_v23   ;;  %v421_v35 = vld [vmem:[%s10051_s1 + $0x8] sm:$0xff]  ;;  %v1134_v37 = vld [vmem:[%s10054_s4 + $0x40] sm:$0xff]  ;;  %v422_v38 = vld [vmem:[%s10051_s1 + $0x10] sm:$0xff]  ;;  %s4082_s15 = sshll.u32 %s11862_s27, 1 }
  0x12   : > { %s4859_s12 = scalar_lea.vmem %s10050_s0, %s4567_s9  ;;  %v1135_v36 = vld [vmem:[%s10054_s4 + $0x48] sm:$0xff]  ;;  %v1137_v39 = vld [vmem:[%s10054_s4 + $0x58] sm:$0xff]  ;;  %v1136_v40 = vld [vmem:[%s10054_s4 + $0x50] sm:$0xff]  ;;  %s388_s18 = scalar_lea.vmem %s10056_s6, %s4082_s15 }
  0x13   : > { %v405_v2 = vld [vmem:[%s4859_s12 + $0x8] sm:$0xff]  ;;  %v407_v3 = vld [vmem:[%s4859_s12 + $0x18] sm:$0xff]  ;;  %v404_v4 = vld [vmem:[%s4859_s12] sm:$0xff]  ;;  %s4569_s21 = sshll.u32 %s11862_s27, 9  ;;  %s9811_s15 = scalar_lea.vmem %s10055_s5, %s4567_s9 }
  0x14   : > { %v4570_v5 = vpack.c.bf16 %v407_v3, %v405_v2  ;;  %v406_v6 = vld [vmem:[%s4859_s12 + $0x10] sm:$0xff]  ;;  %v409_v7 = vld [vmem:[%s4859_s12 + $0x28] sm:$0xff]  ;;  %v411_v8 = vld [vmem:[%s4859_s12 + $0x38] sm:$0xff]  ;;  %1197 = vperm.xlu0 %4696, %v1127_v27   ;;  %s9492_s26 = scalar_lea.vmem %s10058_s8, %s4569_s21  ;;  %s394_s16 = scalar_lea.vmem %s10057_s7, %s11862_s27 }
  0x15   : > { %v4572_v9 = vpack.c.bf16 %v406_v6, %v404_v4  ;;  %v4574_v10 = vpack.c.bf16 %v411_v8, %v409_v7  ;;  %v408_v11 = vld [vmem:[%s4859_s12 + $0x20] sm:$0xff]  ;;  %v410_v12 = vld [vmem:[%s4859_s12 + $0x30] sm:$0xff]  ;;  %v413_v13 = vld [vmem:[%s4859_s12 + $0x48] sm:$0xff]  ;;  %1207 = vperm.xlu1 %4697, %v1129_v28  }
  0x16   : > { %4571 = vmatprep.subr.bf16.mxu0 %v4570_v5  ;;  %v415_v14 = vld [vmem:[%s4859_s12 + $0x58] sm:$0xff]  ;;  %v4576_v15 = vpack.c.bf16 %v410_v12, %v408_v11  ;;  %v412_v17 = vld [vmem:[%s4859_s12 + $0x40] sm:$0xff]  ;;  %v414_v18 = vld [vmem:[%s4859_s12 + $0x50] sm:$0xff] }
  0x17   : > { %4573 = vmatpush1.bf16.msra.mxu0 %v4572_v9  ;;  %v4578_v16 = vpack.c.bf16 %v415_v14, %v413_v13  ;;  %v417_v19 = vld [vmem:[%s4859_s12 + $0x68] sm:$0xff]  ;;  %v419_v20 = vld [vmem:[%s4859_s12 + $0x78] sm:$0xff]  ;;  %v4580_v22 = vpack.c.bf16 %v414_v18, %v412_v17  ;;  %v416_v25 = vld [vmem:[%s4859_s12 + $0x60] sm:$0xff] }
  0x18   : > { %4575 = vmatprep.subr.bf16.mxu0 %v4574_v10  ;;  %v4582_v24 = vpack.c.bf16 %v419_v20, %v417_v19  ;;  %v418_v26 = vld [vmem:[%s4859_s12 + $0x70] sm:$0xff]  ;;  %1212 = vperm.xlu0 %4696, %v1130_v30   ;;  %v423_v41 = vld [vmem:[%s10051_s1 + $0x18] sm:$0xff]  ;;  %v1138_v42 = vld [vmem:[%s10054_s4 + $0x60] sm:$0xff] }
  0x19   : > { %v4584_v29 = vpack.c.bf16 %v418_v26, %v416_v25  ;;  %1217 = vperm.xlu1 %4697, %v1131_v31   ;;  %v1139_v43 = vld [vmem:[%s10054_s4 + $0x68] sm:$0xff]  ;;  %v424_v44 = vld [vmem:[%s10051_s1 + $0x20] sm:$0xff]  ;;  %v1140_v45 = vld [vmem:[%s10054_s4 + $0x70] sm:$0xff] }
  0x1a   : > { %v1141_v46 = vld [vmem:[%s10054_s4 + $0x78] sm:$0xff]  ;;  %v425_v47 = vld [vmem:[%s10051_s1 + $0x28] sm:$0xff]  ;;  %v1142_v48 = vld [vmem:[%s10054_s4 + $0x80] sm:$0xff] }
  0x1b   : > { %4577 = vmatpush1.bf16.msra.mxu0 %v4576_v15  ;;  %v1143_v49 = vld [vmem:[%s10054_s4 + $0x88] sm:$0xff]  ;;  %v426_v50 = vld [vmem:[%s10051_s1 + $0x30] sm:$0xff]  ;;  %v1145_v52 = vld [vmem:[%s10054_s4 + $0x98] sm:$0xff] }
  0x1c   : > { %4579 = vmatprep.subr.bf16.mxu0 %v4578_v16  ;;  %1222 = vperm.xlu0 %4696, %v1132_v34   ;;  %v1144_v51 = vld [vmem:[%s10054_s4 + $0x90] sm:$0xff]  ;;  %v427_v53 = vld [vmem:[%s10051_s1 + $0x38] sm:$0xff]  ;;  %v1146_v54 = vld [vmem:[%s10054_s4 + $0xa0] sm:$0xff] }
  0x1d   : > { %1227 = vperm.xlu1 %4697, %v1133_v33   ;;  %v1147_v55 = vld [vmem:[%s10054_s4 + $0xa8] sm:$0xff]  ;;  %v428_v56 = vld [vmem:[%s10051_s1 + $0x40] sm:$0xff]  ;;  %v1148_v57 = vld [vmem:[%s10054_s4 + $0xb0] sm:$0xff] }
  0x1e   : > { %v1149_v58 = vld [vmem:[%s10054_s4 + $0xb8] sm:$0xff]  ;;  %v429_v59 = vld [vmem:[%s10051_s1 + $0x48] sm:$0xff]  ;;  %v1150_v60 = vld [vmem:[%s10054_s4 + $0xc0] sm:$0xff] }
  0x1f   : > { %4581 = vmatpush1.bf16.msra.mxu0 %v4580_v22  ;;  %v1151_v61 = vld [vmem:[%s10054_s4 + $0xc8] sm:$0xff]  ;;  %v430_v62 = vld [vmem:[%s10051_s1 + $0x50] sm:$0xff]  ;;  %v1153_v1 = vld [vmem:[%s10054_s4 + $0xd8] sm:$0xff] }
  0x20   : > { %4583 = vmatprep.subr.bf16.mxu0 %v4582_v24  ;;  %1232 = vperm.xlu0 %4696, %v1134_v37   ;;  %v1152_v63 = vld [vmem:[%s10054_s4 + $0xd0] sm:$0xff]  ;;  %v431_v2 = vld [vmem:[%s10051_s1 + $0x58] sm:$0xff]  ;;  %v1154_v3 = vld [vmem:[%s10054_s4 + $0xe0] sm:$0xff] }
  0x21   : > { %1237 = vperm.xlu1 %4697, %v1135_v36   ;;  %v1155_v4 = vld [vmem:[%s10054_s4 + $0xe8] sm:$0xff]  ;;  %v432_v5 = vld [vmem:[%s10051_s1 + $0x60] sm:$0xff]  ;;  %v1156_v6 = vld [vmem:[%s10054_s4 + $0xf0] sm:$0xff] }
  0x22   : > { %v1157_v7 = vld [vmem:[%s10054_s4 + $0xf8] sm:$0xff]  ;;  %v433_v8 = vld [vmem:[%s10051_s1 + $0x68] sm:$0xff]  ;;  %v1158_v9 = vld [vmem:[%s10054_s4 + $0x100] sm:$0xff] }
  0x23   : > { %4585 = vmatpush1.bf16.msra.mxu0 %v4584_v29  ;;  %v1159_v10 = vld [vmem:[%s10054_s4 + $0x108] sm:$0xff]  ;;  %v434_v11 = vld [vmem:[%s10051_s1 + $0x70] sm:$0xff]  ;;  %v1161_v13 = vld [vmem:[%s10054_s4 + $0x118] sm:$0xff] }
  0x24   : > { %1242 = vperm.xlu0 %4696, %v1136_v40   ;;  %v1160_v12 = vld [vmem:[%s10054_s4 + $0x110] sm:$0xff]  ;;  %v435_v14 = vld [vmem:[%s10051_s1 + $0x78] sm:$0xff]  ;;  %v1162_v15 = vld [vmem:[%s10054_s4 + $0x120] sm:$0xff] }
  0x25   : > { %1247 = vperm.xlu1 %4697, %v1137_v39   ;;  %v1163_v16 = vld [vmem:[%s10054_s4 + $0x128] sm:$0xff]  ;;  %v436_v17 = vld [vmem:[%s10051_s1 + $0x80] sm:$0xff]  ;;  %v1164_v18 = vld [vmem:[%s10054_s4 + $0x130] sm:$0xff] }
  0x26   : > { %4085 = vmatmul.mubr.msk.f32.vlgmr.msra.gmra.mrb[0].mxu0 %vm10325_vm0, %v420_v32  ;;  %v1165_v19 = vld [vmem:[%s10054_s4 + $0x138] sm:$0xff]  ;;  %v437_v20 = vld [vmem:[%s10051_s1 + $0x88] sm:$0xff]  ;;  %v1166_v21 = vld [vmem:[%s10054_s4 + $0x140] sm:$0xff] }
  0x27   : > { %747 = vmatprep.mubr.f32.mxu0 %v10059_v0  ;;  %v1167_v22 = vld [vmem:[%s10054_s4 + $0x148] sm:$0xff]  ;;  %v438_v23 = vld [vmem:[%s10051_s1 + $0x90] sm:$0xff]  ;;  %v1169_v25 = vld [vmem:[%s10054_s4 + $0x158] sm:$0xff] }
  0x28   : > { %1252 = vperm.xlu0 %4696, %v1138_v42   ;;  %v1168_v24 = vld [vmem:[%s10054_s4 + $0x150] sm:$0xff]  ;;  %v439_v26 = vld [vmem:[%s10051_s1 + $0x98] sm:$0xff]  ;;  %v1170_v27 = vld [vmem:[%s10054_s4 + $0x160] sm:$0xff] }
  0x29   : > { %1257 = vperm.xlu1 %4697, %v1139_v43   ;;  %v1171_v28 = vld [vmem:[%s10054_s4 + $0x168] sm:$0xff]  ;;  %v440_v29 = vld [vmem:[%s10051_s1 + $0xa0] sm:$0xff]  ;;  %v1172_v30 = vld [vmem:[%s10054_s4 + $0x170] sm:$0xff] }
  0x2a   : > { %4086 = vmatmul.mubr.msk.f32.gmra.mrb[2].mxu0 %vm10325_vm0, %v421_v35  ;;  %v1173_v31 = vld [vmem:[%s10054_s4 + $0x178] sm:$0xff]  ;;  %v441_v32 = vld [vmem:[%s10051_s1 + $0xa8] sm:$0xff]  ;;  %v1174_v33 = vld [vmem:[%s10054_s4 + $0x180] sm:$0xff] }
  0x2b   : > { %753 = vmatprep.mubr.f32.mxu0 %v10059_v0  ;;  %v1175_v34 = vld [vmem:[%s10054_s4 + $0x188] sm:$0xff]  ;;  %v442_v35 = vld [vmem:[%s10051_s1 + $0xb0] sm:$0xff]  ;;  %v1177_v37 = vld [vmem:[%s10054_s4 + $0x198] sm:$0xff] }
  0x2c   : > { %1262 = vperm.xlu0 %4696, %v1140_v45   ;;  %v1176_v36 = vld [vmem:[%s10054_s4 + $0x190] sm:$0xff]  ;;  %v1178_v39 = vld [vmem:[%s10054_s4 + $0x1a0] sm:$0xff]  ;;  %v1179_v40 = vld [vmem:[%s10054_s4 + $0x1a8] sm:$0xff] }
  0x2d   : > { %1267 = vperm.xlu1 %4697, %v1141_v46   ;;  %v1180_v42 = vld [vmem:[%s10054_s4 + $0x1b0] sm:$0xff]  ;;  %v1181_v43 = vld [vmem:[%s10054_s4 + $0x1b8] sm:$0xff]  ;;  %v1182_v45 = vld [vmem:[%s10054_s4 + $0x1c0] sm:$0xff] }
  0x2e   : > { %4087 = vmatmul.mubr.msk.f32.gmra.mrb[4].mxu0 %vm10325_vm0, %v422_v38  ;;  %v443_v38 = vld [vmem:[%s10051_s1 + $0xb8] sm:$0xff]  ;;  %v1183_v46 = vld [vmem:[%s10054_s4 + $0x1c8] sm:$0xff] }
  0x2f   : > { %759 = vmatprep.mubr.f32.mxu0 %v10059_v0 }
  0x30   : > { %1272 = vperm.xlu0 %4696, %v1142_v48   ;;  %v1184_v48 = vld [vmem:[%s10054_s4 + $0x1d0] sm:$0xff] }
  0x31   : > { %1277 = vperm.xlu1 %4697, %v1143_v49   ;;  %v1185_v49 = vld [vmem:[%s10054_s4 + $0x1d8] sm:$0xff] }
  0x32   : > { %4088 = vmatmul.mubr.msk.f32.gmra.mrb[6].mxu0 %vm10325_vm0, %v423_v41  ;;  %v444_v41 = vld [vmem:[%s10051_s1 + $0xc0] sm:$0xff] }
  0x33   : > { %765 = vmatprep.mubr.f32.mxu0 %v10059_v0 }
  0x34   : > { %1282 = vperm.xlu0 %4696, %v1144_v51   ;;  %v1186_v51 = vld [vmem:[%s10054_s4 + $0x1e0] sm:$0xff] }
  0x35   : > { %1287 = vperm.xlu1 %4697, %v1145_v52   ;;  %v1187_v52 = vld [vmem:[%s10054_s4 + $0x1e8] sm:$0xff] }
  0x36   : > { %4089 = vmatmul.mubr.msk.f32.gmra.mrb[8].mxu0 %vm10325_vm0, %v424_v44  ;;  %v445_v44 = vld [vmem:[%s10051_s1 + $0xc8] sm:$0xff] }
  0x37   : > { %771 = vmatprep.mubr.f32.mxu0 %v10059_v0 }
  0x38   : > { %1292 = vperm.xlu0 %4696, %v1146_v54   ;;  %v1188_v54 = vld [vmem:[%s10054_s4 + $0x1f0] sm:$0xff] }
  0x39   : > { %1297 = vperm.xlu1 %4697, %v1147_v55   ;;  %v1189_v55 = vld [vmem:[%s10054_s4 + $0x1f8] sm:$0xff] }
  0x3a   : > { %4090 = vmatmul.mubr.msk.f32.gmra.mrb[10].mxu0 %vm10325_vm0, %v425_v47  ;;  %v446_v47 = vld [vmem:[%s10051_s1 + $0xd0] sm:$0xff] }
  0x3b   : > { %777 = vmatprep.mubr.f32.mxu0 %v10059_v0 }
  0x3c   : > { %1302 = vperm.xlu0 %4696, %v1148_v57   ;;  %v450_v57 = vld [vmem:[%s10051_s1 + $0xf0] sm:$0xff] }
  0x3d   : > { %1307 = vperm.xlu1 %4697, %v1149_v58   ;;  %v451_v58 = vld [vmem:[%s10051_s1 + $0xf8] sm:$0xff] }
  0x3e   : > { %4091 = vmatmul.mubr.msk.f32.gmra.mrb[12].mxu0 %vm10325_vm0, %v426_v50  ;;  %v447_v50 = vld [vmem:[%s10051_s1 + $0xd8] sm:$0xff] }
  0x3f   : > { %783 = vmatprep.mubr.f32.mxu0 %v10059_v0 }
  0x40   : > { %1312 = vperm.xlu0 %4696, %v1150_v60   ;;  %v453_v60 = vld [vmem:[%s10051_s1 + $0x108] sm:$0xff] }
  0x41   : > { %1317 = vperm.xlu1 %4697, %v1151_v61   ;;  %v454_v61 = vld [vmem:[%s10051_s1 + $0x110] sm:$0xff] }
  0x42   : > { %4092 = vmatmul.mubr.msk.f32.gmra.mrb[14].mxu0 %vm10325_vm0, %v427_v53  ;;  %v448_v53 = vld [vmem:[%s10051_s1 + $0xe0] sm:$0xff] }
  0x43   : > { %789 = vmatprep.mubr.f32.mxu0 %v10059_v0 }
  0x44   : > { %1322 = vperm.xlu0 %4696, %v1152_v63   ;;  %v456_v63 = vld [vmem:[%s10051_s1 + $0x120] sm:$0xff] }
  0x45   : > { %1327 = vperm.xlu1 %4697, %v1153_v1   ;;  %v457_v1 = vld [vmem:[%s10051_s1 + $0x128] sm:$0xff] }
  0x46   : > { %4093 = vmatmul.mubr.msk.f32.gmra.mrb[16].mxu0 %vm10325_vm0, %v428_v56  ;;  %v449_v56 = vld [vmem:[%s10051_s1 + $0xe8] sm:$0xff] }
  0x47   : > { %795 = vmatprep.mubr.f32.mxu0 %v10059_v0 }
  0x48   : > { %1332 = vperm.xlu0 %4696, %v1154_v3   ;;  %v459_v3 = vld [vmem:[%s10051_s1 + $0x138] sm:$0xff] }
  0x49   : > { %1337 = vperm.xlu1 %4697, %v1155_v4   ;;  %v460_v4 = vld [vmem:[%s10051_s1 + $0x140] sm:$0xff] }
  0x4a   : > { %4094 = vmatmul.mubr.msk.f32.gmra.mrb[18].mxu0 %vm10325_vm0, %v429_v59  ;;  %v452_v59 = vld [vmem:[%s10051_s1 + $0x100] sm:$0xff] }
  0x4b   : > { %801 = vmatprep.mubr.f32.mxu0 %v10059_v0 }
  0x4c   : > { %1342 = vperm.xlu0 %4696, %v1156_v6   ;;  %v462_v6 = vld [vmem:[%s10051_s1 + $0x150] sm:$0xff] }
  0x4d   : > { %1347 = vperm.xlu1 %4697, %v1157_v7   ;;  %v463_v7 = vld [vmem:[%s10051_s1 + $0x158] sm:$0xff] }
  0x4e   : > { %4095 = vmatmul.mubr.msk.f32.gmra.mrb[20].mxu0 %vm10325_vm0, %v430_v62  ;;  %v455_v62 = vld [vmem:[%s10051_s1 + $0x118] sm:$0xff] }
  0x4f   : > { %807 = vmatprep.mubr.f32.mxu0 %v10059_v0 }
  0x50   : > { %1352 = vperm.xlu0 %4696, %v1158_v9   ;;  %v465_v9 = vld [vmem:[%s10051_s1 + $0x168] sm:$0xff] }
  0x51   : > { %1357 = vperm.xlu1 %4697, %v1159_v10   ;;  %v466_v10 = vld [vmem:[%s10051_s1 + $0x170] sm:$0xff] }
  0x52   : > { %4096 = vmatmul.mubr.msk.f32.gmra.mrb[22].mxu0 %vm10325_vm0, %v431_v2  ;;  %v458_v2 = vld [vmem:[%s10051_s1 + $0x130] sm:$0xff] }
  0x53   : > { %813 = vmatprep.mubr.f32.mxu0 %v10059_v0 }
  0x54   : > { %1362 = vperm.xlu0 %4696, %v1160_v12   ;;  %v468_v12 = vld [vmem:[%s10051_s1 + $0x180] sm:$0xff] }
  0x55   : > { %1367 = vperm.xlu1 %4697, %v1161_v13   ;;  %v469_v13 = vld [vmem:[%s10051_s1 + $0x188] sm:$0xff] }
  0x56   : > { %4097 = vmatmul.mubr.msk.f32.gmra.mrb[24].mxu0 %vm10325_vm0, %v432_v5  ;;  %v461_v5 = vld [vmem:[%s10051_s1 + $0x148] sm:$0xff] }
  0x57   : > { %819 = vmatprep.mubr.f32.mxu0 %v10059_v0 }
  0x58   : > { %1372 = vperm.xlu0 %4696, %v1162_v15   ;;  %v471_v15 = vld [vmem:[%s10051_s1 + $0x198] sm:$0xff] }
  0x59   : > { %1377 = vperm.xlu1 %4697, %v1163_v16   ;;  %v472_v16 = vld [vmem:[%s10051_s1 + $0x1a0] sm:$0xff] }
  0x5a   : > { %4098 = vmatmul.mubr.msk.f32.gmra.mrb[26].mxu0 %vm10325_vm0, %v433_v8  ;;  %v464_v8 = vld [vmem:[%s10051_s1 + $0x160] sm:$0xff] }
  0x5b   : > { %825 = vmatprep.mubr.f32.mxu0 %v10059_v0 }
  0x5c   : > { %1382 = vperm.xlu0 %4696, %v1164_v18  }
  0x5d   : > { %1387 = vperm.xlu1 %4697, %v1165_v19  }
  0x5e   : > { %4099 = vmatmul.mubr.msk.f32.gmra.mrb[28].mxu0 %vm10325_vm0, %v434_v11  ;;  %v467_v11 = vld [vmem:[%s10051_s1 + $0x178] sm:$0xff] }
  0x5f   : > { %831 = vmatprep.mubr.f32.mxu0 %v10059_v0 }
  0x60   : > { %1392 = vperm.xlu0 %4696, %v1166_v21  }
  0x61   : > { %1397 = vperm.xlu1 %4697, %v1167_v22  }
  0x62   : > { %4100 = vmatmul.mubr.msk.f32.gmra.mrb[30].mxu0 %vm10325_vm0, %v435_v14  ;;  %v470_v14 = vld [vmem:[%s10051_s1 + $0x190] sm:$0xff] }
  0x63   : > { %837 = vmatprep.mubr.f32.mxu0 %v10059_v0 }
  0x64   : > { %1402 = vperm.xlu0 %4696, %v1168_v24  }
  0x65   : > { %1407 = vperm.xlu1 %4697, %v1169_v25  }
  0x66   : > { %4101 = vmatmul.mubr.msk.f32.gmra.mrb[32].mxu0 %vm10325_vm0, %v436_v17  ;;  %v473_v17 = vld [vmem:[%s10051_s1 + $0x1a8] sm:$0xff] }
  0x67   : > { %843 = vmatprep.mubr.f32.mxu0 %v10059_v0 }
  0x68   : > { %1412 = vperm.xlu0 %4696, %v1170_v27  }
  0x69   : > { %1417 = vperm.xlu1 %4697, %v1171_v28  }
  0x6a   : > { %4102 = vmatmul.mubr.msk.f32.gmra.mrb[34].mxu0 %vm10325_vm0, %v437_v20  ;;  %v474_v20 = vld [vmem:[%s10051_s1 + $0x1b0] sm:$0xff] }
  0x6b   : > { %849 = vmatprep.mubr.f32.mxu0 %v10059_v0 }
  0x6c   : > { %1422 = vperm.xlu0 %4696, %v1172_v30  }
  0x6d   : > { %1427 = vperm.xlu1 %4697, %v1173_v31  }
  0x6e   : > { %4103 = vmatmul.mubr.msk.f32.gmra.mrb[36].mxu0 %vm10325_vm0, %v438_v23  ;;  %v475_v23 = vld [vmem:[%s10051_s1 + $0x1b8] sm:$0xff] }
  0x6f   : > { %855 = vmatprep.mubr.f32.mxu0 %v10059_v0 }
  0x70   : > { %1432 = vperm.xlu0 %4696, %v1174_v33  }
  0x71   : > { %1437 = vperm.xlu1 %4697, %v1175_v34  }
  0x72   : > { %4104 = vmatmul.mubr.msk.f32.gmra.mrb[38].mxu0 %vm10325_vm0, %v439_v26  ;;  %v476_v26 = vld [vmem:[%s10051_s1 + $0x1c0] sm:$0xff] }
  0x73   : > { %861 = vmatprep.mubr.f32.mxu0 %v10059_v0 }
  0x74   : > { %1442 = vperm.xlu0 %4696, %v1176_v36  }
  0x75   : > { %1447 = vperm.xlu1 %4697, %v1177_v37  }
  0x76   : > { %4105 = vmatmul.mubr.msk.f32.gmra.mrb[40].mxu0 %vm10325_vm0, %v440_v29  ;;  %v477_v29 = vld [vmem:[%s10051_s1 + $0x1c8] sm:$0xff] }
  0x77   : > { %867 = vmatprep.mubr.f32.mxu0 %v10059_v0 }
  0x78   : > { %1452 = vperm.xlu0 %4696, %v1178_v39  }
  0x79   : > { %1457 = vperm.xlu1 %4697, %v1179_v40  }
  0x7a   : > { %4106 = vmatmul.mubr.msk.f32.gmra.mrb[42].mxu0 %vm10325_vm0, %v441_v32  ;;  %v478_v32 = vld [vmem:[%s10051_s1 + $0x1d0] sm:$0xff] }
  0x7b   : > { %873 = vmatprep.mubr.f32.mxu0 %v10059_v0 }
  0x7c   : > { %1462 = vperm.xlu0 %4696, %v1180_v42  }
  0x7d   : > { %1467 = vperm.xlu1 %4697, %v1181_v43  }
  0x7e   : > { %4107 = vmatmul.mubr.msk.f32.gmra.mrb[44].mxu0 %vm10325_vm0, %v442_v35  ;;  %v479_v35 = vld [vmem:[%s10051_s1 + $0x1d8] sm:$0xff] }
  0x7f   : > { %879 = vmatprep.mubr.f32.mxu0 %v10059_v0 }
  0x80   : > { %1472 = vperm.xlu0 %4696, %v1182_v45  }
  0x81   : > { %1477 = vperm.xlu1 %4697, %v1183_v46  }
  0x82   : > { %4108 = vmatmul.mubr.msk.f32.gmra.mrb[46].mxu0 %vm10325_vm0, %v443_v38  ;;  %v480_v38 = vld [vmem:[%s10051_s1 + $0x1e0] sm:$0xff] }
  0x83   : > { %885 = vmatprep.mubr.f32.mxu0 %v10059_v0 }
  0x84   : > { %1482 = vperm.xlu0 %4696, %v1184_v48  }
  0x85   : > { %1487 = vperm.xlu1 %4697, %v1185_v49  }
  0x86   : > { %4109 = vmatmul.mubr.msk.f32.gmra.mrb[48].mxu0 %vm10325_vm0, %v444_v41  ;;  %v481_v41 = vld [vmem:[%s10051_s1 + $0x1e8] sm:$0xff] }
  0x87   : > { %891 = vmatprep.mubr.f32.mxu0 %v10059_v0 }
  0x88   : > { %1492 = vperm.xlu0 %4696, %v1186_v51  }
  0x89   : > { %1497 = vperm.xlu1 %4697, %v1187_v52  }
  0x8a   : > { %4110 = vmatmul.mubr.msk.f32.gmra.mrb[50].mxu0 %vm10325_vm0, %v445_v44  ;;  %v482_v44 = vld [vmem:[%s10051_s1 + $0x1f0] sm:$0xff] }
  0x8b   : > { %897 = vmatprep.mubr.f32.mxu0 %v10059_v0 }
  0x8c   : > { %1502 = vperm.xlu0 %4696, %v1188_v54  }
  0x8d   : > { %1507 = vperm.xlu1 %4697, %v1189_v55  }
  0x8e   : > { %4111 = vmatmul.mubr.msk.f32.gmra.mrb[52].mxu0 %vm10325_vm0, %v446_v47  ;;  %v483_v47 = vld [vmem:[%s10051_s1 + $0x1f8] sm:$0xff] }
  0x8f   : > { %903 = vmatprep.mubr.f32.mxu0 %v10059_v0 }
  0x92   : > { %4112 = vmatmul.mubr.msk.f32.gmra.mrb[54].mxu0 %vm10325_vm0, %v447_v50 }
  0x93   : > { %909 = vmatprep.mubr.f32.mxu0 %v10059_v0 }
  0x96   : > { %4113 = vmatmul.mubr.msk.f32.gmra.mrb[56].mxu0 %vm10325_vm0, %v448_v53 }
  0x97   : > { %915 = vmatprep.mubr.f32.mxu0 %v10059_v0 }
  0x9a   : > { %4114 = vmatmul.mubr.msk.f32.gmra.mrb[58].mxu0 %vm10325_vm0, %v449_v56 }
  0x9b   : > { %921 = vmatprep.mubr.f32.mxu0 %v10059_v0 }
  0x9e   : > { %4115 = vmatmul.mubr.msk.f32.gmra.mrb[60].mxu0 %vm10325_vm0, %v450_v57 }
  0x9f   : > { %927 = vmatprep.mubr.f32.mxu0 %v10059_v0 }
  0xa2   : > { %4116 = vmatmul.mubr.msk.f32.gmra.mrb[62].mxu0 %vm10325_vm0, %v451_v58  ;;  %v5448_v58 = vpop.permute.xlu0 %1192 }
  0xa3   : > { %933 = vmatprep.mubr.f32.mxu0 %v10059_v0 }
  0xa6   : > { %4117 = vmatmul.mubr.msk.f32.gmra.mrb[64].mxu0 %vm10325_vm0, %v452_v59  ;;  %v5450_v59 = vpop.permute.xlu1 %1202 }
  0xa7   : > { %939 = vmatprep.mubr.f32.mxu0 %v10059_v0 }
  0xaa   : > { %4118 = vmatmul.mubr.msk.f32.gmra.mrb[66].mxu0 %vm10325_vm0, %v453_v60 }
  0xab   : > { %945 = vmatprep.mubr.f32.mxu0 %v10059_v0 }
  0xae   : > { %4119 = vmatmul.mubr.msk.f32.gmra.mrb[68].mxu0 %vm10325_vm0, %v454_v61 }
  0xaf   : > { %951 = vmatprep.mubr.f32.mxu0 %v10059_v0 }
  0xb2   : > { %4120 = vmatmul.mubr.msk.f32.gmra.mrb[70].mxu0 %vm10325_vm0, %v455_v62 }
  0xb3   : > { %957 = vmatprep.mubr.f32.mxu0 %v10059_v0 }
  0xb6   : > { %4121 = vmatmul.mubr.msk.f32.gmra.mrb[72].mxu0 %vm10325_vm0, %v456_v63 }
  0xb7   : > { %963 = vmatprep.mubr.f32.mxu0 %v10059_v0 }
  0xba   : > { %4122 = vmatmul.mubr.msk.f32.gmra.mrb[74].mxu0 %vm10325_vm0, %v457_v1  ;;  %v5460_v1 = vpop.permute.xlu0 %1197 }
  0xbb   : > { %969 = vmatprep.mubr.f32.mxu0 %v10059_v0 }
  0xbe   : > { %4123 = vmatmul.mubr.msk.f32.gmra.mrb[76].mxu0 %vm10325_vm0, %v458_v2  ;;  %v5462_v2 = vpop.permute.xlu1 %1207 }
  0xbf   : > { %975 = vmatprep.mubr.f32.mxu0 %v10059_v0 }
  0xc2   : > { %4124 = vmatmul.mubr.msk.f32.gmra.mrb[78].mxu0 %vm10325_vm0, %v459_v3 }
  0xc3   : > { %981 = vmatprep.mubr.f32.mxu0 %v10059_v0 }
  0xc6   : > { %4125 = vmatmul.mubr.msk.f32.gmra.mrb[80].mxu0 %vm10325_vm0, %v460_v4 }
  0xc7   : > { %987 = vmatprep.mubr.f32.mxu0 %v10059_v0 }
  0xca   : > { %4126 = vmatmul.mubr.msk.f32.gmra.mrb[82].mxu0 %vm10325_vm0, %v461_v5  ;;  %v5468_v5 = vpop.permute.xlu0 %1212 }
  0xcb   : > { %993 = vmatprep.mubr.f32.mxu0 %v10059_v0 }
  0xce   : > { %4127 = vmatmul.mubr.msk.f32.gmra.mrb[84].mxu0 %vm10325_vm0, %v462_v6  ;;  %v5470_v6 = vpop.permute.xlu1 %1217 }
  0xcf   : > { %999 = vmatprep.mubr.f32.mxu0 %v10059_v0 }
  0xd2   : > { %4128 = vmatmul.mubr.msk.f32.gmra.mrb[86].mxu0 %vm10325_vm0, %v463_v7 }
  0xd3   : > { %1005 = vmatprep.mubr.f32.mxu0 %v10059_v0 }
  0xd6   : > { %4129 = vmatmul.mubr.msk.f32.gmra.mrb[88].mxu0 %vm10325_vm0, %v464_v8 }
  0xd7   : > { %1011 = vmatprep.mubr.f32.mxu0 %v10059_v0 }
  0xda   : > { %4130 = vmatmul.mubr.msk.f32.gmra.mrb[90].mxu0 %vm10325_vm0, %v465_v9  ;;  %v5476_v9 = vpop.permute.xlu0 %1222 }
  0xdb   : > { %1017 = vmatprep.mubr.f32.mxu0 %v10059_v0 }
  0xde   : > { %4131 = vmatmul.mubr.msk.f32.gmra.mrb[92].mxu0 %vm10325_vm0, %v466_v10 }
  0xdf   : > { %1023 = vmatprep.mubr.f32.mxu0 %v10059_v0 }
  0xe2   : > { %4132 = vmatmul.mubr.msk.f32.gmra.mrb[94].mxu0 %vm10325_vm0, %v467_v11 }
  0xe3   : > { %1029 = vmatprep.mubr.f32.mxu0 %v10059_v0 }
  0xe6   : > { %4133 = vmatmul.mubr.msk.f32.gmra.mrb[96].mxu0 %vm10325_vm0, %v468_v12  ;;  %v5482_v12 = vpop.permute.xlu1 %1227 }
  0xe7   : > { %1035 = vmatprep.mubr.f32.mxu0 %v10059_v0 }
  0xea   : > { %4134 = vmatmul.mubr.msk.f32.gmra.mrb[98].mxu0 %vm10325_vm0, %v469_v13 }
  0xeb   : > { %1041 = vmatprep.mubr.f32.mxu0 %v10059_v0 }
  0xee   : > { %4135 = vmatmul.mubr.msk.f32.gmra.mrb[100].mxu0 %vm10325_vm0, %v470_v14 }
  0xef   : > { %1047 = vmatprep.mubr.f32.mxu0 %v10059_v0 }
  0xf2   : > { %4136 = vmatmul.mubr.msk.f32.gmra.mrb[102].mxu0 %vm10325_vm0, %v471_v15  ;;  %v5488_v15 = vpop.permute.xlu0 %1232 }
  0xf3   : > { %1053 = vmatprep.mubr.f32.mxu0 %v10059_v0 }
  0xf6   : > { %4137 = vmatmul.mubr.msk.f32.gmra.mrb[104].mxu0 %vm10325_vm0, %v472_v16  ;;  %v5490_v16 = vpop.permute.xlu1 %1237 }
  0xf7   : > { %1059 = vmatprep.mubr.f32.mxu0 %v10059_v0 }
  0xf9   : > { %v5337_v18 = vpop.f32.mrb[0].mxu0 }
  0xfa   : > { %v5339_v19 = vpop.f32.mrb[1].mxu0  ;;  %4138 = vmatmul.mubr.msk.f32.gmra.mrb[106].mxu0 %vm10325_vm0, %v473_v17 }
  0xfb   : > { %10572 = vst [vmem:[#allocation2_spill] sm:$0xff] %v5339_v19  ;;  %1065 = vmatprep.mubr.f32.mxu0 %v10059_v0 }
  0xfd   : > { %v5346_v21 = vpop.f32.mrb[2].mxu0 }
  0xfe   : > { %v5348_v22 = vpop.f32.mrb[3].mxu0  ;;  %4139 = vmatmul.mubr.msk.f32.gmra.mrb[108].mxu0 %vm10325_vm0, %v474_v20 }
  0xff   : > { %10573 = vst [vmem:[#allocation3_spill] sm:$0xff] %v5348_v22  ;;  %1071 = vmatprep.mubr.f32.mxu0 %v10059_v0 }
 0x101   : > { %v5355_v24 = vpop.f32.mrb[4].mxu0 }
 0x102   : > { %v5357_v25 = vpop.f32.mrb[5].mxu0  ;;  %4140 = vmatmul.mubr.msk.f32.gmra.mrb[110].mxu0 %vm10325_vm0, %v475_v23  ;;  %v5496_v23 = vpop.permute.xlu0 %1242 }
 0x103   : > { %10574 = vst [vmem:[#allocation4_spill] sm:$0xff] %v5357_v25  ;;  %1077 = vmatprep.mubr.f32.mxu0 %v10059_v0 }
 0x105   : > { %v5364_v27 = vpop.f32.mrb[6].mxu0 }
 0x106   : > { %v5366_v28 = vpop.f32.mrb[7].mxu0  ;;  %4141 = vmatmul.mubr.msk.f32.gmra.mrb[112].mxu0 %vm10325_vm0, %v476_v26 }
 0x107   : > { %10575 = vst [vmem:[#allocation5_spill] sm:$0xff] %v5366_v28  ;;  %1083 = vmatprep.mubr.f32.mxu0 %v10059_v0 }
 0x109   : > { %v5373_v30 = vpop.f32.mrb[8].mxu0 }
 0x10a   : > { %v5375_v31 = vpop.f32.mrb[9].mxu0  ;;  %4142 = vmatmul.mubr.msk.f32.gmra.mrb[114].mxu0 %vm10325_vm0, %v477_v29 }
 0x10b   : > { %10576 = vst [vmem:[#allocation6_spill] sm:$0xff] %v5375_v31  ;;  %1089 = vmatprep.mubr.f32.mxu0 %v10059_v0 }
 0x10d   : > { %v5382_v33 = vpop.f32.mrb[10].mxu0 }
 0x10e   : > { %v5384_v34 = vpop.f32.mrb[11].mxu0  ;;  %4143 = vmatmul.mubr.msk.f32.gmra.mrb[116].mxu0 %vm10325_vm0, %v478_v32  ;;  %v5502_v32 = vpop.permute.xlu1 %1247 }
 0x10f   : > { %10577 = vst [vmem:[#allocation7_spill] sm:$0xff] %v5384_v34  ;;  %1095 = vmatprep.mubr.f32.mxu0 %v10059_v0 }
 0x111   : > { %v5391_v36 = vpop.f32.mrb[12].mxu0 }
 0x112   : > { %v5393_v37 = vpop.f32.mrb[13].mxu0  ;;  %4144 = vmatmul.mubr.msk.f32.gmra.mrb[118].mxu0 %vm10325_vm0, %v479_v35 }
 0x113   : > { %10578 = vst [vmem:[#allocation8_spill] sm:$0xff] %v5393_v37  ;;  %1101 = vmatprep.mubr.f32.mxu0 %v10059_v0 }
 0x115   : > { %v5400_v39 = vpop.f32.mrb[14].mxu0 }
 0x116   : > { %v5402_v40 = vpop.f32.mrb[15].mxu0  ;;  %4145 = vmatmul.mubr.msk.f32.gmra.mrb[120].mxu0 %vm10325_vm0, %v480_v38 }
 0x117   : > { %10579 = vst [vmem:[#allocation9_spill] sm:$0xff] %v5402_v40  ;;  %1107 = vmatprep.mubr.f32.mxu0 %v10059_v0 }
 0x119   : > { %v5409_v42 = vpop.f32.mrb[16].mxu0 }
 0x11a   : > { %v5411_v43 = vpop.f32.mrb[17].mxu0  ;;  %4146 = vmatmul.mubr.msk.f32.gmra.mrb[122].mxu0 %vm10325_vm0, %v481_v41  ;;  %v5508_v41 = vpop.permute.xlu0 %1252 }
 0x11b   : > { %10580 = vst [vmem:[#allocation10_spill] sm:$0xff] %v5411_v43  ;;  %1113 = vmatprep.mubr.f32.mxu0 %v10059_v0 }
 0x11d   : > { %v5418_v45 = vpop.f32.mrb[18].mxu0 }
 0x11e   : > { %v5420_v46 = vpop.f32.mrb[19].mxu0  ;;  %4147 = vmatmul.mubr.msk.f32.gmra.mrb[124].mxu0 %vm10325_vm0, %v482_v44  ;;  %v5510_v44 = vpop.permute.xlu1 %1257 }
 0x11f   : > { %10581 = vst [vmem:[#allocation11_spill] sm:$0xff] %v5420_v46  ;;  %1119 = vmatprep.mubr.f32.mxu0 %v10059_v0 }
 0x121   : > { %v5427_v48 = vpop.f32.mrb[20].mxu0 }
 0x122   : > { %v5429_v49 = vpop.f32.mrb[21].mxu0  ;;  %4148 = vmatmul.mubr.msk.f32.gmra.mrb[126].mxu0 %vm10325_vm0, %v483_v47 }
 0x123   : > { %10582 = vst [vmem:[#allocation12_spill] sm:$0xff] %v5429_v49 }
 0x125   : > { %v5432_v50 = vpop.f32.mrb[22].mxu0 }
 0x126   : > { %v5434_v51 = vpop.f32.mrb[23].mxu0 }
 0x127   : > { %10583 = vst [vmem:[#allocation13_spill] sm:$0xff] %v5434_v51 }
 0x129   : > { %v5436_v52 = vpop.f32.mrb[24].mxu0 }
 0x12a   : > { %v5438_v53 = vpop.f32.mrb[25].mxu0 }
 0x12b   : > { %10584 = vst [vmem:[#allocation14_spill] sm:$0xff] %v5438_v53 }
 0x12d   : > { %v5440_v54 = vpop.f32.mrb[26].mxu0 }
 0x12e   : > { %v5442_v55 = vpop.f32.mrb[27].mxu0 }
 0x12f   : > { %10585 = vst [vmem:[#allocation15_spill] sm:$0xff] %v5442_v55 }
 0x131   : > { %v5444_v56 = vpop.f32.mrb[28].mxu0 }
 0x132   : > { %v5446_v57 = vpop.f32.mrb[29].mxu0 }
 0x133   : > { %10586 = vst [vmem:[#allocation16_spill] sm:$0xff] %v5446_v57 }
 0x135   : > { %v5452_v60 = vpop.f32.mrb[30].mxu0 }
 0x136   : > { %v5454_v61 = vpop.f32.mrb[31].mxu0 }
 0x137   : > { %10587 = vst [vmem:[#allocation17_spill] sm:$0xff] %v5454_v61 }
 0x139   : > { %v5456_v62 = vpop.f32.mrb[32].mxu0 }
 0x13a   : > { %v5458_v63 = vpop.f32.mrb[33].mxu0 }
 0x13b   : > { %10588 = vst [vmem:[#allocation18_spill] sm:$0xff] %v5458_v63 }
 0x13d   : > { %v5464_v3 = vpop.f32.mrb[34].mxu0 }
 0x13e   : > { %v5466_v4 = vpop.f32.mrb[35].mxu0 }
 0x13f   : > { %10589 = vst [vmem:[#allocation19_spill] sm:$0xff] %v5466_v4 }
 0x141   : > { %v5472_v7 = vpop.f32.mrb[36].mxu0 }
 0x142   : > { %v5474_v8 = vpop.f32.mrb[37].mxu0 }
 0x143   : > { %10590 = vst [vmem:[#allocation20_spill] sm:$0xff] %v5474_v8 }
 0x145   : > { %v5478_v10 = vpop.f32.mrb[38].mxu0 }
 0x146   : > { %v5480_v11 = vpop.f32.mrb[39].mxu0 }
 0x147   : > { %10591 = vst [vmem:[#allocation21_spill] sm:$0xff] %v5480_v11 }
 0x149   : > { %v5484_v13 = vpop.f32.mrb[40].mxu0 }
 0x14a   : > { %v5486_v14 = vpop.f32.mrb[41].mxu0 }
 0x14b   : > { %10592 = vst [vmem:[#allocation22_spill] sm:$0xff] %v5486_v14  ;;  %v5516_v14 = vpop.permute.xlu0 %1262 }
 0x14d   : > { %v5492_v17 = vpop.f32.mrb[42].mxu0 }
 0x14e   : > { %v5494_v20 = vpop.f32.mrb[43].mxu0 }
 0x14f   : > { %10593 = vst [vmem:[#allocation23_spill] sm:$0xff] %v5494_v20 }
 0x151   : > { %v5498_v26 = vpop.f32.mrb[44].mxu0 }
 0x152   : > { %v5500_v29 = vpop.f32.mrb[45].mxu0 }
 0x153   : > { %10594 = vst [vmem:[#allocation24_spill] sm:$0xff] %v5500_v29  ;;  %v5522_v29 = vpop.permute.xlu1 %1267 }
 0x155   : > { %v5504_v35 = vpop.f32.mrb[46].mxu0 }
 0x156   : > { %v5506_v38 = vpop.f32.mrb[47].mxu0 }
 0x157   : > { %10595 = vst [vmem:[#allocation25_spill] sm:$0xff] %v5506_v38  ;;  %v5528_v38 = vpop.permute.xlu0 %1272  ;;  %v5530_v4 = vpop.permute.xlu1 %1277 }
 0x159   : > { %v5512_v47 = vpop.f32.mrb[48].mxu0 }
 0x15a   : > { %v5514_v0 = vpop.f32.mrb[49].mxu0 }
 0x15b   : > { %10596 = vst [vmem:[#allocation26_spill] sm:$0xff] %v5514_v0  ;;  %v5536_v0 = vpop.permute.xlu0 %1282 }
 0x15d   : > { %v5518_v20 = vpop.f32.mrb[50].mxu0 }
 0x15e   : > { %v5520_v8 = vpop.f32.mrb[51].mxu0 }
 0x15f   : > { %10597 = vst [vmem:[#allocation27_spill] sm:$0xff] %v5520_v8  ;;  %v5542_v8 = vpop.permute.xlu1 %1287 }
 0x161   : > { %v5524_v11 = vpop.f32.mrb[52].mxu0 }
 0x162   : > { %10598 = vst [vmem:[#allocation28_spill] sm:$0xff] %v5524_v11  ;;  %v5526_v63 = vpop.f32.mrb[53].mxu0 }
 0x163   : > { %10599 = vst [vmem:[#allocation29_spill] sm:$0xff] %v5526_v63  ;;  %v5548_v63 = vpop.permute.xlu0 %1292  ;;  %v5550_v46 = vpop.permute.xlu1 %1297 }
 0x165   : > { %v5532_v61 = vpop.f32.mrb[54].mxu0 }
 0x166   : > { %v5534_v57 = vpop.f32.mrb[55].mxu0 }
 0x167   : > { %10600 = vst [vmem:[#allocation30_spill] sm:$0xff] %v5534_v57  ;;  %v5556_v57 = vpop.permute.xlu0 %1302 }
 0x169   : > { %v5538_v55 = vpop.f32.mrb[56].mxu0 }
 0x16a   : > { %10601 = vst [vmem:[#allocation31_spill] sm:$0xff] %v5538_v55  ;;  %v5540_v53 = vpop.f32.mrb[57].mxu0 }
 0x16b   : > { %10602 = vst [vmem:[#allocation32_spill] sm:$0xff] %v5540_v53  ;;  %v5562_v53 = vpop.permute.xlu1 %1307 }
 0x16d   : > { %v5544_v51 = vpop.f32.mrb[58].mxu0 }
 0x16e   : > { %10603 = vst [vmem:[#allocation33_spill] sm:$0xff] %v5544_v51  ;;  %v5546_v49 = vpop.f32.mrb[59].mxu0 }
 0x16f   : > { %10604 = vst [vmem:[#allocation34_spill] sm:$0xff] %v5546_v49  ;;  %v5568_v49 = vpop.permute.xlu0 %1312  ;;  %v5570_v22 = vpop.permute.xlu1 %1317 }
 0x171   : > { %v5552_v43 = vpop.f32.mrb[60].mxu0 }
 0x172   : > { %10605 = vst [vmem:[#allocation35_spill] sm:$0xff] %v5552_v43  ;;  %v5554_v40 = vpop.f32.mrb[61].mxu0 }
 0x173   : > { %10606 = vst [vmem:[#allocation36_spill] sm:$0xff] %v5554_v40  ;;  %v5576_v40 = vpop.permute.xlu0 %1322 }
 0x174   : > { %10613 = vst [vmem:[#allocation43_spill] sm:$0xff] %v5576_v40 }
 0x175   : > { %v5558_v37 = vpop.f32.mrb[62].mxu0 }
 0x176   : > { %10607 = vst [vmem:[#allocation37_spill] sm:$0xff] %v5558_v37  ;;  %v5560_v34 = vpop.f32.mrb[63].mxu0 }
 0x177   : > { %10608 = vst [vmem:[#allocation38_spill] sm:$0xff] %v5560_v34  ;;  %v5582_v34 = vpop.permute.xlu1 %1327 }
 0x178   : > { %10616 = vst [vmem:[#allocation46_spill] sm:$0xff] %v5582_v34 }
 0x179   : > { %v5564_v31 = vpop.f32.mrb[64].mxu0 }
 0x17a   : > { %10609 = vst [vmem:[#allocation39_spill] sm:$0xff] %v5564_v31  ;;  %v5566_v28 = vpop.f32.mrb[65].mxu0 }
 0x17b   : > { %10610 = vst [vmem:[#allocation40_spill] sm:$0xff] %v5566_v28  ;;  %v5588_v28 = vpop.permute.xlu0 %1332  ;;  %v5590_v51 = vpop.permute.xlu1 %1337 }
 0x17c   : > { %10619 = vst [vmem:[#allocation49_spill] sm:$0xff] %v5588_v28  ;;  %10620 = vst [vmem:[#allocation50_spill] sm:$0xff] %v5590_v51 }
 0x17d   : > { %v5572_v55 = vpop.f32.mrb[66].mxu0 }
 0x17e   : > { %10611 = vst [vmem:[#allocation41_spill] sm:$0xff] %v5572_v55  ;;  %v5574_v43 = vpop.f32.mrb[67].mxu0 }
 0x17f   : > { %10612 = vst [vmem:[#allocation42_spill] sm:$0xff] %v5574_v43  ;;  %v5596_v43 = vpop.permute.xlu0 %1342 }
 0x180   : > { %10623 = vst [vmem:[#allocation53_spill] sm:$0xff] %v5596_v43 }
 0x181   : > { %v5578_v25 = vpop.f32.mrb[68].mxu0 }
 0x182   : > { %10614 = vst [vmem:[#allocation44_spill] sm:$0xff] %v5578_v25  ;;  %v5580_v37 = vpop.f32.mrb[69].mxu0 }
 0x183   : > { %10615 = vst [vmem:[#allocation45_spill] sm:$0xff] %v5580_v37  ;;  %v5602_v37 = vpop.permute.xlu1 %1347 }
 0x184   : > { %10626 = vst [vmem:[#allocation56_spill] sm:$0xff] %v5602_v37 }
 0x185   : > { %v5584_v19 = vpop.f32.mrb[70].mxu0 }
 0x186   : > { %10617 = vst [vmem:[#allocation47_spill] sm:$0xff] %v5584_v19  ;;  %v5586_v31 = vpop.f32.mrb[71].mxu0 }
 0x187   : > { %10618 = vst [vmem:[#allocation48_spill] sm:$0xff] %v5586_v31  ;;  %v5608_v31 = vpop.permute.xlu0 %1352  ;;  %v5610_v28 = vpop.permute.xlu1 %1357 }
 0x188   : > { %10629 = vst [vmem:[#allocation59_spill] sm:$0xff] %v5608_v31  ;;  %10630 = vst [vmem:[#allocation60_spill] sm:$0xff] %v5610_v28 }
 0x189   : > { %v5592_v11 = vpop.f32.mrb[72].mxu0 }
 0x18a   : > { %10621 = vst [vmem:[#allocation51_spill] sm:$0xff] %v5592_v11  ;;  %v5594_v55 = vpop.f32.mrb[73].mxu0 }
 0x18b   : > { %10622 = vst [vmem:[#allocation52_spill] sm:$0xff] %v5594_v55  ;;  %v5616_v55 = vpop.permute.xlu0 %1362 }
 0x18c   : > { %10633 = vst [vmem:[#allocation63_spill] sm:$0xff] %v5616_v55 }
 0x18d   : > { %v5598_v40 = vpop.f32.mrb[74].mxu0 }
 0x18e   : > { %10624 = vst [vmem:[#allocation54_spill] sm:$0xff] %v5598_v40  ;;  %v5600_v25 = vpop.f32.mrb[75].mxu0 }
 0x18f   : > { %10625 = vst [vmem:[#allocation55_spill] sm:$0xff] %v5600_v25  ;;  %v5622_v25 = vpop.permute.xlu1 %1367 }
 0x190   : > { %10636 = vst [vmem:[#allocation66_spill] sm:$0xff] %v5622_v25 }
 0x191   : > { %v5604_v34 = vpop.f32.mrb[76].mxu0 }
 0x192   : > { %10627 = vst [vmem:[#allocation57_spill] sm:$0xff] %v5604_v34  ;;  %v5606_v19 = vpop.f32.mrb[77].mxu0 }
 0x193   : > { %10628 = vst [vmem:[#allocation58_spill] sm:$0xff] %v5606_v19  ;;  %v5628_v19 = vpop.permute.xlu0 %1372  ;;  %v5630_v31 = vpop.permute.xlu1 %1377 }
 0x194   : > { %10639 = vst [vmem:[#allocation69_spill] sm:$0xff] %v5628_v19 }
 0x195   : > { %v5612_v51 = vpop.f32.mrb[78].mxu0 }
 0x196   : > { %10631 = vst [vmem:[#allocation61_spill] sm:$0xff] %v5612_v51  ;;  %v5614_v11 = vpop.f32.mrb[79].mxu0 }
 0x197   : > { %10632 = vst [vmem:[#allocation62_spill] sm:$0xff] %v5614_v11  ;;  %v5636_v11 = vpop.permute.xlu0 %1382 }
 0x198   : > { %10642 = vst [vmem:[#allocation72_spill] sm:$0xff] %v5636_v11 }
 0x199   : > { %v5618_v43 = vpop.f32.mrb[80].mxu0 }
 0x19a   : > { %10634 = vst [vmem:[#allocation64_spill] sm:$0xff] %v5618_v43  ;;  %v5620_v40 = vpop.f32.mrb[81].mxu0 }
 0x19b   : > { %10635 = vst [vmem:[#allocation65_spill] sm:$0xff] %v5620_v40  ;;  %v5642_v40 = vsub.f32 %v5462_v2, %v5364_v27  ;;  %v5664_v27 = vsub.f32 %v5448_v58, %v5337_v18 }
 0x19d   : > { %v5624_v37 = vpop.f32.mrb[82].mxu0  ;;  %10644 = vst [vmem:[#allocation74_spill] sm:$0xff] %v5642_v40  ;;  %10651 = vst [vmem:[#allocation81_spill] sm:$0xff] %v5664_v27 }
 0x19e   : > { %10637 = vst [vmem:[#allocation67_spill] sm:$0xff] %v5624_v37  ;;  %v5626_v34 = vpop.f32.mrb[83].mxu0  ;;  %v5646_v37 = vpop.permute.xlu1 %1387 }
 0x19f   : > { %10638 = vst [vmem:[#allocation68_spill] sm:$0xff] %v5626_v34  ;;  %10646 = vst [vmem:[#allocation76_spill] sm:$0xff] %v5646_v37  ;;  %v5650_v34 = vsub.f32 %v5460_v1, %v5346_v21  ;;  %v5670_v21 = vsub.f32 %v5468_v5, %v5373_v30  ;;  %v5689_v30 = vsub.f32 %v5490_v16, %v5418_v45 }
 0x1a1   : > { %v5632_v28 = vpop.f32.mrb[84].mxu0  ;;  %10647 = vst [vmem:[#allocation77_spill] sm:$0xff] %v5650_v34  ;;  %10652 = vst [vmem:[#allocation82_spill] sm:$0xff] %v5670_v21 }
 0x1a2   : > { %10640 = vst [vmem:[#allocation70_spill] sm:$0xff] %v5632_v28  ;;  %v5634_v51 = vpop.f32.mrb[85].mxu0  ;;  %v5654_v28 = vsub.f32 %v5450_v59, %v5355_v24  ;;  %v5674_v24 = vsub.f32 %v5482_v12, %v5400_v39  ;;  %10657 = vst [vmem:[#allocation87_spill] sm:$0xff] %v5689_v30 }
 0x1a3   : > { %10641 = vst [vmem:[#allocation71_spill] sm:$0xff] %v5634_v51  ;;  %v5658_v51 = vsub.f32 %v5470_v6, %v5382_v33  ;;  %v5678_v33 = vpop.permute.xlu0 %1392 }
 0x1a4   : > { %10648 = vst [vmem:[#allocation78_spill] sm:$0xff] %v5654_v28  ;;  %10653 = vst [vmem:[#allocation83_spill] sm:$0xff] %v5674_v24 }
 0x1a5   : > { %v5638_v55 = vpop.f32.mrb[86].mxu0  ;;  %10649 = vst [vmem:[#allocation79_spill] sm:$0xff] %v5658_v51  ;;  %10655 = vst [vmem:[#allocation85_spill] sm:$0xff] %v5678_v33 }
 0x1a6   : > { %10643 = vst [vmem:[#allocation73_spill] sm:$0xff] %v5638_v55  ;;  %v5644_v43 = vpop.f32.mrb[87].mxu0 }
 0x1a7   : > { %10645 = vst [vmem:[#allocation75_spill] sm:$0xff] %v5644_v43  ;;  %v1639_v43 = vmin.f32 %v5650_v34, %v5642_v40  ;;  %v5685_v40 = vsub.f32 %v5476_v9, %v5391_v36  ;;  %v5691_v34 = vpop.permute.xlu1 %1397  ;;  %v5703_v36 = vsub.f32 %v5502_v32, %v5432_v50 }
 0x1a9   : > { %v5660_v55 = vpop.f32.mrb[88].mxu0  ;;  %v1641_v18 = vmin.f32 %v1639_v43, %v5658_v51  ;;  %10656 = vst [vmem:[#allocation86_spill] sm:$0xff] %v5685_v40  ;;  %10659 = vst [vmem:[#allocation89_spill] sm:$0xff] %v5703_v36 }
 0x1aa   : > { %10650 = vst [vmem:[#allocation80_spill] sm:$0xff] %v5660_v55  ;;  %v5676_v11 = vpop.f32.mrb[89].mxu0  ;;  %v1638_v55 = vmin.f32 %v5664_v27, %v5654_v28  ;;  %v5699_v28 = vsub.f32 %v5488_v15, %v5409_v42  ;;  %v5711_v27 = vsub.f32 %v5496_v23, %v5427_v48  ;;  %v5717_v42 = vpop.permute.xlu0 %1402  ;;  %v5729_v48 = vsub.f32 %v5522_v29, %v5452_v60 }
 0x1ab   : > { %10654 = vst [vmem:[#allocation84_spill] sm:$0xff] %v5676_v11  ;;  %v1643_v33 = vmin.f32 %v1641_v18, %v5674_v24 }
 0x1ac   : > { %v1640_v11 = vmin.f32 %v1638_v55, %v5670_v21  ;;  %10658 = vst [vmem:[#allocation88_spill] sm:$0xff] %v5699_v28  ;;  %10661 = vst [vmem:[#allocation91_spill] sm:$0xff] %v5711_v27  ;;  %v5715_v55 = vsub.f32 %v5510_v44, %v5440_v54  ;;  %v5733_v54 = vpop.permute.xlu1 %1407  ;;  %v10688_v21 = vld [vmem:[#allocation2_spill] sm:$0xff] }
 0x1ad   : > { %v5693_v39 = vpop.f32.mrb[90].mxu0  ;;  %v1645_v51 = vmin.f32 %v1643_v33, %v5689_v30  ;;  %10664 = vst [vmem:[#allocation94_spill] sm:$0xff] %v5729_v48 }
 0x1ae   : > { %v5705_v43 = vpop.f32.mrb[91].mxu0  ;;  %v1642_v45 = vmin.f32 %v1640_v11, %v5685_v40  ;;  %10662 = vst [vmem:[#allocation92_spill] sm:$0xff] %v5715_v55  ;;  %v5725_v11 = vsub.f32 %v5508_v41, %v5436_v52 }
 0x1af   : > { %10660 = vst [vmem:[#allocation90_spill] sm:$0xff] %v5705_v43  ;;  %v1647_v24 = vmin.f32 %v1645_v51, %v5703_v36  ;;  %v5743_v51 = vsub.f32 %v5530_v4, %v5464_v3 }
 0x1b0   : > { %v1644_v50 = vmin.f32 %v1642_v45, %v5699_v28  ;;  %10663 = vst [vmem:[#allocation93_spill] sm:$0xff] %v5725_v11  ;;  %v5739_v45 = vsub.f32 %v5516_v14, %v5444_v56  ;;  %v5751_v28 = vsub.f32 %v5528_v38, %v5456_v62  ;;  %v5771_v62 = vpop.permute.xlu1 %1417 }
 0x1b1   : > { %v5719_v18 = vpop.f32.mrb[92].mxu0  ;;  %v1649_v40 = vmin.f32 %v1647_v24, %v5715_v55  ;;  %10667 = vst [vmem:[#allocation97_spill] sm:$0xff] %v5743_v51  ;;  %v5755_v24 = vsub.f32 %v5542_v8, %v5478_v10 }
 0x1b2   : > { %v5731_v33 = vpop.f32.mrb[93].mxu0  ;;  %v1646_v30 = vmin.f32 %v1644_v50, %v5711_v27  ;;  %10666 = vst [vmem:[#allocation96_spill] sm:$0xff] %v5739_v45  ;;  %10668 = vst [vmem:[#allocation98_spill] sm:$0xff] %v5751_v28  ;;  %v5759_v50 = vpop.permute.xlu0 %1412  ;;  %v10682_v27 = vld [vmem:[#allocation28_spill] sm:$0xff] }
 0x1b3   : > { %10665 = vst [vmem:[#allocation95_spill] sm:$0xff] %v5731_v33  ;;  %v1651_v36 = vmin.f32 %v1649_v40, %v5729_v48  ;;  %10669 = vst [vmem:[#allocation99_spill] sm:$0xff] %v5755_v24  ;;  %v5769_v40 = vsub.f32 %v5550_v46, %v5492_v17 }
 0x1b4   : > { %v1648_v60 = vmin.f32 %v1646_v30, %v5725_v11  ;;  %v5765_v30 = vsub.f32 %v5536_v0, %v5472_v7  ;;  %v5783_v7 = vsub.f32 %v5562_v53, %v5504_v35 }
 0x1b5   : > { %v5745_v52 = vpop.f32.mrb[94].mxu0  ;;  %v1653_v55 = vmin.f32 %v1651_v36, %v5743_v51  ;;  %10672 = vst [vmem:[#allocation102_spill] sm:$0xff] %v5769_v40 }
 0x1b6   : > { %v5757_v56 = vpop.f32.mrb[95].mxu0  ;;  %v1650_v3 = vmin.f32 %v1648_v60, %v5739_v45  ;;  %10671 = vst [vmem:[#allocation101_spill] sm:$0xff] %v5765_v30  ;;  %v5779_v60 = vsub.f32 %v5548_v63, %v5484_v13  ;;  %10674 = vst [vmem:[#allocation104_spill] sm:$0xff] %v5783_v7  ;;  %v5791_v45 = vsub.f32 %v5556_v57, %v5498_v26  ;;  %v5797_v13 = vpop.permute.xlu0 %1422 }
 0x1b7   : > { %10670 = vst [vmem:[#allocation100_spill] sm:$0xff] %v5757_v56  ;;  %v1655_v11 = vmin.f32 %v1653_v55, %v5755_v24  ;;  %v5795_v55 = vsub.f32 %v5570_v22, %v5518_v20  ;;  %v5813_v20 = vpop.permute.xlu1 %1427  ;;  %v10696_v56 = vld [vmem:[#allocation56_spill] sm:$0xff] }
 0x1b8   : > { %v1652_v48 = vmin.f32 %v1650_v3, %v5751_v28  ;;  %10673 = vst [vmem:[#allocation103_spill] sm:$0xff] %v5779_v60  ;;  %10676 = vst [vmem:[#allocation106_spill] sm:$0xff] %v5791_v45 }
 0x1b9   : > { %v5773_v10 = vpop.f32.mrb[96].mxu0  ;;  %v1657_v51 = vmin.f32 %v1655_v11, %v5769_v40  ;;  %10677 = vst [vmem:[#allocation107_spill] sm:$0xff] %v5795_v55  ;;  %v10679_v11 = vld [vmem:[#allocation46_spill] sm:$0xff] }
 0x1ba   : > { %v5785_v36 = vpop.f32.mrb[97].mxu0  ;;  %v1654_v17 = vmin.f32 %v1652_v48, %v5765_v30  ;;  %v5805_v48 = vsub.f32 %v5568_v49, %v5512_v47  ;;  %v5809_v26 = vsub.f32 %v10679_v11, %v5532_v61  ;;  %v5827_v61 = vsub.f32 %v5448_v58, %v10688_v21  ;;  %v10699_v21 = vld [vmem:[#allocation3_spill] sm:$0xff] }
 0x1bb   : > { %10675 = vst [vmem:[#allocation105_spill] sm:$0xff] %v5785_v36  ;;  %v1659_v24 = vmin.f32 %v1657_v51, %v5783_v7  ;;  %v10685_v51 = vld [vmem:[#allocation33_spill] sm:$0xff]  ;;  %v10686_v7 = vld [vmem:[#allocation50_spill] sm:$0xff]  ;;  %v10690_v36 = vld [vmem:[#allocation4_spill] sm:$0xff] }
 0x1bc   : > { %v1656_v35 = vmin.f32 %v1654_v17, %v5779_v60  ;;  %10678 = vst [vmem:[#allocation108_spill] sm:$0xff] %v5805_v48  ;;  %10680 = vst [vmem:[#allocation46_spill] sm:$0xff] %v5809_v26  ;;  %v10683_v17 = vld [vmem:[#allocation43_spill] sm:$0xff]  ;;  %v5823_v47 = vsub.f32 %v10686_v7, %v10685_v51  ;;  %v10695_v51 = vld [vmem:[#allocation37_spill] sm:$0xff] }
 0x1bd   : > { %v5799_v3 = vpop.f32.mrb[98].mxu0  ;;  %v1661_v28 = vmin.f32 %v1659_v24, %v5795_v55  ;;  %v5819_v60 = vsub.f32 %v10683_v17, %v10682_v27  ;;  %10689 = vst [vmem:[#allocation2_spill] sm:$0xff] %v5827_v61  ;;  %v10692_v27 = vld [vmem:[#allocation31_spill] sm:$0xff]  ;;  %v10693_v55 = vld [vmem:[#allocation49_spill] sm:$0xff]  ;;  %v5843_v43 = vsub.f32 %v10696_v56, %v10695_v51  ;;  %v10719_v17 = vld [vmem:[#allocation8_spill] sm:$0xff] }
 0x1be   : > { %v5811_v40 = vpop.f32.mrb[99].mxu0  ;;  %v1658_v30 = vmin.f32 %v1656_v35, %v5791_v45  ;;  %10687 = vst [vmem:[#allocation33_spill] sm:$0xff] %v5823_v47  ;;  %v5839_v45 = vsub.f32 %v10693_v55, %v10692_v27  ;;  %v10706_v56 = vld [vmem:[#allocation41_spill] sm:$0xff] }
 0x1bf   : > { %10681 = vst [vmem:[#allocation109_spill] sm:$0xff] %v5811_v40  ;;  %10684 = vst [vmem:[#allocation28_spill] sm:$0xff] %v5819_v60  ;;  %v5831_v40 = vsub.f32 %v5450_v59, %v10690_v36  ;;  %v1663_v35 = vmin.f32 %v1661_v28, %v5809_v26  ;;  %v5849_v59 = vsub.f32 %v5460_v1, %v10699_v21  ;;  %v10701_v36 = vld [vmem:[#allocation5_spill] sm:$0xff]  ;;  %v10703_v26 = vld [vmem:[#allocation35_spill] sm:$0xff]  ;;  %v1707_v1 = vsel %vm10325_vm0, %v5827_v61, inf }
 0x1c0   : > { %v1660_v24 = vmin.f32 %v1658_v30, %v5805_v48  ;;  %10694 = vst [vmem:[#allocation31_spill] sm:$0xff] %v5839_v45  ;;  %10697 = vst [vmem:[#allocation37_spill] sm:$0xff] %v5843_v43  ;;  %v5853_v7 = vsub.f32 %v5462_v2, %v10701_v36  ;;  %v5855_v30 = vpop.permute.xlu0 %1432  ;;  %v10704_v48 = vld [vmem:[#allocation53_spill] sm:$0xff]  ;;  %v10709_v21 = vld [vmem:[#allocation6_spill] sm:$0xff] }
 0x1c1   : > { %10691 = vst [vmem:[#allocation4_spill] sm:$0xff] %v5831_v40  ;;  %v5833_v33 = vpop.f32.mrb[100].mxu0  ;;  %10700 = vst [vmem:[#allocation3_spill] sm:$0xff] %v5849_v59  ;;  %v1665_v27 = vmin.f32 %v1663_v35, %v5823_v47  ;;  %v5861_v51 = vsub.f32 %v10704_v48, %v10703_v26  ;;  %v1709_v2 = vsel %vm10325_vm0, %v5831_v40, inf  ;;  %v5873_v36 = vsub.f32 %v5468_v5, %v10709_v21  ;;  %v5879_v26 = vpop.permute.xlu1 %1437  ;;  %v10713_v61 = vld [vmem:[#allocation39_spill] sm:$0xff] }
 0x1c2   : > { %v5845_v58 = vpop.f32.mrb[101].mxu0  ;;  %10702 = vst [vmem:[#allocation5_spill] sm:$0xff] %v5853_v7  ;;  %v1662_v28 = vmin.f32 %v1660_v24, %v5819_v60  ;;  %v10711_v24 = vld [vmem:[#allocation7_spill] sm:$0xff] }
 0x1c3   : > { %10698 = vst [vmem:[#allocation110_spill] sm:$0xff] %v5845_v58  ;;  %10705 = vst [vmem:[#allocation35_spill] sm:$0xff] %v5861_v51  ;;  %v10707_v58 = vld [vmem:[#allocation60_spill] sm:$0xff]  ;;  %v5877_v35 = vsub.f32 %v5470_v6, %v10711_v24  ;;  %v1667_v60 = vmin.f32 %v1665_v27, %v5843_v43  ;;  %v10716_v40 = vld [vmem:[#allocation47_spill] sm:$0xff]  ;;  %v1708_v6 = vsel %vm10325_vm0, %v5849_v59, inf  ;;  %v1711_v24 = vsel %vm10325_vm0, %v5853_v7, inf }
 0x1c4   : > { %v5865_v55 = vsub.f32 %v10707_v58, %v10706_v56  ;;  %10710 = vst [vmem:[#allocation6_spill] sm:$0xff] %v5873_v36  ;;  %v1664_v56 = vmin.f32 %v1662_v28, %v5839_v45  ;;  %v10714_v58 = vld [vmem:[#allocation59_spill] sm:$0xff]  ;;  %v5891_v5 = vsub.f32 %v5622_v25, %v10716_v40  ;;  %v5901_v28 = vsub.f32 %v5476_v9, %v10719_v17  ;;  %v10721_v27 = vld [vmem:[#allocation9_spill] sm:$0xff]  ;;  %v10723_v45 = vld [vmem:[#allocation44_spill] sm:$0xff] }
 0x1c5   : > { %10712 = vst [vmem:[#allocation7_spill] sm:$0xff] %v5877_v35  ;;  %v5881_v47 = vpop.f32.mrb[102].mxu0  ;;  %v5887_v48 = vsub.f32 %v10714_v58, %v10713_v61  ;;  %v5905_v61 = vsub.f32 %v5482_v12, %v10721_v27  ;;  %v10726_v59 = vld [vmem:[#allocation54_spill] sm:$0xff]  ;;  %v1710_v7 = vmin.f32 %v1707_v1, %v1709_v2  ;;  %v1713_v9 = vsel %vm10325_vm0, %v5873_v36, inf  ;;  %v10731_v2 = vld [vmem:[#allocation61_spill] sm:$0xff] }
 0x1c6   : > { %10708 = vst [vmem:[#allocation41_spill] sm:$0xff] %v5865_v55  ;;  %10717 = vst [vmem:[#allocation47_spill] sm:$0xff] %v5891_v5  ;;  %v5893_v21 = vpop.f32.mrb[103].mxu0  ;;  %v1666_v43 = vmin.f32 %v1664_v56, %v5861_v51  ;;  %v1669_v40 = vmin.f32 %v1667_v60, %v5865_v55  ;;  %v5915_v58 = vsub.f32 %v5630_v31, %v10726_v59  ;;  %v1715_v12 = vsel %vm10325_vm0, %v5877_v35, inf  ;;  %v10728_v17 = vld [vmem:[#allocation10_spill] sm:$0xff]  ;;  %v5925_v60 = vpop.permute.xlu0 %1442  ;;  %v10730_v55 = vld [vmem:[#allocation51_spill] sm:$0xff] }
 0x1c7   : > { %10715 = vst [vmem:[#allocation39_spill] sm:$0xff] %v5887_v48  ;;  %10718 = vst [vmem:[#allocation111_spill] sm:$0xff] %v5893_v21  ;;  %v10724_v21 = vld [vmem:[#allocation63_spill] sm:$0xff]  ;;  %v5923_v56 = vsub.f32 %v5488_v15, %v10728_v17  ;;  %v5933_v1 = vsub.f32 %v5628_v19, %v10730_v55  ;;  %v5937_v36 = vsub.f32 %v5646_v37, %v10731_v2  ;;  %v1717_v17 = vsel %vm10325_vm0, %v5901_v28, inf  ;;  %v10737_v37 = vld [vmem:[#allocation72_spill] sm:$0xff] }
 0x1c8   : > { %10720 = vst [vmem:[#allocation8_spill] sm:$0xff] %v5901_v28  ;;  %10722 = vst [vmem:[#allocation9_spill] sm:$0xff] %v5905_v61  ;;  %v5911_v25 = vsub.f32 %v10724_v21, %v10723_v45  ;;  %v1668_v45 = vmin.f32 %v1666_v43, %v5887_v48  ;;  %v1671_v59 = vmin.f32 %v1669_v40, %v5891_v5  ;;  %v1719_v51 = vsel %vm10325_vm0, %v5905_v61, inf  ;;  %v10734_v43 = vld [vmem:[#allocation11_spill] sm:$0xff]  ;;  %v5949_v5 = vpop.permute.xlu1 %1447  ;;  %v10736_v48 = vld [vmem:[#allocation57_spill] sm:$0xff] }
 0x1c9   : > { %10727 = vst [vmem:[#allocation63_spill] sm:$0xff] %v5915_v58  ;;  %10729 = vst [vmem:[#allocation54_spill] sm:$0xff] %v5923_v56  ;;  %v5927_v27 = vpop.f32.mrb[104].mxu0  ;;  %v1712_v15 = vmin.f32 %v1708_v6, %v1711_v24  ;;  %v5947_v40 = vsub.f32 %v5490_v16, %v10734_v43  ;;  %v10738_v6 = vld [vmem:[#allocation67_spill] sm:$0xff]  ;;  %v1714_v28 = vmin.f32 %v1710_v7, %v1713_v9  ;;  %v1721_v16 = vsel %vm10325_vm0, %v5923_v56, inf  ;;  %v10740_v43 = vld [vmem:[#allocation12_spill] sm:$0xff] }
 0x1ca   : > { %10725 = vst [vmem:[#allocation44_spill] sm:$0xff] %v5911_v25  ;;  %10732 = vst [vmem:[#allocation10_spill] sm:$0xff] %v5937_v36  ;;  %v5939_v35 = vpop.f32.mrb[105].mxu0  ;;  %v1670_v55 = vmin.f32 %v1668_v45, %v5911_v25  ;;  %v1673_v2 = vmin.f32 %v1671_v59, %v5915_v58  ;;  %v5959_v24 = vsub.f32 %v5691_v34, %v10738_v6  ;;  %v10743_v25 = vld [vmem:[#allocation85_spill] sm:$0xff] }
 0x1cb   : > { %10733 = vst [vmem:[#allocation51_spill] sm:$0xff] %v5939_v35  ;;  %10735 = vst [vmem:[#allocation61_spill] sm:$0xff] %v5947_v40  ;;  %v5955_v35 = vsub.f32 %v10737_v37, %v10736_v48  ;;  %v1716_v61 = vmin.f32 %v1712_v15, %v1715_v12  ;;  %v5965_v19 = vsub.f32 %v5496_v23, %v10740_v43  ;;  %v10742_v48 = vld [vmem:[#allocation64_spill] sm:$0xff]  ;;  %v10744_v6 = vld [vmem:[#allocation73_spill] sm:$0xff]  ;;  %v1723_v23 = vsel %vm10325_vm0, %v5947_v40, inf }
 0x1cc   : > { %10739 = vst [vmem:[#allocation11_spill] sm:$0xff] %v5959_v24  ;;  %v1672_v59 = vmin.f32 %v1670_v55, %v5933_v1  ;;  %v1675_v58 = vmin.f32 %v1673_v2, %v5937_v36  ;;  %v5971_v37 = vsub.f32 %v10743_v25, %v10742_v48  ;;  %v5975_v7 = vsub.f32 %v5733_v54, %v10744_v6  ;;  %v10746_v43 = vld [vmem:[#allocation13_spill] sm:$0xff]  ;;  %v5985_v2 = vpop.permute.xlu0 %1452  ;;  %v10748_v36 = vld [vmem:[#allocation70_spill] sm:$0xff] }
 0x1cd   : > { %10741 = vst [vmem:[#allocation57_spill] sm:$0xff] %v5965_v19  ;;  %v1061_v45 = vpop.f32.mrb[106].mxu0  ;;  %v1718_v12 = vmin.f32 %v1714_v28, %v1717_v17  ;;  %v1720_v15 = vmin.f32 %v1716_v61, %v1719_v51  ;;  %v5983_v55 = vsub.f32 %v5502_v32, %v10746_v43  ;;  %v5991_v6 = vsub.f32 %v5717_v42, %v10748_v36  ;;  %v10750_v32 = vld [vmem:[#allocation14_spill] sm:$0xff]  ;;  %v10752_v43 = vld [vmem:[#allocation15_spill] sm:$0xff] }
 0x1ce   : > { %10745 = vst [vmem:[#allocation67_spill] sm:$0xff] %v5975_v7  ;;  %v5977_v9 = vpop.f32.mrb[107].mxu0  ;;  %v1674_v48 = vmin.f32 %v1672_v59, %v5955_v35  ;;  %v1677_v56 = vmin.f32 %v1675_v58, %v5959_v24  ;;  %v5995_v51 = vsub.f32 %v5771_v62, %v5693_v39  ;;  %v1725_v61 = vsel %vm10325_vm0, %v5965_v19, inf  ;;  %v6007_v58 = vpop.permute.xlu1 %1457  ;;  %v10754_v24 = vld [vmem:[#allocation80_spill] sm:$0xff] }
 0x1cf   : > { %10747 = vst [vmem:[#allocation12_spill] sm:$0xff] %v5983_v55  ;;  %v1722_v28 = vmin.f32 %v1718_v12, %v1721_v16  ;;  %v6001_v17 = vsub.f32 %v5508_v41, %v10750_v32  ;;  %v6005_v59 = vsub.f32 %v5510_v44, %v10752_v43  ;;  %v6013_v16 = vsub.f32 %v5759_v50, %v10754_v24  ;;  %v10757_v43 = vld [vmem:[#allocation16_spill] sm:$0xff] }
 0x1d0   : > { %10749 = vst [vmem:[#allocation64_spill] sm:$0xff] %v5995_v51  ;;  %v1676_v40 = vmin.f32 %v1674_v48, %v5971_v37  ;;  %v1679_v39 = vmin.f32 %v1677_v56, %v5975_v7  ;;  %v6017_v12 = vsub.f32 %v5813_v20, %v5745_v52  ;;  %v1724_v32 = vmin.f32 %v1720_v15, %v1723_v23  ;;  %v10759_v48 = vld [vmem:[#allocation17_spill] sm:$0xff] }
 0x1d1   : > { %10751 = vst [vmem:[#allocation85_spill] sm:$0xff] %v6001_v17  ;;  %10753 = vst [vmem:[#allocation73_spill] sm:$0xff] %v6005_v59  ;;  %v1067_v36 = vpop.f32.mrb[108].mxu0  ;;  %v1727_v44 = vsel %vm10325_vm0, %v5983_v55, inf  ;;  %v6025_v19 = vsub.f32 %v5516_v14, %v10757_v43  ;;  %v6029_v56 = vsub.f32 %v5522_v29, %v10759_v48  ;;  %v6035_v52 = vsub.f32 %v5797_v13, %v5719_v18  ;;  %v10763_v43 = vld [vmem:[#allocation19_spill] sm:$0xff] }
 0x1d2   : > { %10755 = vst [vmem:[#allocation13_spill] sm:$0xff] %v6013_v16  ;;  %10756 = vst [vmem:[#allocation70_spill] sm:$0xff] %v6017_v12  ;;  %v6019_v41 = vpop.f32.mrb[109].mxu0  ;;  %v1678_v24 = vmin.f32 %v1676_v40, %v5991_v6  ;;  %v1681_v7 = vmin.f32 %v1679_v39, %v5995_v51  ;;  %v6039_v15 = vsub.f32 %v5879_v26, %v5799_v3  ;;  %v1729_v14 = vsel %vm10325_vm0, %v6001_v17, inf  ;;  %v6049_v39 = vpop.permute.xlu0 %1462 }
 0x1d3   : > { %10758 = vst [vmem:[#allocation14_spill] sm:$0xff] %v6025_v19  ;;  %10760 = vst [vmem:[#allocation15_spill] sm:$0xff] %v6029_v56  ;;  %v1726_v23 = vmin.f32 %v1722_v28, %v1725_v61  ;;  %v1731_v29 = vsel %vm10325_vm0, %v6005_v59, inf  ;;  %v6047_v40 = vsub.f32 %v5530_v4, %v10763_v43  ;;  %v6055_v3 = vsub.f32 %v5855_v30, %v5773_v10  ;;  %v6071_v17 = vpop.permute.xlu1 %1467 }
 0x1d4   : > { %10761 = vst [vmem:[#allocation80_spill] sm:$0xff] %v6035_v52  ;;  %10762 = vst [vmem:[#allocation16_spill] sm:$0xff] %v6039_v15  ;;  %v1680_v18 = vmin.f32 %v1678_v24, %v6013_v16  ;;  %v1683_v55 = vmin.f32 %v1681_v7, %v6017_v12  ;;  %v6059_v28 = vsub.f32 %v5949_v5, %v5881_v47  ;;  %v1733_v4 = vsel %vm10325_vm0, %v6025_v19, inf  ;;  %v10767_v24 = vld [vmem:[#allocation18_spill] sm:$0xff]  ;;  %v10829_v16 = vld [vmem:[#allocation76_spill] sm:$0xff] }
 0x1d5   : > { %10764 = vst [vmem:[#allocation17_spill] sm:$0xff] %v6047_v40  ;;  %v1073_v48 = vpop.f32.mrb[110].mxu0  ;;  %10765 = vst [vmem:[#allocation19_spill] sm:$0xff] %v6055_v3  ;;  %v1728_v59 = vmin.f32 %v1724_v32, %v1727_v44  ;;  %v1735_v43 = vsel %vm10325_vm0, %v6029_v56, inf  ;;  %v6069_v7 = vsub.f32 %v5528_v38, %v10767_v24  ;;  %v6077_v12 = vsub.f32 %v5925_v60, %v5833_v33  ;;  %v10771_v38 = vld [vmem:[#allocation21_spill] sm:$0xff] }
 0x1d6   : > { %10766 = vst [vmem:[#allocation112_spill] sm:$0xff] %v6059_v28  ;;  %v6061_v61 = vpop.f32.mrb[111].mxu0  ;;  %v1682_v10 = vmin.f32 %v1680_v18, %v6035_v52  ;;  %v1685_v47 = vmin.f32 %v1683_v55, %v6039_v15  ;;  %v6080_v32 = vsub.f32 %v6007_v58, %v1061_v45  ;;  %v1730_v44 = vmin.f32 %v1726_v23, %v1729_v14  ;;  %v10826_v52 = vld [vmem:[#allocation69_spill] sm:$0xff] }
 0x1d7   : > { %10768 = vst [vmem:[#allocation18_spill] sm:$0xff] %v6069_v7  ;;  %10769 = vst [vmem:[#allocation113_spill] sm:$0xff] %v6077_v12  ;;  %v1732_v19 = vmin.f32 %v1728_v59, %v1731_v29  ;;  %v1739_v56 = vsel %vm10325_vm0, %v6047_v40, inf  ;;  %v6086_v24 = vsub.f32 %v5542_v8, %v10771_v38  ;;  %v6092_v33 = vsub.f32 %v5985_v2, %v5927_v27  ;;  %v10775_v29 = vld [vmem:[#allocation20_spill] sm:$0xff]  ;;  %v10777_v38 = vld [vmem:[#allocation23_spill] sm:$0xff] }
 0x1d8   : > { %10770 = vst [vmem:[#allocation114_spill] sm:$0xff] %v6080_v32  ;;  %v1684_v18 = vmin.f32 %v1682_v10, %v6055_v3  ;;  %v1687_v55 = vmin.f32 %v1685_v47, %v6059_v28  ;;  %v6095_v45 = vsub.f32 %v6071_v17, %v1073_v48  ;;  %v1734_v23 = vmin.f32 %v1730_v44, %v1733_v4  ;;  %v6107_v47 = vpop.permute.xlu0 %1472  ;;  %v10782_v44 = vld [vmem:[#allocation25_spill] sm:$0xff]  ;;  %v10817_v3 = vld [vmem:[#allocation48_spill] sm:$0xff] }
 0x1d9   : > { %10772 = vst [vmem:[#allocation21_spill] sm:$0xff] %v6086_v24  ;;  %v1079_v51 = vpop.f32.mrb[112].mxu0  ;;  %10773 = vst [vmem:[#allocation115_spill] sm:$0xff] %v6092_v33  ;;  %v1736_v14 = vmin.f32 %v1732_v19, %v1735_v43  ;;  %v6101_v8 = vsub.f32 %v5536_v0, %v10775_v29  ;;  %v6105_v10 = vsub.f32 %v5550_v46, %v10777_v38  ;;  %v1737_v27 = vsel %vm10325_vm0, %v6069_v7, inf  ;;  %v10780_v43 = vld [vmem:[#allocation22_spill] sm:$0xff]  ;;  %v6126_v38 = vpop.permute.xlu1 %1477 }
 0x1da   : > { %10774 = vst [vmem:[#allocation116_spill] sm:$0xff] %v6095_v45  ;;  %v6097_v59 = vpop.f32.mrb[113].mxu0  ;;  %v1686_v48 = vmin.f32 %v1684_v18, %v6077_v12  ;;  %v1689_v40 = vmin.f32 %v1687_v55, %v6080_v32  ;;  %v6114_v4 = vsub.f32 %v6049_v39, %v1067_v36  ;;  %v1743_v0 = vsel %vm10325_vm0, %v6086_v24, inf  ;;  %v10805_v12 = vld [vmem:[#allocation56_spill] sm:$0xff] }
 0x1db   : > { %10776 = vst [vmem:[#allocation20_spill] sm:$0xff] %v6101_v8  ;;  %10778 = vst [vmem:[#allocation23_spill] sm:$0xff] %v6105_v10  ;;  %v1740_v19 = vmin.f32 %v1736_v14, %v1739_v56  ;;  %v6120_v46 = vsub.f32 %v5548_v63, %v10780_v43  ;;  %v6124_v29 = vsub.f32 %v5562_v53, %v10782_v44  ;;  %v1741_v63 = vsel %vm10325_vm0, %v6101_v8, inf  ;;  %v10786_v43 = vld [vmem:[#allocation24_spill] sm:$0xff] }
 0x1dc   : > { %10779 = vst [vmem:[#allocation117_spill] sm:$0xff] %v6114_v4  ;;  %v1688_v55 = vmin.f32 %v1686_v48, %v6092_v33  ;;  %v1691_v36 = vmin.f32 %v1689_v40, %v6095_v45  ;;  %v6131_v56 = vsub.f32 %v6107_v47, %v1079_v51  ;;  %v1747_v53 = vsel %vm10325_vm0, %v6105_v10, inf  ;;  %v10788_v48 = vld [vmem:[#allocation27_spill] sm:$0xff]  ;;  %v10790_v33 = vld [vmem:[#allocation26_spill] sm:$0xff] }
 0x1dd   : > { %10781 = vst [vmem:[#allocation22_spill] sm:$0xff] %v6120_v46  ;;  %10783 = vst [vmem:[#allocation25_spill] sm:$0xff] %v6124_v29  ;;  %v1085_v18 = vpop.f32.mrb[114].mxu0  ;;  %v6144_v44 = vsub.f32 %v5556_v57, %v10786_v43  ;;  %v6148_v40 = vsub.f32 %v5570_v22, %v10788_v48  ;;  %v1738_v51 = vmin.f32 %v1734_v23, %v1737_v27  ;;  %v1745_v8 = vsel %vm10325_vm0, %v6120_v46, inf  ;;  %v10792_v43 = vld [vmem:[#allocation30_spill] sm:$0xff]  ;;  %v6166_v23 = vpop.permute.xlu0 %1482 }
 0x1de   : > { %10784 = vst [vmem:[#allocation118_spill] sm:$0xff] %v6131_v56  ;;  %v6134_v14 = vsub.f32 %v6126_v38, %v1085_v18  ;;  %v6136_v24 = vpop.f32.mrb[115].mxu0  ;;  %v1744_v7 = vmin.f32 %v1740_v19, %v1743_v0  ;;  %v1690_v18 = vmin.f32 %v1688_v55, %v6114_v4  ;;  %v1751_v10 = vsel %vm10325_vm0, %v6124_v29, inf  ;;  %v10798_v46 = vld [vmem:[#allocation34_spill] sm:$0xff]  ;;  %v10801_v4 = vld [vmem:[#allocation32_spill] sm:$0xff] }
 0x1df   : > { %10787 = vst [vmem:[#allocation24_spill] sm:$0xff] %v6144_v44  ;;  %10789 = vst [vmem:[#allocation27_spill] sm:$0xff] %v6148_v40  ;;  %v6160_v57 = vsub.f32 %v5568_v49, %v10790_v33  ;;  %v6164_v22 = vsub.f32 %v10679_v11, %v10792_v43  ;;  %v1742_v19 = vmin.f32 %v1738_v51, %v1741_v63  ;;  %v1749_v49 = vsel %vm10325_vm0, %v6144_v44, inf  ;;  %v10795_v11 = vld [vmem:[#allocation29_spill] sm:$0xff]  ;;  %v10796_v43 = vld [vmem:[#allocation43_spill] sm:$0xff] }
 0x1e0   : > { %10785 = vst [vmem:[#allocation119_spill] sm:$0xff] %v6134_v14  ;;  %v6152_v32 = vmin.f32 %v1691_v36, %v6134_v14  ;;  %v1748_v0 = vmin.f32 %v1744_v7, %v1747_v53  ;;  %v1692_v55 = vmin.f32 %v1690_v18, %v6131_v56  ;;  %v1755_v33 = vsel %vm10325_vm0, %v6148_v40, inf  ;;  %v10799_v63 = vld [vmem:[#allocation50_spill] sm:$0xff]  ;;  %v10802_v40 = vld [vmem:[#allocation49_spill] sm:$0xff] }
 0x1e1   : > { %10791 = vst [vmem:[#allocation26_spill] sm:$0xff] %v6160_v57  ;;  %10793 = vst [vmem:[#allocation30_spill] sm:$0xff] %v6164_v22  ;;  %v1091_v27 = vpop.f32.mrb[116].mxu0  ;;  %v6180_v29 = vsub.f32 %v10796_v43, %v10795_v11  ;;  %v6184_v7 = vsub.f32 %v10799_v63, %v10798_v46  ;;  %v1746_v53 = vmin.f32 %v1742_v19, %v1745_v8  ;;  %v1759_v44 = vsel %vm10325_vm0, %v6164_v22, inf  ;;  %v6195_v11 = vpop.permute.xlu1 %1487  ;;  %v10804_v43 = vld [vmem:[#allocation38_spill] sm:$0xff]  ;;  %v10809_v22 = vld [vmem:[#allocation53_spill] sm:$0xff] }
 0x1e2   : > { %v6170_v36 = vsub.f32 %v6166_v23, %v1091_v27  ;;  %v6172_v48 = vpop.f32.mrb[117].mxu0  ;;  %v1752_v51 = vmin.f32 %v1748_v0, %v1751_v10  ;;  %v1753_v27 = vsel %vm10325_vm0, %v6160_v57, inf  ;;  %v6193_v28 = vsub.f32 %v10802_v40, %v10801_v4  ;;  %v10808_v40 = vld [vmem:[#allocation36_spill] sm:$0xff] }
 0x1e3   : > { %10797 = vst [vmem:[#allocation29_spill] sm:$0xff] %v6180_v29  ;;  %10800 = vst [vmem:[#allocation43_spill] sm:$0xff] %v6184_v7  ;;  %v6199_v46 = vsub.f32 %v10805_v12, %v10804_v43  ;;  %v1750_v10 = vmin.f32 %v1746_v53, %v1749_v49  ;;  %v1757_v63 = vsel %vm10325_vm0, %v6180_v29, inf  ;;  %v1763_v4 = vsel %vm10325_vm0, %v6184_v7, inf  ;;  %v10811_v12 = vld [vmem:[#allocation42_spill] sm:$0xff]  ;;  %v10812_v43 = vld [vmem:[#allocation60_spill] sm:$0xff] }
 0x1e4   : > { %10794 = vst [vmem:[#allocation120_spill] sm:$0xff] %v6170_v36  ;;  %v1694_v18 = vmin.f32 %v1692_v55, %v6170_v36  ;;  %10803 = vst [vmem:[#allocation34_spill] sm:$0xff] %v6193_v28  ;;  %v1756_v19 = vmin.f32 %v1752_v51, %v1755_v33  ;;  %v6212_v57 = vsub.f32 %v10809_v22, %v10808_v40  ;;  %v1761_v51 = vsel %vm10325_vm0, %v6193_v28, inf  ;;  %v10814_v29 = vld [vmem:[#allocation40_spill] sm:$0xff]  ;;  %v10815_v22 = vld [vmem:[#allocation59_spill] sm:$0xff] }
 0x1e5   : > { %10806 = vst [vmem:[#allocation50_spill] sm:$0xff] %v6199_v46  ;;  %v1097_v8 = vpop.f32.mrb[118].mxu0  ;;  %v6216_v15 = vsub.f32 %v10812_v43, %v10811_v12  ;;  %v1754_v49 = vmin.f32 %v1750_v10, %v1753_v27  ;;  %v1767_v7 = vsel %vm10325_vm0, %v6199_v46, inf  ;;  %v6228_v40 = vsub.f32 %v10815_v22, %v10814_v29  ;;  %v10818_v12 = vld [vmem:[#allocation66_spill] sm:$0xff]  ;;  %v10821_v29 = vld [vmem:[#allocation45_spill] sm:$0xff] }
 0x1e6   : > { %v6202_v0 = vsub.f32 %v6195_v11, %v1097_v8  ;;  %v6204_v55 = vpop.f32.mrb[119].mxu0  ;;  %10810 = vst [vmem:[#allocation49_spill] sm:$0xff] %v6212_v57  ;;  %v1760_v33 = vmin.f32 %v1756_v19, %v1759_v44  ;;  %v6222_v8 = vpop.permute.xlu0 %1492  ;;  %v6232_v43 = vsub.f32 %v10818_v12, %v10817_v3  ;;  %v1765_v28 = vsel %vm10325_vm0, %v6212_v57, inf  ;;  %v10823_v3 = vld [vmem:[#allocation55_spill] sm:$0xff]  ;;  %v10825_v57 = vld [vmem:[#allocation52_spill] sm:$0xff] }
 0x1e7   : > { %10813 = vst [vmem:[#allocation38_spill] sm:$0xff] %v6216_v15  ;;  %10816 = vst [vmem:[#allocation56_spill] sm:$0xff] %v6228_v40  ;;  %v1758_v27 = vmin.f32 %v1754_v49, %v1757_v63  ;;  %v1771_v46 = vsel %vm10325_vm0, %v6216_v15, inf  ;;  %v6245_v22 = vsub.f32 %v10724_v21, %v10821_v29  ;;  %v6249_v12 = vsub.f32 %v5630_v31, %v10823_v3  ;;  %v10828_v29 = vld [vmem:[#allocation62_spill] sm:$0xff] }
 0x1e8   : > { %10807 = vst [vmem:[#allocation32_spill] sm:$0xff] %v6202_v0  ;;  %v1695_v53 = vmin.f32 %v6152_v32, %v6202_v0  ;;  %10819 = vst [vmem:[#allocation36_spill] sm:$0xff] %v6232_v43  ;;  %v1764_v10 = vmin.f32 %v1760_v33, %v1763_v4  ;;  %v6252_v33 = vpop.permute.xlu1 %1497  ;;  %v1775_v15 = vsel %vm10325_vm0, %v6232_v43, inf  ;;  %v6260_v21 = vsub.f32 %v10826_v52, %v10825_v57  ;;  %v10832_v52 = vld [vmem:[#allocation58_spill] sm:$0xff]  ;;  %v10833_v57 = vld [vmem:[#allocation72_spill] sm:$0xff] }
 0x1e9   : > { %v1103_v44 = vpop.f32.mrb[120].mxu0  ;;  %10822 = vst [vmem:[#allocation42_spill] sm:$0xff] %v6245_v22  ;;  %10824 = vst [vmem:[#allocation60_spill] sm:$0xff] %v6249_v12  ;;  %v1762_v63 = vmin.f32 %v1758_v27, %v1761_v51  ;;  %v6264_v31 = vsub.f32 %v10829_v16, %v10828_v29  ;;  %v1773_v3 = vsel %vm10325_vm0, %v6245_v22, inf  ;;  %v1779_v43 = vsel %vm10325_vm0, %v6249_v12, inf  ;;  %v10835_v16 = vld [vmem:[#allocation68_spill] sm:$0xff] }
 0x1ea   : > { %v6235_v32 = vsub.f32 %v6222_v8, %v1103_v44  ;;  %v6237_v19 = vpop.f32.mrb[121].mxu0  ;;  %v1768_v4 = vmin.f32 %v1764_v10, %v1767_v7  ;;  %v1769_v44 = vsel %vm10325_vm0, %v6228_v40, inf  ;;  %10827 = vst [vmem:[#allocation40_spill] sm:$0xff] %v6260_v21  ;;  %v6277_v40 = vsub.f32 %v10833_v57, %v10832_v52  ;;  %v10837_v22 = vld [vmem:[#allocation65_spill] sm:$0xff]  ;;  %v10839_v57 = vld [vmem:[#allocation75_spill] sm:$0xff] }
 0x1eb   : > { %10830 = vst [vmem:[#allocation59_spill] sm:$0xff] %v6264_v31  ;;  %v1766_v7 = vmin.f32 %v1762_v63, %v1765_v28  ;;  %v6281_v29 = vsub.f32 %v5691_v34, %v10835_v16  ;;  %v1783_v12 = vsel %vm10325_vm0, %v6264_v31, inf  ;;  %v6292_v52 = vsub.f32 %v10743_v25, %v10837_v22  ;;  %v10842_v25 = vld [vmem:[#allocation71_spill] sm:$0xff] }
 0x1ec   : > { %10820 = vst [vmem:[#allocation53_spill] sm:$0xff] %v6235_v32  ;;  %v1696_v49 = vmin.f32 %v1694_v18, %v6235_v32  ;;  %v1772_v27 = vmin.f32 %v1768_v4, %v1771_v46  ;;  %10834 = vst [vmem:[#allocation66_spill] sm:$0xff] %v6277_v40  ;;  %v6284_v4 = vpop.permute.xlu0 %1502  ;;  %v6296_v34 = vsub.f32 %v5733_v54, %v10839_v57  ;;  %v1781_v16 = vsel %vm10325_vm0, %v6277_v40, inf  ;;  %v10844_v54 = vld [vmem:[#allocation90_spill] sm:$0xff] }
 0x1ed   : > { %v1109_v51 = vpop.f32.mrb[122].mxu0  ;;  %10836 = vst [vmem:[#allocation45_spill] sm:$0xff] %v6281_v29  ;;  %v1770_v28 = vmin.f32 %v1766_v7, %v1769_v44  ;;  %10838 = vst [vmem:[#allocation55_spill] sm:$0xff] %v6292_v52  ;;  %v1787_v31 = vsel %vm10325_vm0, %v6281_v29, inf  ;;  %v6309_v22 = vsub.f32 %v5717_v42, %v10842_v25  ;;  %v6313_v57 = vsub.f32 %v5771_v62, %v10844_v54  ;;  %v10846_v29 = vld [vmem:[#allocation84_spill] sm:$0xff] }
 0x1ee   : > { %v6267_v18 = vsub.f32 %v6252_v33, %v1109_v51  ;;  %v6269_v10 = vpop.f32.mrb[123].mxu0  ;;  %v1776_v46 = vmin.f32 %v1772_v27, %v1775_v15  ;;  %v1777_v51 = vsel %vm10325_vm0, %v6260_v21, inf  ;;  %10840 = vst [vmem:[#allocation52_spill] sm:$0xff] %v6296_v34  ;;  %v1791_v40 = vsel %vm10325_vm0, %v6296_v34, inf  ;;  %v10848_v42 = vld [vmem:[#allocation100_spill] sm:$0xff]  ;;  %v10851_v34 = vld [vmem:[#allocation95_spill] sm:$0xff] }
 0x1ef   : > { %v1774_v15 = vmin.f32 %v1770_v28, %v1773_v3  ;;  %10843 = vst [vmem:[#allocation62_spill] sm:$0xff] %v6309_v22  ;;  %10845 = vst [vmem:[#allocation76_spill] sm:$0xff] %v6313_v57  ;;  %v6322_v21 = vsub.f32 %v5759_v50, %v10846_v29  ;;  %v6326_v25 = vsub.f32 %v5813_v20, %v10848_v42  ;;  %v1795_v54 = vsel %vm10325_vm0, %v6313_v57, inf  ;;  %v10853_v29 = vld [vmem:[#allocation109_spill] sm:$0xff] }
 0x1f0   : > { %10831 = vst [vmem:[#allocation48_spill] sm:$0xff] %v6267_v18  ;;  %v1697_v63 = vmin.f32 %v1695_v53, %v6267_v18  ;;  %v1780_v7 = vmin.f32 %v1776_v46, %v1779_v43  ;;  %v1508_v46 = vpop.permute.xlu1 %1507  ;;  %v6336_v50 = vsub.f32 %v5797_v13, %v10851_v34  ;;  %v6340_v20 = vsub.f32 %v5879_v26, %v10853_v29  ;;  %v10857_v13 = vld [vmem:[#allocation111_spill] sm:$0xff] }
 0x1f1   : > { %v1115_v44 = vpop.f32.mrb[124].mxu0  ;;  %v1778_v43 = vmin.f32 %v1774_v15, %v1777_v51  ;;  %10847 = vst [vmem:[#allocation58_spill] sm:$0xff] %v6322_v21  ;;  %10849 = vst [vmem:[#allocation72_spill] sm:$0xff] %v6326_v25  ;;  %v1799_v57 = vsel %vm10325_vm0, %v6326_v25, inf  ;;  %v6353_v34 = vsub.f32 %v5949_v5, %v10857_v13 }
 0x1f2   : > { %v6299_v53 = vsub.f32 %v6284_v4, %v1115_v44  ;;  %v6301_v27 = vpop.f32.mrb[125].mxu0  ;;  %v1784_v3 = vmin.f32 %v1780_v7, %v1783_v12  ;;  %v1785_v44 = vsel %vm10325_vm0, %v6292_v52, inf  ;;  %v1789_v7 = vsel %vm10325_vm0, %v6309_v22, inf  ;;  %10852 = vst [vmem:[#allocation65_spill] sm:$0xff] %v6336_v50  ;;  %10854 = vst [vmem:[#allocation75_spill] sm:$0xff] %v6340_v20 }
 0x1f3   : > { %v1782_v51 = vmin.f32 %v1778_v43, %v1781_v16  ;;  %10858 = vst [vmem:[#allocation90_spill] sm:$0xff] %v6353_v34 }
 0x1f4   : > { %10841 = vst [vmem:[#allocation69_spill] sm:$0xff] %v6299_v53  ;;  %v1698_v28 = vmin.f32 %v1696_v49, %v6299_v53  ;;  %v1788_v12 = vmin.f32 %v1784_v3, %v1787_v31  ;;  %v10855_v31 = vld [vmem:[#allocation105_spill] sm:$0xff] }
 0x1f5   : > { %v1121_v62 = vpop.f32.mrb[126].mxu0  ;;  %v1786_v42 = vmin.f32 %v1782_v51, %v1785_v44  ;;  %v6344_v43 = vsub.f32 %v5855_v30, %v10855_v31  ;;  %v1803_v30 = vsel %vm10325_vm0, %v6340_v20, inf }
 0x1f6   : > { %v6328_v15 = vsub.f32 %v1508_v46, %v1121_v62  ;;  %v1123_v49 = vpop.f32.mrb[127].mxu0  ;;  %v1792_v16 = vmin.f32 %v1788_v12, %v1791_v40  ;;  %v1793_v62 = vsel %vm10325_vm0, %v6322_v21, inf  ;;  %v1797_v40 = vsel %vm10325_vm0, %v6336_v50, inf }
 0x1f7   : > { %10856 = vst [vmem:[#allocation71_spill] sm:$0xff] %v6344_v43  ;;  %v1790_v26 = vmin.f32 %v1786_v42, %v1789_v7  ;;  %v6365_v12 = vsub.f32 %v6007_v58, %v5977_v9  ;;  %v1801_v7 = vsel %vm10325_vm0, %v6344_v43, inf }
 0x1f8   : > { %10850 = vst [vmem:[#allocation68_spill] sm:$0xff] %v6328_v15  ;;  %v1699_v3 = vmin.f32 %v1697_v63, %v6328_v15  ;;  %v1796_v29 = vmin.f32 %v1792_v16, %v1795_v54  ;;  %v10859_v63 = vld [vmem:[#allocation110_spill] sm:$0xff]  ;;  %v10862_v54 = vld [vmem:[#allocation51_spill] sm:$0xff] }
 0x1f9   : > { %v6361_v51 = vsub.f32 %v5925_v60, %v10859_v63  ;;  %10861 = vst [vmem:[#allocation100_spill] sm:$0xff] %v6365_v12  ;;  %v1794_v31 = vmin.f32 %v1790_v26, %v1793_v62  ;;  %v6373_v42 = vsub.f32 %v5985_v2, %v10862_v54  ;;  %v6377_v60 = vsub.f32 %v6071_v17, %v6061_v61 }
 0x1fa   : > { %v1700_v44 = vmin.f32 %v1698_v28, %v1699_v3  ;;  %v1800_v5 = vmin.f32 %v1796_v29, %v1799_v57  ;;  %v1807_v28 = vsel %vm10325_vm0, %v6353_v34, inf  ;;  %v1811_v57 = vsel %vm10325_vm0, %v6365_v12, inf }
 0x1fb   : > { %10860 = vst [vmem:[#allocation84_spill] sm:$0xff] %v6361_v51  ;;  %10863 = vst [vmem:[#allocation95_spill] sm:$0xff] %v6373_v42  ;;  %v1798_v3 = vmin.f32 %v1794_v31, %v1797_v40  ;;  %v1805_v58 = vsel %vm10325_vm0, %v6361_v51, inf  ;;  %v6385_v62 = vsub.f32 %v6049_v39, %v6019_v41  ;;  %v6389_v2 = vsub.f32 %v6126_v38, %v6136_v24 }
 0x1fc   : > { %10864 = vst [vmem:[#allocation109_spill] sm:$0xff] %v6377_v60  ;;  %v1701_v16 = vrot.slane %v1700_v44, 4  ;;  %v1804_v9 = vmin.f32 %v1800_v5, %v1803_v30  ;;  %v6393_v61 = vsub.f32 %v6107_v47, %v6097_v59  ;;  %v1809_v26 = vsel %vm10325_vm0, %v6373_v42, inf }
 0x1fd   : > { %10865 = vst [vmem:[#allocation105_spill] sm:$0xff] %v6385_v62  ;;  %10866 = vst [vmem:[#allocation111_spill] sm:$0xff] %v6389_v2  ;;  %v1802_v13 = vmin.f32 %v1798_v3, %v1801_v7  ;;  %v1815_v29 = vsel %vm10325_vm0, %v6377_v60, inf  ;;  %v6401_v41 = vsub.f32 %v6195_v11, %v6204_v55  ;;  %v1813_v38 = vsel %vm10325_vm0, %v6385_v62, inf }
 0x1fe   : > { %v1808_v17 = vmin.f32 %v1804_v9, %v1807_v28  ;;  %10867 = vst [vmem:[#allocation110_spill] sm:$0xff] %v6393_v61  ;;  %v1702_v39 = vmin.f32 %v1700_v44, %v1701_v16  ;;  %v1819_v59 = vsel %vm10325_vm0, %v6389_v2, inf  ;;  %v6409_v47 = vsub.f32 %v6166_v23, %v6172_v48 }
 0x1ff   : > { %10868 = vst [vmem:[#allocation51_spill] sm:$0xff] %v6401_v41  ;;  %v1806_v40 = vmin.f32 %v1802_v13, %v1805_v58  ;;  %v6413_v30 = vsub.f32 %v6252_v33, %v6269_v10  ;;  %v1817_v55 = vsel %vm10325_vm0, %v6393_v61, inf  ;;  %v1823_v44 = vsel %vm10325_vm0, %v6401_v41, inf }
 0x200   : > { %v1812_v24 = vmin.f32 %v1808_v17, %v1811_v57  ;;  %10869 = vst [vmem:[#allocation121_spill] sm:$0xff] %v6409_v47  ;;  %v6421_v31 = vsub.f32 %v6222_v8, %v6237_v19  ;;  %v1703_v5 = vrot.slane %v1702_v39, 2  ;;  %v6423_v7 = vsub.f32 %v1508_v46, %v1123_v49 }
 0x201   : > { %10870 = vst [vmem:[#allocation122_spill] sm:$0xff] %v6413_v30  ;;  %v1810_v63 = vmin.f32 %v1806_v40, %v1809_v26  ;;  %v10259_v28 = vlaneseq  ;;  %v1821_v33 = vsel %vm10325_vm0, %v6409_v47, inf  ;;  %v1827_v10 = vsel %vm10325_vm0, %v6413_v30, inf }
 0x202   : > { %v1816_v11 = vmin.f32 %v1812_v24, %v1815_v29  ;;  %10871 = vst [vmem:[#allocation123_spill] sm:$0xff] %v6421_v31  ;;  %10872 = vst [vmem:[#allocation124_spill] sm:$0xff] %v6423_v7  ;;  %v6431_v54 = vsub.f32 %v6284_v4, %v6301_v27  ;;  %v1825_v8 = vsel %vm10325_vm0, %v6421_v31, inf  ;;  %v1704_v19 = vmin.f32 %v1702_v39, %v1703_v5 }
 0x203   : > { %v1814_v23 = vmin.f32 %v1810_v63, %v1813_v38  ;;  %v1831_v46 = vsel %vm10325_vm0, %v6423_v7, inf  ;;  %v6438_v58 = vshrl.u32 %v10259_v28, 7  ;;  %v4785_v26 = vmov 1966171168  }
 0x204   : > { %v1820_v48 = vmin.f32 %v1816_v11, %v1819_v59  ;;  %10873 = vst [vmem:[#allocation125_spill] sm:$0xff] %v6431_v54  ;;  %v1829_v57 = vsel %vm10325_vm0, %v6431_v54, inf  ;;  %v1705_v27 = vrot.slane %v1704_v19, 1  ;;  %v6442_v29 = vunpack.c.l.s4 %v4785_v26 }
 0x205   : > { %v1818_v16 = vmin.f32 %v1814_v23, %v1817_v55  ;;  %10874 = vst [vmem:[#allocation126_spill] sm:$0xff] %v6438_v58  ;;  %v6445_v39 = vadd.s32 8, %v6438_v58  ;;  %v6448_v40 = vadd.s32 16, %v6438_v58  ;;  %v6451_v24 = vadd.s32 24, %v6438_v58 }
 0x206   : > { %v1824_v3 = vmin.f32 %v1820_v48, %v1823_v44  ;;  %10875 = vst [vmem:[#allocation127_spill] sm:$0xff] %v6442_v29  ;;  %v6454_v38 = vadd.s32 32, %v6438_v58  ;;  %v6457_v63 = vadd.s32 40, %v6438_v58  ;;  %v6460_v11 = vadd.s32 48, %v6438_v58 }
 0x207   : > { %v1822_v49 = vmin.f32 %v1818_v16, %v1821_v33  ;;  %10876 = vst [vmem:[#allocation128_spill] sm:$0xff] %v6445_v39  ;;  %10877 = vst [vmem:[#allocation129_spill] sm:$0xff] %v6448_v40  ;;  %v6463_v55 = vadd.s32 56, %v6438_v58  ;;  %v6465_v44 = vmin.f32 %v1704_v19, %v1705_v27  ;;  %v6468_v5 = vadd.s32 64, %v6438_v58 }
 0x208   : > { %v1828_v9 = vmin.f32 %v1824_v3, %v1827_v10  ;;  %10878 = vst [vmem:[#allocation130_spill] sm:$0xff] %v6451_v24  ;;  %v6471_v23 = vadd.s32 72, %v6438_v58  ;;  %v6474_v48 = vadd.s32 80, %v6438_v58  ;;  %v6477_v33 = vadd.s32 88, %v6438_v58 }
 0x209   : > { %v1826_v13 = vmin.f32 %v1822_v49, %v1825_v8  ;;  %v6480_v10 = vadd.s32 96, %v6438_v58  ;;  %v6483_v16 = vadd.s32 104, %v6438_v58  ;;  %v6486_v3 = vadd.s32 112, %v6438_v58 }
 0x20a   : > { %v1832_v4 = vmin.f32 %v1828_v9, %v1831_v46  ;;  %v6489_v8 = vadd.s32 120, %v6438_v58  ;;  %v6492_v19 = vadd.s32 128, %v6438_v58  ;;  %v6495_v46 = vadd.s32 136, %v6438_v58 }
 0x20b   : > { %v1830_v17 = vmin.f32 %v1826_v13, %v1829_v57  ;;  %v6498_v49 = vadd.s32 144, %v6438_v58  ;;  %v6501_v57 = vadd.s32 152, %v6438_v58  ;;  %v6504_v13 = vadd.s32 160, %v6438_v58 }
 0x20c   : > { %10879 = vst [vmem:[#allocation131_spill] sm:$0xff] %v6489_v8  ;;  %10880 = vst [vmem:[#allocation132_spill] sm:$0xff] %v6492_v19  ;;  %v6528_v27 = vadd.s32 176, %v6438_v58  ;;  %v6534_v26 = vadd.s32 192, %v6438_v58  ;;  %v6537_v29 = vadd.s32 200, %v6438_v58  ;;  %v6540_v7 = vadd.s32 208, %v6438_v58 }
 0x20d   : > { %v1833_v59 = vmin.f32 %v1830_v17, %v1832_v4  ;;  %10881 = vst [vmem:[#allocation133_spill] sm:$0xff] %v6495_v46  ;;  %10882 = vst [vmem:[#allocation134_spill] sm:$0xff] %v6498_v49  ;;  %v6507_v4 = vadd.s32 168, %v6438_v58  ;;  %v6531_v17 = vadd.s32 184, %v6438_v58  ;;  %v6543_v54 = vadd.s32 216, %v6438_v58 }
 0x20e   : > { %10884 = vst [vmem:[#allocation136_spill] sm:$0xff] %v6534_v26  ;;  %10885 = vst [vmem:[#allocation137_spill] sm:$0xff] %v6537_v29  ;;  %v6546_v30 = vadd.s32 224, %v6438_v58  ;;  %v6549_v31 = vadd.s32 232, %v6438_v58  ;;  %v6552_v41 = vadd.s32 240, %v6438_v58  ;;  %v6561_v47 = vadd.s32 264, %v6438_v58 }
 0x20f   : > { %v1834_v9 = vrot.slane %v1833_v59, 4  ;;  %10883 = vst [vmem:[#allocation135_spill] sm:$0xff] %v6531_v17  ;;  %10886 = vst [vmem:[#allocation138_spill] sm:$0xff] %v6540_v7  ;;  %v6564_v2 = vadd.s32 272, %v6438_v58  ;;  %v6567_v61 = vadd.s32 280, %v6438_v58  ;;  %v6570_v60 = vadd.s32 288, %v6438_v58 }
 0x210   : > { %10887 = vst [vmem:[#allocation139_spill] sm:$0xff] %v6543_v54  ;;  %10888 = vst [vmem:[#allocation140_spill] sm:$0xff] %v6546_v30  ;;  %v6573_v62 = vadd.s32 296, %v6438_v58  ;;  %v6576_v12 = vadd.s32 304, %v6438_v58  ;;  %v6579_v42 = vadd.s32 312, %v6438_v58  ;;  %v6582_v51 = vadd.s32 320, %v6438_v58 }
 0x211   : > { %v1835_v28 = vmin.f32 %v1833_v59, %v1834_v9  ;;  %10889 = vst [vmem:[#allocation141_spill] sm:$0xff] %v6549_v31  ;;  %10890 = vst [vmem:[#allocation142_spill] sm:$0xff] %v6552_v41  ;;  %v6555_v59 = vadd.s32 248, %v6438_v58  ;;  %v6558_v9 = vadd.s32 256, %v6438_v58  ;;  %v6585_v20 = vadd.s32 328, %v6438_v58 }
 0x212   : > { %10893 = vst [vmem:[#allocation145_spill] sm:$0xff] %v6561_v47  ;;  %10894 = vst [vmem:[#allocation146_spill] sm:$0xff] %v6564_v2  ;;  %v6588_v43 = vadd.s32 336, %v6438_v58  ;;  %v6591_v25 = vadd.s32 344, %v6438_v58  ;;  %v6594_v50 = vadd.s32 352, %v6438_v58  ;;  %v6597_v21 = vadd.s32 360, %v6438_v58 }
 0x213   : > { %10891 = vst [vmem:[#allocation143_spill] sm:$0xff] %v6555_v59  ;;  %10892 = vst [vmem:[#allocation144_spill] sm:$0xff] %v6558_v9  ;;  %v1836_v34 = vrot.slane %v1835_v28, 2  ;;  %v6600_v22 = vadd.s32 368, %v6438_v58  ;;  %v6603_v52 = vadd.s32 376, %v6438_v58  ;;  %v6606_v15 = vadd.s32 384, %v6438_v58 }
 0x214   : > { %10895 = vst [vmem:[#allocation147_spill] sm:$0xff] %v6567_v61  ;;  %10896 = vst [vmem:[#allocation148_spill] sm:$0xff] %v6570_v60  ;;  %v6609_v53 = vadd.s32 392, %v6438_v58  ;;  %v6612_v18 = vadd.s32 400, %v6438_v58  ;;  %v6615_v32 = vadd.s32 408, %v6438_v58  ;;  %v6618_v0 = vadd.s32 416, %v6438_v58 }
 0x215   : > { %10897 = vst [vmem:[#allocation149_spill] sm:$0xff] %v6573_v62  ;;  %10898 = vst [vmem:[#allocation150_spill] sm:$0xff] %v6576_v12  ;;  %v6621_v36 = vadd.s32 424, %v6438_v58  ;;  %v6624_v14 = vadd.s32 432, %v6438_v58  ;;  %v6626_v56 = vmin.f32 %v1835_v28, %v1836_v34  ;;  %v6629_v45 = vadd.s32 440, %v6438_v58  ;;  %v10922_v34 = vld [vmem:[#allocation78_spill] sm:$0xff] }
 0x216   : > { %10899 = vst [vmem:[#allocation151_spill] sm:$0xff] %v6579_v42  ;;  %10900 = vst [vmem:[#allocation152_spill] sm:$0xff] %v6582_v51  ;;  %vm1909_vm12 = vcmp.eq.f32.partialorder %v10922_v34, %v6465_v44  ;;  %v10923_v28 = vld [vmem:[#allocation74_spill] sm:$0xff] }
 0x217   : > { %10901 = vst [vmem:[#allocation153_spill] sm:$0xff] %v6585_v20  ;;  %10902 = vst [vmem:[#allocation154_spill] sm:$0xff] %v6588_v43  ;;  %vm1911_vm13 = vcmp.eq.f32.partialorder %v10923_v28, %v6465_v44  ;;  %v10929_v34 = vld [vmem:[#allocation82_spill] sm:$0xff]  ;;  %v10930_v28 = vld [vmem:[#allocation79_spill] sm:$0xff] }
 0x218   : > { %10903 = vst [vmem:[#allocation155_spill] sm:$0xff] %v6591_v25  ;;  %10904 = vst [vmem:[#allocation156_spill] sm:$0xff] %v6594_v50  ;;  %vm1913_vm14 = vcmp.eq.f32.partialorder %v10929_v34, %v6465_v44  ;;  %vm1915_vm15 = vcmp.eq.f32.partialorder %v10930_v28, %v6465_v44  ;;  %v10941_v43 = vld [vmem:[#allocation98_spill] sm:$0xff]  ;;  %v10942_v20 = vld [vmem:[#allocation97_spill] sm:$0xff] }
 0x219   : > { %10905 = vst [vmem:[#allocation157_spill] sm:$0xff] %v6597_v21  ;;  %10906 = vst [vmem:[#allocation158_spill] sm:$0xff] %v6600_v22  ;;  %v2041_v22 = vsel %vm1913_vm14, %v6454_v38, 512  ;;  %v2043_v21 = vsel %vm1915_vm15, %v6457_v63, 512  ;;  %vm1937_vm2 = vcmp.eq.f32.partialorder %v10941_v43, %v6465_v44  ;;  %vm1939_vm1 = vcmp.eq.f32.partialorder %v10942_v20, %v6465_v44 }
 0x21a   : > { %10907 = vst [vmem:[#allocation159_spill] sm:$0xff] %v6603_v52  ;;  %10908 = vst [vmem:[#allocation160_spill] sm:$0xff] %v6606_v15  ;;  %v10933_v15 = vld [vmem:[#allocation88_spill] sm:$0xff]  ;;  %v10934_v52 = vld [vmem:[#allocation87_spill] sm:$0xff] }
 0x21b   : > { %10909 = vst [vmem:[#allocation161_spill] sm:$0xff] %v6609_v53  ;;  %10910 = vst [vmem:[#allocation162_spill] sm:$0xff] %v6612_v18  ;;  %v6632_v53 = vadd.s32 448, %v6438_v58  ;;  %v6635_v18 = vadd.s32 456, %v6438_v58  ;;  %vm1921_vm8 = vcmp.eq.f32.partialorder %v10933_v15, %v6465_v44  ;;  %vm1923_vm7 = vcmp.eq.f32.partialorder %v10934_v52, %v6465_v44 }
 0x21c   : > { %10911 = vst [vmem:[#allocation163_spill] sm:$0xff] %v6615_v32  ;;  %10912 = vst [vmem:[#allocation164_spill] sm:$0xff] %v6618_v0  ;;  %v6638_v32 = vadd.s32 464, %v6438_v58  ;;  %v10920_v0 = vld [vmem:[#allocation81_spill] sm:$0xff] }
 0x21d   : > { %10913 = vst [vmem:[#allocation165_spill] sm:$0xff] %v6621_v36  ;;  %10914 = vst [vmem:[#allocation166_spill] sm:$0xff] %v6624_v14  ;;  %vm1905_vm10 = vcmp.eq.f32.partialorder %v10920_v0, %v6465_v44  ;;  %v10921_v36 = vld [vmem:[#allocation77_spill] sm:$0xff]  ;;  %v6658_v0 = vadd.s32 496, %v6438_v58  ;;  %v2039_v14 = vsel %vm1911_vm13, %v6451_v24, 512 }
 0x21e   : > { %10915 = vst [vmem:[#allocation167_spill] sm:$0xff] %v6626_v56  ;;  %10916 = vst [vmem:[#allocation168_spill] sm:$0xff] %v6629_v45  ;;  %vm1907_vm11 = vcmp.eq.f32.partialorder %v10921_v36, %v6465_v44  ;;  %v6661_v36 = vadd.s32 504, %v6438_v58  ;;  %v2033_v45 = vsel %vm1905_vm10, %v6438_v58, 512  ;;  %v10937_v24 = vld [vmem:[#allocation93_spill] sm:$0xff]  ;;  %v10940_v56 = vld [vmem:[#allocation94_spill] sm:$0xff] }
 0x21f   : > { %10917 = vst [vmem:[#allocation169_spill] sm:$0xff] %v6632_v53  ;;  %10918 = vst [vmem:[#allocation170_spill] sm:$0xff] %v6635_v18  ;;  %v6649_v53 = vadd.s32 472, %v6438_v58  ;;  %v6652_v18 = vadd.s32 480, %v6438_v58 }
 0x220   : > { %10919 = vst [vmem:[#allocation171_spill] sm:$0xff] %v6638_v32  ;;  %v6655_v32 = vadd.s32 488, %v6438_v58  ;;  %10927 = vst [vmem:[#allocation74_spill] sm:$0xff] %v6658_v0  ;;  %v10931_v0 = vld [vmem:[#allocation86_spill] sm:$0xff]  ;;  %v10939_v58 = vld [vmem:[#allocation96_spill] sm:$0xff] }
 0x221   : > { %10924 = vst [vmem:[#allocation81_spill] sm:$0xff] %v6649_v53  ;;  %10925 = vst [vmem:[#allocation77_spill] sm:$0xff] %v6652_v18  ;;  %v2035_v18 = vsel %vm1907_vm11, %v6445_v39, 512  ;;  %vm1917_vm0 = vcmp.eq.f32.partialorder %v10931_v0, %v6465_v44  ;;  %v10935_v53 = vld [vmem:[#allocation91_spill] sm:$0xff]  ;;  %v10936_v39 = vld [vmem:[#allocation89_spill] sm:$0xff]  ;;  %v2049_v0 = vsel %vm1921_vm8, %v6468_v5, 512  ;;  %vm10951_vm8 = vcmp.eq.f32.partialorder %v10939_v58, %v6465_v44 }
 0x222   : > { %10926 = vst [vmem:[#allocation78_spill] sm:$0xff] %v6655_v32  ;;  %10928 = vst [vmem:[#allocation172_spill] sm:$0xff] %v6661_v36  ;;  %v2037_v32 = vsel %vm1909_vm12, %v6448_v40, 512  ;;  %v10932_v36 = vld [vmem:[#allocation83_spill] sm:$0xff]  ;;  %vm1925_vm10 = vcmp.eq.f32.partialorder %v10935_v53, %v6465_v44  ;;  %vm1927_vm11 = vcmp.eq.f32.partialorder %v10936_v39, %v6465_v44  ;;  %vm1929_vm12 = vcmp.eq.f32.partialorder %v10937_v24, %v6465_v44  ;;  %v10938_v40 = vld [vmem:[#allocation92_spill] sm:$0xff] }
 0x223   : > { %vm1919_vm9 = vcmp.eq.f32.partialorder %v10932_v36, %v6465_v44  ;;  %vm1931_vm13 = vcmp.eq.f32.partialorder %v10938_v40, %v6465_v44  ;;  %vm2161_vm4 = vcmp.lt.s32.totalorder %v2033_v45, %v2037_v32  ;;  %vm2163_vm3 = vcmp.lt.s32.totalorder %v2035_v18, %v2039_v14 }
 0x224   : > { %v2162_v50 = vsel %vm2161_vm4, %v2033_v45, %v2037_v32  ;;  %v2164_v25 = vsel %vm2163_vm3, %v2035_v18, %v2039_v14  ;;  %v2045_v34 = vsel %vm1917_vm0, %v6460_v11, 512  ;;  %v2047_v28 = vsel %vm1919_vm9, %v6463_v55, 512  ;;  %v10943_v32 = vld [vmem:[#allocation101_spill] sm:$0xff]  ;;  %v10944_v18 = vld [vmem:[#allocation99_spill] sm:$0xff] }
 0x225   : > { %vm2165_vm5 = vcmp.lt.s32.totalorder %v2162_v50, %v2041_v22  ;;  %vm2167_vm6 = vcmp.lt.s32.totalorder %v2164_v25, %v2043_v21  ;;  %vm1941_vm3 = vcmp.eq.f32.partialorder %v10943_v32, %v6465_v44  ;;  %vm1943_vm4 = vcmp.eq.f32.partialorder %v10944_v18, %v6465_v44 }
 0x226   : > { %v2166_v45 = vsel %vm2165_vm5, %v2162_v50, %v2041_v22  ;;  %v2168_v14 = vsel %vm2167_vm6, %v2164_v25, %v2043_v21  ;;  %v2051_v36 = vsel %vm1923_vm7, %v6471_v23, 512  ;;  %v10945_v25 = vld [vmem:[#allocation103_spill] sm:$0xff]  ;;  %v10946_v50 = vld [vmem:[#allocation102_spill] sm:$0xff]  ;;  %v2053_v15 = vsel %vm1925_vm10, %v6474_v48, 512 }
 0x227   : > { %vm2169_vm14 = vcmp.lt.s32.totalorder %v2166_v45, %v2045_v34  ;;  %vm2171_vm15 = vcmp.lt.s32.totalorder %v2168_v14, %v2047_v28  ;;  %vm1945_vm0 = vcmp.eq.f32.partialorder %v10945_v25, %v6465_v44  ;;  %vm1947_vm5 = vcmp.eq.f32.partialorder %v10946_v50, %v6465_v44 }
 0x228   : > { %v2170_v22 = vsel %vm2169_vm14, %v2166_v45, %v2045_v34  ;;  %v2172_v21 = vsel %vm2171_vm15, %v2168_v14, %v2047_v28  ;;  %v2055_v52 = vsel %vm1927_vm11, %v6477_v33, 512  ;;  %v10947_v45 = vld [vmem:[#allocation106_spill] sm:$0xff]  ;;  %v10948_v14 = vld [vmem:[#allocation104_spill] sm:$0xff]  ;;  %v2057_v53 = vsel %vm1929_vm12, %v6480_v10, 512 }
 0x229   : > { %vm2173_vm6 = vcmp.lt.s32.totalorder %v2170_v22, %v2049_v0  ;;  %vm2175_vm9 = vcmp.lt.s32.totalorder %v2172_v21, %v2051_v36  ;;  %vm1949_vm7 = vcmp.eq.f32.partialorder %v10947_v45, %v6465_v44  ;;  %v2059_v39 = vsel %vm1931_vm13, %v6483_v16, 512 }
 0x22a   : > { %v2174_v34 = vsel %vm2173_vm6, %v2170_v22, %v2049_v0  ;;  %v2176_v28 = vsel %vm2175_vm9, %v2172_v21, %v2051_v36  ;;  %v10949_v22 = vld [vmem:[#allocation108_spill] sm:$0xff]  ;;  %v10950_v21 = vld [vmem:[#allocation107_spill] sm:$0xff]  ;;  %v2061_v24 = vsel %vm10951_vm8, %v6486_v3, 512  ;;  %vm10952_vm12 = vcmp.eq.f32.partialorder %v10940_v56, %v6465_v44 }
 0x22b   : > { %vm2177_vm14 = vcmp.lt.s32.totalorder %v2174_v34, %v2053_v15  ;;  %vm2179_vm15 = vcmp.lt.s32.totalorder %v2176_v28, %v2055_v52  ;;  %vm1953_vm10 = vcmp.eq.f32.partialorder %v10949_v22, %v6465_v44  ;;  %v2063_v40 = vsel %vm10952_vm12, %v6489_v8, 512  ;;  %v10966_v22 = vld [vmem:[#allocation10_spill] sm:$0xff] }
 0x22c   : > { %v2178_v0 = vsel %vm2177_vm14, %v2174_v34, %v2053_v15  ;;  %v2180_v36 = vsel %vm2179_vm15, %v2176_v28, %v2055_v52  ;;  %v10953_v34 = vld [vmem:[#allocation28_spill] sm:$0xff]  ;;  %v10954_v28 = vld [vmem:[#allocation46_spill] sm:$0xff]  ;;  %v2065_v58 = vsel %vm1937_vm2, %v6492_v19, 512  ;;  %v2067_v56 = vsel %vm1939_vm1, %v6495_v46, 512 }
 0x22d   : > { %vm2181_vm6 = vcmp.lt.s32.totalorder %v2178_v0, %v2057_v53  ;;  %vm2183_vm9 = vcmp.lt.s32.totalorder %v2180_v36, %v2059_v39  ;;  %vm1957_vm13 = vcmp.eq.f32.partialorder %v10953_v34, %v6465_v44  ;;  %vm1959_vm14 = vcmp.eq.f32.partialorder %v10954_v28, %v6465_v44  ;;  %v10968_v34 = vld [vmem:[#allocation67_spill] sm:$0xff] }
 0x22e   : > { %v2182_v15 = vsel %vm2181_vm6, %v2178_v0, %v2057_v53  ;;  %v2184_v52 = vsel %vm2183_vm9, %v2180_v36, %v2059_v39  ;;  %v10955_v0 = vld [vmem:[#allocation31_spill] sm:$0xff]  ;;  %v10956_v36 = vld [vmem:[#allocation33_spill] sm:$0xff]  ;;  %v2069_v43 = vsel %vm1941_vm3, %v6498_v49, 512  ;;  %v2071_v20 = vsel %vm1943_vm4, %v6501_v57, 512 }
 0x22f   : > { %vm2185_vm15 = vcmp.lt.s32.totalorder %v2182_v15, %v2061_v24  ;;  %vm2187_vm11 = vcmp.lt.s32.totalorder %v2184_v52, %v2063_v40  ;;  %vm1961_vm8 = vcmp.eq.f32.partialorder %v10955_v0, %v6465_v44  ;;  %vm1963_vm6 = vcmp.eq.f32.partialorder %v10956_v36, %v6465_v44  ;;  %v10972_v0 = vld [vmem:[#allocation70_spill] sm:$0xff] }
 0x230   : > { %v2186_v53 = vsel %vm2185_vm15, %v2182_v15, %v2061_v24  ;;  %v2188_v39 = vsel %vm2187_vm11, %v2184_v52, %v2063_v40  ;;  %v10957_v15 = vld [vmem:[#allocation35_spill] sm:$0xff]  ;;  %v10958_v52 = vld [vmem:[#allocation37_spill] sm:$0xff]  ;;  %v2073_v32 = vsel %vm1945_vm0, %v6504_v13, 512  ;;  %v2075_v18 = vsel %vm1947_vm5, %v6507_v4, 512 }
 0x231   : > { %vm2189_vm9 = vcmp.lt.s32.totalorder %v2186_v53, %v2065_v58  ;;  %vm2191_vm12 = vcmp.lt.s32.totalorder %v2188_v39, %v2067_v56  ;;  %vm1965_vm1 = vcmp.eq.f32.partialorder %v10957_v15, %v6465_v44  ;;  %vm1967_vm2 = vcmp.eq.f32.partialorder %v10958_v52, %v6465_v44 }
 0x232   : > { %v2190_v24 = vsel %vm2189_vm9, %v2186_v53, %v2065_v58  ;;  %v2192_v40 = vsel %vm2191_vm12, %v2188_v39, %v2067_v56  ;;  %v10959_v53 = vld [vmem:[#allocation39_spill] sm:$0xff]  ;;  %v10960_v39 = vld [vmem:[#allocation41_spill] sm:$0xff]  ;;  %v2077_v25 = vsel %vm1949_vm7, %v6528_v27, 512  ;;  %vm10961_vm0 = vcmp.eq.f32.partialorder %v10948_v14, %v6465_v44 }
 0x233   : > { %vm2193_vm11 = vcmp.lt.s32.totalorder %v2190_v24, %v2069_v43  ;;  %vm2195_vm15 = vcmp.lt.s32.totalorder %v2192_v40, %v2071_v20  ;;  %vm1969_vm3 = vcmp.eq.f32.partialorder %v10959_v53, %v6465_v44  ;;  %v2079_v50 = vsel %vm10961_vm0, %v6531_v17, 512 }
 0x234   : > { %v2194_v58 = vsel %vm2193_vm11, %v2190_v24, %v2069_v43  ;;  %v2196_v56 = vsel %vm2195_vm15, %v2192_v40, %v2071_v20  ;;  %v10962_v24 = vld [vmem:[#allocation44_spill] sm:$0xff]  ;;  %v10963_v40 = vld [vmem:[#allocation47_spill] sm:$0xff]  ;;  %v2081_v45 = vsel %vm1953_vm10, %v6534_v26, 512  ;;  %vm10964_vm7 = vcmp.eq.f32.partialorder %v10950_v21, %v6465_v44 }
 0x235   : > { %vm2197_vm9 = vcmp.lt.s32.totalorder %v2194_v58, %v2073_v32  ;;  %vm2199_vm12 = vcmp.lt.s32.totalorder %v2196_v56, %v2075_v18  ;;  %v2083_v14 = vsel %vm10964_vm7, %v6537_v29, 512  ;;  %v2085_v21 = vsel %vm1957_vm13, %v6540_v7, 512 }
 0x236   : > { %v2198_v43 = vsel %vm2197_vm9, %v2194_v58, %v2073_v32  ;;  %v2200_v20 = vsel %vm2199_vm12, %v2196_v56, %v2075_v18  ;;  %vm1977_vm9 = vcmp.eq.f32.partialorder %v5933_v1, %v6465_v44  ;;  %v10965_v58 = vld [vmem:[#allocation63_spill] sm:$0xff]  ;;  %v2087_v56 = vsel %vm1959_vm14, %v6543_v54, 512  ;;  %v10971_v54 = vld [vmem:[#allocation80_spill] sm:$0xff] }
 0x237   : > { %vm2201_vm15 = vcmp.lt.s32.totalorder %v2198_v43, %v2077_v25  ;;  %vm2203_vm4 = vcmp.lt.s32.totalorder %v2200_v20, %v2079_v50  ;;  %vm1979_vm12 = vcmp.eq.f32.partialorder %v10965_v58, %v6465_v44  ;;  %v2089_v28 = vsel %vm1961_vm8, %v6546_v30, 512  ;;  %v10975_v30 = vld [vmem:[#allocation113_spill] sm:$0xff] }
 0x238   : > { %v2202_v32 = vsel %vm2201_vm15, %v2198_v43, %v2077_v25  ;;  %v2204_v18 = vsel %vm2203_vm4, %v2200_v20, %v2079_v50  ;;  %vm1985_vm4 = vcmp.eq.f32.partialorder %v5971_v37, %v6465_v44  ;;  %v10967_v43 = vld [vmem:[#allocation11_spill] sm:$0xff]  ;;  %v2091_v20 = vsel %vm1963_vm6, %v6549_v31, 512  ;;  %v10974_v31 = vld [vmem:[#allocation16_spill] sm:$0xff]  ;;  %v10985_v58 = vld [vmem:[#allocation153_spill] sm:$0xff] }
 0x239   : > { %vm2205_vm0 = vcmp.lt.s32.totalorder %v2202_v32, %v2081_v45  ;;  %vm2207_vm11 = vcmp.lt.s32.totalorder %v2204_v18, %v2083_v14  ;;  %vm1987_vm15 = vcmp.eq.f32.partialorder %v10967_v43, %v6465_v44  ;;  %v2093_v36 = vsel %vm1965_vm1, %v6552_v41, 512  ;;  %v10990_v37 = vld [vmem:[#allocation156_spill] sm:$0xff] }
 0x23a   : > { %v2206_v25 = vsel %vm2205_vm0, %v2202_v32, %v2081_v45  ;;  %v2208_v50 = vsel %vm2207_vm11, %v2204_v18, %v2083_v14  ;;  %v10969_v32 = vld [vmem:[#allocation13_spill] sm:$0xff]  ;;  %v10970_v18 = vld [vmem:[#allocation64_spill] sm:$0xff]  ;;  %v2097_v15 = vsel %vm1969_vm3, %v6558_v9, 512  ;;  %vm10976_vm1 = vcmp.eq.f32.partialorder %v10960_v39, %v6465_v44 }
 0x23b   : > { %vm2209_vm7 = vcmp.lt.s32.totalorder %v2206_v25, %v2085_v21  ;;  %vm2211_vm10 = vcmp.lt.s32.totalorder %v2208_v50, %v2087_v56  ;;  %vm1993_vm14 = vcmp.eq.f32.partialorder %v10969_v32, %v6465_v44  ;;  %vm1995_vm11 = vcmp.eq.f32.partialorder %v10970_v18, %v6465_v44  ;;  %v10996_v32 = vld [vmem:[#allocation160_spill] sm:$0xff] }
 0x23c   : > { %v2210_v45 = vsel %vm2209_vm7, %v2206_v25, %v2085_v21  ;;  %v2212_v14 = vsel %vm2211_vm10, %v2208_v50, %v2087_v56  ;;  %v2095_v21 = vsel %vm1967_vm2, %v6555_v59, 512  ;;  %v10973_v50 = vld [vmem:[#allocation19_spill] sm:$0xff]  ;;  %v2099_v52 = vsel %vm10976_vm1, %v6561_v47, 512 }
 0x23d   : > { %vm2213_vm0 = vcmp.lt.s32.totalorder %v2210_v45, %v2089_v28  ;;  %vm2215_vm13 = vcmp.lt.s32.totalorder %v2212_v14, %v2091_v20  ;;  %vm2001_vm6 = vcmp.eq.f32.partialorder %v10973_v50, %v6465_v44  ;;  %vm10979_vm10 = vcmp.eq.f32.partialorder %v10962_v24, %v6465_v44  ;;  %v11002_v50 = vld [vmem:[#allocation164_spill] sm:$0xff] }
 0x23e   : > { %v2214_v56 = vsel %vm2213_vm0, %v2210_v45, %v2089_v28  ;;  %v2216_v25 = vsel %vm2215_vm13, %v2212_v14, %v2091_v20  ;;  %v10977_v45 = vld [vmem:[#allocation112_spill] sm:$0xff]  ;;  %v10978_v14 = vld [vmem:[#allocation115_spill] sm:$0xff]  ;;  %v2101_v53 = vsel %vm10979_vm10, %v6564_v2, 512  ;;  %vm10980_vm3 = vcmp.eq.f32.partialorder %v10963_v40, %v6465_v44  ;;  %v11060_v2 = vld [vmem:[#allocation129_spill] sm:$0xff] }
 0x23f   : > { %vm2217_vm7 = vcmp.lt.s32.totalorder %v2214_v56, %v2093_v36  ;;  %vm2219_vm8 = vcmp.lt.s32.totalorder %v2216_v25, %v2095_v21  ;;  %vm2007_vm2 = vcmp.eq.f32.partialorder %v10977_v45, %v6465_v44  ;;  %v2103_v39 = vsel %vm10980_vm3, %v6567_v61, 512 }
 0x240   : > { %v2218_v28 = vsel %vm2217_vm7, %v2214_v56, %v2093_v36  ;;  %v2220_v20 = vsel %vm2219_vm8, %v2216_v25, %v2095_v21  ;;  %v10981_v56 = vld [vmem:[#allocation114_spill] sm:$0xff]  ;;  %v10982_v25 = vld [vmem:[#allocation117_spill] sm:$0xff]  ;;  %v2105_v24 = vsel %vm1977_vm9, %v6570_v60, 512  ;;  %v2107_v40 = vsel %vm1979_vm12, %v6573_v62, 512 }
 0x241   : > { %vm2221_vm0 = vcmp.lt.s32.totalorder %v2218_v28, %v2097_v15  ;;  %vm2223_vm5 = vcmp.lt.s32.totalorder %v2220_v20, %v2099_v52  ;;  %vm2011_vm8 = vcmp.eq.f32.partialorder %v10981_v56, %v6465_v44  ;;  %vm2013_vm7 = vcmp.eq.f32.partialorder %v10982_v25, %v6465_v44  ;;  %v11014_v25 = vld [vmem:[#allocation170_spill] sm:$0xff]  ;;  %v11054_v60 = vld [vmem:[#allocation21_spill] sm:$0xff] }
 0x242   : > { %v2222_v36 = vsel %vm2221_vm0, %v2218_v28, %v2097_v15  ;;  %v2224_v21 = vsel %vm2223_vm5, %v2220_v20, %v2099_v52  ;;  %vm10983_vm5 = vcmp.eq.f32.partialorder %v5955_v35, %v6465_v44  ;;  %vm10984_vm10 = vcmp.eq.f32.partialorder %v10966_v22, %v6465_v44 }
 0x243   : > { %vm2225_vm1 = vcmp.lt.s32.totalorder %v2222_v36, %v2101_v53  ;;  %vm2227_vm13 = vcmp.lt.s32.totalorder %v2224_v21, %v2103_v39  ;;  %v2109_v28 = vsel %vm10983_vm5, %v6576_v12, 512  ;;  %v2111_v20 = vsel %vm10984_vm10, %v6579_v42, 512  ;;  %v11050_v12 = vld [vmem:[#allocation15_spill] sm:$0xff] }
 0x244   : > { %v2226_v15 = vsel %vm2225_vm1, %v2222_v36, %v2101_v53  ;;  %v2228_v52 = vsel %vm2227_vm13, %v2224_v21, %v2103_v39  ;;  %v2113_v1 = vsel %vm1985_vm4, %v6582_v51, 512  ;;  %v2115_v53 = vsel %vm1987_vm15, %v10985_v58, 512  ;;  %v10986_v36 = vld [vmem:[#allocation154_spill] sm:$0xff]  ;;  %v10988_v21 = vld [vmem:[#allocation155_spill] sm:$0xff]  ;;  %v10991_v58 = vld [vmem:[#allocation157_spill] sm:$0xff] }
 0x245   : > { %vm2229_vm0 = vcmp.lt.s32.totalorder %v2226_v15, %v2105_v24  ;;  %vm2231_vm3 = vcmp.lt.s32.totalorder %v2228_v52, %v2107_v40  ;;  %vm10987_vm9 = vcmp.eq.f32.partialorder %v5991_v6, %v6465_v44  ;;  %vm10989_vm12 = vcmp.eq.f32.partialorder %v10968_v34, %v6465_v44 }
 0x246   : > { %v2230_v39 = vsel %vm2229_vm0, %v2226_v15, %v2105_v24  ;;  %v2232_v35 = vsel %vm2231_vm3, %v2228_v52, %v2107_v40  ;;  %v2117_v22 = vsel %vm10987_vm9, %v10986_v36, 512  ;;  %v2119_v42 = vsel %vm10989_vm12, %v10988_v21, 512  ;;  %v10992_v15 = vld [vmem:[#allocation158_spill] sm:$0xff]  ;;  %v10994_v52 = vld [vmem:[#allocation159_spill] sm:$0xff] }
 0x247   : > { %vm2233_vm13 = vcmp.lt.s32.totalorder %v2230_v39, %v2109_v28  ;;  %vm2235_vm1 = vcmp.lt.s32.totalorder %v2232_v35, %v2111_v20  ;;  %v2121_v43 = vsel %vm1993_vm14, %v10990_v37, 512  ;;  %v2123_v24 = vsel %vm1995_vm11, %v10991_v58, 512  ;;  %v10997_v58 = vld [vmem:[#allocation161_spill] sm:$0xff] }
 0x248   : > { %v2234_v40 = vsel %vm2233_vm13, %v2230_v39, %v2109_v28  ;;  %v2236_v6 = vsel %vm2235_vm1, %v2232_v35, %v2111_v20  ;;  %vm10993_vm4 = vcmp.eq.f32.partialorder %v10971_v54, %v6465_v44  ;;  %vm10995_vm15 = vcmp.eq.f32.partialorder %v10972_v0, %v6465_v44  ;;  %v10999_v39 = vld [vmem:[#allocation162_spill] sm:$0xff]  ;;  %v11001_v35 = vld [vmem:[#allocation163_spill] sm:$0xff]  ;;  %v11030_v37 = vld [vmem:[#allocation69_spill] sm:$0xff] }
 0x249   : > { %v2125_v34 = vsel %vm10993_vm4, %v10992_v15, 512  ;;  %v2127_v21 = vsel %vm10995_vm15, %v10994_v52, 512  ;;  %vm2237_vm5 = vcmp.lt.s32.totalorder %v2234_v40, %v2113_v1  ;;  %vm2239_vm10 = vcmp.lt.s32.totalorder %v2236_v6, %v2115_v53 }
 0x24a   : > { %v2129_v18 = vsel %vm2001_vm6, %v10996_v32, 512  ;;  %vm10998_vm14 = vcmp.eq.f32.partialorder %v10974_v31, %v6465_v44  ;;  %v2238_v20 = vsel %vm2237_vm5, %v2234_v40, %v2113_v1  ;;  %v2240_v54 = vsel %vm2239_vm10, %v2236_v6, %v2115_v53  ;;  %v11005_v40 = vld [vmem:[#allocation166_spill] sm:$0xff]  ;;  %v11006_v6 = vld [vmem:[#allocation168_spill] sm:$0xff] }
 0x24b   : > { %v2131_v28 = vsel %vm10998_vm14, %v10997_v58, 512  ;;  %vm11000_vm11 = vcmp.eq.f32.partialorder %v10975_v30, %v6465_v44  ;;  %v2135_v52 = vsel %vm2007_vm2, %v11001_v35, 512  ;;  %vm2241_vm0 = vcmp.lt.s32.totalorder %v2238_v20, %v2117_v22  ;;  %v11004_v58 = vld [vmem:[#allocation165_spill] sm:$0xff]  ;;  %v11007_v35 = vld [vmem:[#allocation116_spill] sm:$0xff] }
 0x24c   : > { %v2133_v0 = vsel %vm11000_vm11, %v10999_v39, 512  ;;  %vm2243_vm3 = vcmp.lt.s32.totalorder %v2240_v54, %v2119_v42  ;;  %vm11003_vm6 = vcmp.eq.f32.partialorder %v10978_v14, %v6465_v44  ;;  %v2139_v1 = vsel %vm2011_vm8, %v11004_v58, 512  ;;  %v11009_v14 = vld [vmem:[#allocation169_spill] sm:$0xff]  ;;  %v11018_v32 = vld [vmem:[#allocation120_spill] sm:$0xff] }
 0x24d   : > { %v2137_v31 = vsel %vm11003_vm6, %v11002_v50, 512  ;;  %v2242_v53 = vsel %vm2241_vm0, %v2238_v20, %v2117_v22  ;;  %v2244_v30 = vsel %vm2243_vm3, %v2240_v54, %v2119_v42  ;;  %v2141_v45 = vsel %vm2013_vm7, %v11005_v40, 512  ;;  %v11010_v50 = vld [vmem:[#allocation118_spill] sm:$0xff]  ;;  %v11012_v42 = vld [vmem:[#allocation167_spill] sm:$0xff] }
 0x24e   : > { %vm11008_vm2 = vcmp.eq.f32.partialorder %v11007_v35, %v6465_v44  ;;  %vm2245_vm9 = vcmp.lt.s32.totalorder %v2242_v53, %v2121_v43  ;;  %vm2247_vm12 = vcmp.lt.s32.totalorder %v2244_v30, %v2123_v24  ;;  %vm11011_vm13 = vcmp.eq.f32.partialorder %v11010_v50, %v6465_v44  ;;  %v11015_v40 = vld [vmem:[#allocation119_spill] sm:$0xff]  ;;  %v11020_v50 = vld [vmem:[#allocation81_spill] sm:$0xff] }
 0x24f   : > { %v2143_v39 = vsel %vm11008_vm2, %v11006_v6, 512  ;;  %v2145_v56 = vsel %vm11011_vm13, %v11009_v14, 512  ;;  %v2246_v58 = vsel %vm2245_vm9, %v2242_v53, %v2121_v43  ;;  %v2248_v22 = vsel %vm2247_vm12, %v2244_v30, %v2123_v24  ;;  %v11017_v6 = vld [vmem:[#allocation171_spill] sm:$0xff]  ;;  %v11021_v43 = vld [vmem:[#allocation32_spill] sm:$0xff]  ;;  %v11023_v53 = vld [vmem:[#allocation77_spill] sm:$0xff] }
 0x250   : > { %v11013_v20 = vrot.slane %v11012_v42, 1  ;;  %vm11016_vm8 = vcmp.eq.f32.partialorder %v11015_v40, %v6465_v44  ;;  %vm11019_vm7 = vcmp.eq.f32.partialorder %v11018_v32, %v6465_v44  ;;  %vm2249_vm1 = vcmp.lt.s32.totalorder %v2246_v58, %v2125_v34  ;;  %v11024_v30 = vld [vmem:[#allocation53_spill] sm:$0xff]  ;;  %v11027_v14 = vld [vmem:[#allocation48_spill] sm:$0xff] }
 0x251   : > { %v2147_v35 = vsel %vm11016_vm8, %v11014_v25, 512  ;;  %v2149_v15 = vsel %vm11019_vm7, %v11017_v6, 512  ;;  %vm2251_vm4 = vcmp.lt.s32.totalorder %v2248_v22, %v2127_v21  ;;  %vm11022_vm15 = vcmp.eq.f32.partialorder %v11021_v43, %v6465_v44  ;;  %v11026_v25 = vld [vmem:[#allocation78_spill] sm:$0xff]  ;;  %v11032_v43 = vld [vmem:[#allocation172_spill] sm:$0xff] }
 0x252   : > { %v6985_v54 = vmin.f32 %v11012_v42, %v11013_v20  ;;  %v2151_v24 = vsel %vm11022_vm15, %v11020_v50, 512  ;;  %vm11025_vm5 = vcmp.eq.f32.partialorder %v11024_v30, %v6465_v44  ;;  %v2250_v20 = vsel %vm2249_vm1, %v2246_v58, %v2125_v34  ;;  %v11029_v6 = vld [vmem:[#allocation74_spill] sm:$0xff]  ;;  %v11033_v50 = vld [vmem:[#allocation68_spill] sm:$0xff]  ;;  %v11036_v34 = vld [vmem:[#allocation3_spill] sm:$0xff] }
 0x253   : > { %v2153_v42 = vsel %vm11025_vm5, %v11023_v53, 512  ;;  %v2252_v40 = vsel %vm2251_vm4, %v2248_v22, %v2127_v21  ;;  %vm11028_vm10 = vcmp.eq.f32.partialorder %v11027_v14, %v6465_v44  ;;  %vm11031_vm14 = vcmp.eq.f32.partialorder %v11030_v37, %v6465_v44  ;;  %v11035_v21 = vld [vmem:[#allocation2_spill] sm:$0xff]  ;;  %v11037_v37 = vld [vmem:[#allocation4_spill] sm:$0xff] }
 0x254   : > { %v2155_v32 = vsel %vm11028_vm10, %v11026_v25, 512  ;;  %v2157_v36 = vsel %vm11031_vm14, %v11029_v6, 512  ;;  %vm2253_vm11 = vcmp.lt.s32.totalorder %v2250_v20, %v2129_v18  ;;  %vm2255_vm0 = vcmp.lt.s32.totalorder %v2252_v40, %v2131_v28  ;;  %v11038_v6 = vld [vmem:[#allocation5_spill] sm:$0xff]  ;;  %v11046_v25 = vld [vmem:[#allocation12_spill] sm:$0xff] }
 0x255   : > { %vm11034_vm3 = vcmp.eq.f32.partialorder %v11033_v50, %v6465_v44  ;;  %v2254_v53 = vsel %vm2253_vm11, %v2250_v20, %v2129_v18  ;;  %v2256_v58 = vsel %vm2255_vm0, %v2252_v40, %v2131_v28  ;;  %vm1906_vm6 = vcmp.eq.f32.partialorder %v11035_v21, %v6985_v54  ;;  %v11039_v44 = vld [vmem:[#allocation6_spill] sm:$0xff]  ;;  %v11040_v18 = vld [vmem:[#allocation7_spill] sm:$0xff]  ;;  %v11041_v28 = vld [vmem:[#allocation8_spill] sm:$0xff] }
 0x256   : > { %v2159_v30 = vsel %vm11034_vm3, %v11032_v43, 512  ;;  %vm2257_vm2 = vcmp.lt.s32.totalorder %v2254_v53, %v2133_v0  ;;  %vm2259_vm9 = vcmp.lt.s32.totalorder %v2256_v58, %v2135_v52  ;;  %vm1908_vm12 = vcmp.eq.f32.partialorder %v11036_v34, %v6985_v54  ;;  %v11042_v40 = vld [vmem:[#allocation9_spill] sm:$0xff]  ;;  %v11061_v21 = vld [vmem:[#allocation130_spill] sm:$0xff] }
 0x257   : > { %vm1910_vm13 = vcmp.eq.f32.partialorder %v11037_v37, %v6985_v54  ;;  %v2258_v14 = vsel %vm2257_vm2, %v2254_v53, %v2133_v0  ;;  %v2260_v22 = vsel %vm2259_vm9, %v2256_v58, %v2135_v52  ;;  %vm1912_vm8 = vcmp.eq.f32.partialorder %v11038_v6, %v6985_v54  ;;  %v11043_v52 = vld [vmem:[#allocation54_spill] sm:$0xff]  ;;  %v11044_v0 = vld [vmem:[#allocation61_spill] sm:$0xff] }
 0x258   : > { %vm1914_vm7 = vcmp.eq.f32.partialorder %v11039_v44, %v6985_v54  ;;  %vm2261_vm1 = vcmp.lt.s32.totalorder %v2258_v14, %v2137_v31  ;;  %vm2263_vm4 = vcmp.lt.s32.totalorder %v2260_v22, %v2139_v1  ;;  %vm1916_vm15 = vcmp.eq.f32.partialorder %v11040_v18, %v6985_v54  ;;  %v11045_v53 = vld [vmem:[#allocation57_spill] sm:$0xff]  ;;  %v11063_v6 = vld [vmem:[#allocation26_spill] sm:$0xff] }
 0x259   : > { %v2262_v50 = vsel %vm2261_vm1, %v2258_v14, %v2137_v31  ;;  %v2264_v20 = vsel %vm2263_vm4, %v2260_v22, %v2139_v1  ;;  %v11047_v31 = vld [vmem:[#allocation85_spill] sm:$0xff]  ;;  %v11049_v14 = vld [vmem:[#allocation14_spill] sm:$0xff]  ;;  %v2038_v47 = vsel %vm1910_vm13, %v11060_v2, 512 }
 0x25a   : > { %vm2265_vm11 = vcmp.lt.s32.totalorder %v2262_v50, %v2141_v45  ;;  %vm2267_vm0 = vcmp.lt.s32.totalorder %v2264_v20, %v2143_v39  ;;  %v11048_v1 = vld [vmem:[#allocation73_spill] sm:$0xff] }
 0x25b   : > { %v2266_v58 = vsel %vm2265_vm11, %v2262_v50, %v2141_v45  ;;  %v2268_v43 = vsel %vm2267_vm0, %v2264_v20, %v2143_v39  ;;  %vm1932_vm14 = vcmp.eq.f32.partialorder %v11048_v1, %v6985_v54  ;;  %v11051_v39 = vld [vmem:[#allocation18_spill] sm:$0xff]  ;;  %v11052_v45 = vld [vmem:[#allocation17_spill] sm:$0xff]  ;;  %v11053_v50 = vld [vmem:[#allocation20_spill] sm:$0xff] }
 0x25c   : > { %vm2269_vm4 = vcmp.lt.s32.totalorder %v2266_v58, %v2145_v56  ;;  %vm2271_vm10 = vcmp.lt.s32.totalorder %v2268_v43, %v2147_v35  ;;  %vm1938_vm0 = vcmp.eq.f32.partialorder %v11051_v39, %v6985_v54  ;;  %vm1940_vm1 = vcmp.eq.f32.partialorder %v11052_v45, %v6985_v54  ;;  %v11062_v37 = vld [vmem:[#allocation25_spill] sm:$0xff] }
 0x25d   : > { %v2270_v22 = vsel %vm2269_vm4, %v2266_v58, %v2145_v56  ;;  %v2272_v51 = vsel %vm2271_vm10, %v2268_v43, %v2147_v35  ;;  %vm1942_vm3 = vcmp.eq.f32.partialorder %v11053_v50, %v6985_v54  ;;  %vm1944_vm4 = vcmp.eq.f32.partialorder %v11054_v60, %v6985_v54  ;;  %v11055_v56 = vld [vmem:[#allocation22_spill] sm:$0xff]  ;;  %v11057_v58 = vld [vmem:[#allocation128_spill] sm:$0xff] }
 0x25e   : > { %vm2273_vm9 = vcmp.lt.s32.totalorder %v2270_v22, %v2149_v15  ;;  %vm2275_vm2 = vcmp.lt.s32.totalorder %v2272_v51, %v2151_v24  ;;  %vm1946_vm10 = vcmp.eq.f32.partialorder %v11055_v56, %v6985_v54  ;;  %v11056_v35 = vld [vmem:[#allocation126_spill] sm:$0xff]  ;;  %v2036_v61 = vsel %vm1908_vm12, %v11057_v58, 512 }
 0x25f   : > { %v2274_v20 = vsel %vm2273_vm9, %v2270_v22, %v2149_v15  ;;  %v2276_v62 = vsel %vm2275_vm2, %v2272_v51, %v2151_v24  ;;  %v2034_v43 = vsel %vm1906_vm6, %v11056_v35, 512  ;;  %v11058_v24 = vld [vmem:[#allocation23_spill] sm:$0xff]  ;;  %v11059_v22 = vld [vmem:[#allocation24_spill] sm:$0xff]  ;;  %v2040_v35 = vsel %vm1912_vm8, %v11061_v21, 512 }
 0x260   : > { %vm2277_vm11 = vcmp.lt.s32.totalorder %v2274_v20, %v2153_v42  ;;  %vm2279_vm5 = vcmp.lt.s32.totalorder %v2276_v62, %v2155_v32  ;;  %vm1948_vm2 = vcmp.eq.f32.partialorder %v11058_v24, %v6985_v54  ;;  %vm1950_vm9 = vcmp.eq.f32.partialorder %v11059_v22, %v6985_v54 }
 0x261   : > { %v2278_v15 = vsel %vm2277_vm11, %v2274_v20, %v2153_v42  ;;  %v2280_v51 = vsel %vm2279_vm5, %v2276_v62, %v2155_v32  ;;  %v2042_v62 = vsel %vm1914_vm7, %v6454_v38, 512  ;;  %v2044_v42 = vsel %vm1916_vm15, %v6457_v63, 512 }
 0x262   : > { %vm2281_vm6 = vcmp.lt.s32.totalorder %v2278_v15, %v2157_v36  ;;  %vm2283_vm12 = vcmp.lt.s32.totalorder %v2280_v51, %v2159_v30  ;;  %vm1952_vm13 = vcmp.eq.f32.partialorder %v11062_v37, %v6985_v54  ;;  %vm1954_vm8 = vcmp.eq.f32.partialorder %v11063_v6, %v6985_v54 }
 0x263   : > { %v2282_v32 = vsel %vm2281_vm6, %v2278_v15, %v2157_v36  ;;  %v2284_v34 = vsel %vm2283_vm12, %v2280_v51, %v2159_v30  ;;  %vm11064_vm5 = vcmp.eq.f32.partialorder %v11041_v28, %v6985_v54  ;;  %vm11065_vm7 = vcmp.eq.f32.partialorder %v11042_v40, %v6985_v54  ;;  %v11069_v40 = vld [vmem:[#allocation27_spill] sm:$0xff]  ;;  %v11070_v15 = vld [vmem:[#allocation29_spill] sm:$0xff] }
 0x264   : > { %v2046_v20 = vsel %vm11064_vm5, %v6460_v11, 512  ;;  %v2048_v44 = vsel %vm11065_vm7, %v6463_v55, 512  ;;  %vm2285_vm11 = vcmp.lt.s32.totalorder %v2282_v32, %v2284_v34  ;;  %vm11066_vm15 = vcmp.eq.f32.partialorder %v11043_v52, %v6985_v54 }
 0x265   : > { %v2050_v36 = vsel %vm11066_vm15, %v6468_v5, 512  ;;  %vm11067_vm6 = vcmp.eq.f32.partialorder %v11044_v0, %v6985_v54  ;;  %vm11068_vm12 = vcmp.eq.f32.partialorder %v11045_v53, %v6985_v54  ;;  %v7109_v28 = vsel %vm2285_vm11, %v2282_v32, %v2284_v34  ;;  %v11076_v32 = vld [vmem:[#allocation30_spill] sm:$0xff] }
 0x266   : > { %v2052_v30 = vsel %vm11067_vm6, %v6471_v23, 512  ;;  %v2054_v18 = vsel %vm11068_vm12, %v6474_v48, 512  ;;  %vm1956_vm5 = vcmp.eq.f32.partialorder %v11069_v40, %v6985_v54  ;;  %vm11071_vm15 = vcmp.eq.f32.partialorder %v11046_v25, %v6985_v54  ;;  %v11101_v40 = vld [vmem:[#allocation139_spill] sm:$0xff] }
 0x267   : > { %v2056_v52 = vsel %vm11071_vm15, %v6477_v33, 512  ;;  %vm11072_vm6 = vcmp.eq.f32.partialorder %v11047_v31, %v6985_v54  ;;  %v2060_v53 = vsel %vm1932_vm14, %v6483_v16, 512  ;;  %vm11073_vm11 = vcmp.eq.f32.partialorder %v11049_v14, %v6985_v54  ;;  %v11077_v14 = vld [vmem:[#allocation34_spill] sm:$0xff] }
 0x268   : > { %v2058_v0 = vsel %vm11072_vm6, %v6480_v10, 512  ;;  %v7131_v51 = vsel %vm11073_vm11, %v6486_v3, 512  ;;  %vm11074_vm12 = vcmp.eq.f32.partialorder %v11050_v12, %v6985_v54  ;;  %v7143_v31 = vsel %vm1938_vm0, %v6492_v19, 512 }
 0x269   : > { %v7137_v25 = vsel %vm11074_vm12, %v6489_v8, 512  ;;  %vm11075_vm15 = vcmask 523264   ;;  %vm1960_vm14 = vcmp.eq.f32.partialorder %v11076_v32, %v6985_v54  ;;  %vm1962_vm6 = vcmp.eq.f32.partialorder %v11077_v14, %v6985_v54 }
 0x26a   : > { %v2296_v1 = vsel %vm11075_vm15, %v2034_v43, 2147483647  ;;  %vm11078_vm11 = vmmov %vm11075_vm15  ;;  %v7157_v39 = vsel %vm1940_vm1, %v6495_v46, 512  ;;  %v7163_v43 = vsel %vm1942_vm3, %v6498_v49, 512  ;;  %v7175_v50 = vsel %vm1944_vm4, %v6501_v57, 512 }
 0x26b   : > { %v2297_v34 = vsel %vm11078_vm11, %v2036_v61, 2147483647  ;;  %vm11079_vm7 = vmmov %vm11078_vm11  ;;  %v11081_v61 = vld [vmem:[#allocation43_spill] sm:$0xff]  ;;  %v7181_v49 = vsel %vm1946_vm10, %v6504_v13, 512  ;;  %v7193_v56 = vsel %vm1948_vm2, %v6507_v4, 512  ;;  %v7211_v22 = vsel %vm1952_vm13, %v6531_v17, 512 }
 0x26c   : > { %v2298_v12 = vsel %vm11079_vm7, %v2038_v47, 2147483647  ;;  %vm11080_vm12 = vmmov %vm11079_vm7  ;;  %vm1964_vm11 = vcmp.eq.f32.partialorder %v11081_v61, %v6985_v54  ;;  %v11082_v47 = vld [vmem:[#allocation49_spill] sm:$0xff]  ;;  %v7229_v6 = vsel %vm1956_vm5, %v6537_v29, 512  ;;  %v11144_v17 = vld [vmem:[#allocation154_spill] sm:$0xff] }
 0x26d   : > { %v2301_v8 = vsel %vm11080_vm12, %v2040_v35, 2147483647  ;;  %vm2299_vm0 = vcmp.lt.s32.totalorder %v2296_v1, %v2298_v12  ;;  %vm11083_vm12 = vmmov %vm11079_vm7 }
 0x26e   : > { %vm2302_vm15 = vcmp.lt.s32.totalorder %v2297_v34, %v2301_v8  ;;  %v2300_v35 = vsel %vm2299_vm0, %v2296_v1, %v2298_v12  ;;  %v2304_v45 = vsel %vm11083_vm12, %v2042_v62, 2147483647  ;;  %vm11084_vm1 = vmmov %vm11079_vm7  ;;  %v11086_v62 = vld [vmem:[#allocation56_spill] sm:$0xff]  ;;  %v7199_v12 = vsel %vm1950_vm9, %v6528_v27, 512 }
 0x26f   : > { %v2303_v19 = vsel %vm2302_vm15, %v2297_v34, %v2301_v8  ;;  %v2307_v46 = vsel %vm11084_vm1, %v2044_v42, 2147483647  ;;  %vm2305_vm3 = vcmp.lt.s32.totalorder %v2300_v35, %v2304_v45  ;;  %v11085_v8 = vld [vmem:[#allocation50_spill] sm:$0xff]  ;;  %vm1970_vm15 = vcmp.eq.f32.partialorder %v11086_v62, %v6985_v54  ;;  %vm11087_vm12 = vmmov %vm11084_vm1 }
 0x270   : > { %vm2308_vm7 = vcmp.lt.s32.totalorder %v2303_v19, %v2307_v46  ;;  %vm1968_vm0 = vcmp.eq.f32.partialorder %v11085_v8, %v6985_v54  ;;  %v2306_v42 = vsel %vm2305_vm3, %v2300_v35, %v2304_v45  ;;  %v2310_v60 = vsel %vm11087_vm12, %v2046_v20, 2147483647  ;;  %vm11088_vm4 = vmmov %vm11084_vm1  ;;  %v4700_v62 = vld [vmem:[%s10053_s3 + $0x4] ss:$16 sps:$4 sm:$0xff]  }
 0x271   : > { %v2309_v1 = vsel %vm2308_vm7, %v2303_v19, %v2307_v46  ;;  %v2313_v34 = vsel %vm11088_vm4, %v2048_v44, 2147483647  ;;  %vm2311_vm10 = vcmp.lt.s32.totalorder %v2306_v42, %v2310_v60  ;;  %v11089_v19 = vld [vmem:[#allocation38_spill] sm:$0xff]  ;;  %vm11091_vm12 = vmmov %vm11088_vm4  ;;  %v7217_v45 = vsel %vm1954_vm8, %v6534_v26, 512  ;;  %3107 = vmatprep.mubr.bf16.mxu1 %v4700_v62 }
 0x272   : > { %vm2314_vm1 = vcmp.lt.s32.totalorder %v2309_v1, %v2313_v34  ;;  %vm1972_vm7 = vcmp.eq.f32.partialorder %v11089_v19, %v6985_v54  ;;  %v11090_v46 = vld [vmem:[#allocation42_spill] sm:$0xff]  ;;  %v2312_v20 = vsel %vm2311_vm10, %v2306_v42, %v2310_v60  ;;  %v2316_v24 = vsel %vm11091_vm12, %v2050_v36, 2147483647  ;;  %vm11092_vm2 = vmmov %vm11088_vm4  ;;  %v11093_v42 = vld [vmem:[#allocation36_spill] sm:$0xff] }
 0x273   : > { %vm1974_vm3 = vcmp.eq.f32.partialorder %v11090_v46, %v6985_v54  ;;  %v2315_v44 = vsel %vm2314_vm1, %v2309_v1, %v2313_v34  ;;  %v2319_v35 = vsel %vm11092_vm2, %v2052_v30, 2147483647  ;;  %vm2317_vm9 = vcmp.lt.s32.totalorder %v2312_v20, %v2316_v24  ;;  %v11094_v36 = vld [vmem:[#allocation40_spill] sm:$0xff]  ;;  %vm11095_vm12 = vmmov %vm11092_vm2 }
 0x274   : > { %vm2320_vm4 = vcmp.lt.s32.totalorder %v2315_v44, %v2319_v35  ;;  %vm1976_vm10 = vcmp.eq.f32.partialorder %v11093_v42, %v6985_v54  ;;  %v2318_v30 = vsel %vm2317_vm9, %v2312_v20, %v2316_v24  ;;  %v2322_v37 = vsel %vm11095_vm12, %v2054_v18, 2147483647  ;;  %vm11096_vm13 = vmmov %vm11092_vm2  ;;  %v11098_v20 = vld [vmem:[#allocation60_spill] sm:$0xff] }
 0x275   : > { %v2321_v1 = vsel %vm2320_vm4, %v2315_v44, %v2319_v35  ;;  %v2325_v60 = vsel %vm11096_vm13, %v2056_v52, 2147483647  ;;  %vm11097_vm8 = vcmp.eq.f32.partialorder %v11070_v15, %v6985_v54  ;;  %vm2323_vm2 = vcmp.lt.s32.totalorder %v2318_v30, %v2322_v37  ;;  %vm11099_vm4 = vmmov %vm11095_vm12  ;;  %v11102_v15 = vld [vmem:[#allocation140_spill] sm:$0xff] }
 0x276   : > { %v7235_v34 = vsel %vm11097_vm8, %v6540_v7, 512  ;;  %vm2326_vm1 = vcmp.lt.s32.totalorder %v2321_v1, %v2325_v60  ;;  %vm1980_vm9 = vcmp.eq.f32.partialorder %v11098_v20, %v6985_v54  ;;  %v2324_v18 = vsel %vm2323_vm2, %v2318_v30, %v2322_v37  ;;  %vm11100_vm12 = vmmov %vm11099_vm4  ;;  %v11103_v30 = vld [vmem:[#allocation66_spill] sm:$0xff] }
 0x277   : > { %v2327_v44 = vsel %vm2326_vm1, %v2321_v1, %v2325_v60  ;;  %v2328_v52 = vsel %vm11099_vm4, %v2058_v0, 2147483647  ;;  %v2331_v24 = vsel %vm11100_vm12, %v2060_v53, 2147483647  ;;  %v7245_v35 = vsel %vm1960_vm14, %v11101_v40, 512  ;;  %v11104_v0 = vld [vmem:[#allocation59_spill] sm:$0xff]  ;;  %vm11105_vm2 = vmmov %vm11099_vm4 }
 0x278   : > { %v7251_v7 = vsel %vm1962_vm6, %v11102_v15, 512  ;;  %vm2329_vm5 = vcmp.lt.s32.totalorder %v2324_v18, %v2328_v52  ;;  %vm2332_vm13 = vcmp.lt.s32.totalorder %v2327_v44, %v2331_v24  ;;  %vm1982_vm1 = vcmp.eq.f32.partialorder %v11103_v30, %v6985_v54  ;;  %vm11106_vm14 = vmmov %vm11105_vm2  ;;  %v11107_v60 = vld [vmem:[#allocation141_spill] sm:$0xff] }
 0x279   : > { %vm1984_vm8 = vcmp.eq.f32.partialorder %v11104_v0, %v6985_v54  ;;  %v2330_v53 = vsel %vm2329_vm5, %v2324_v18, %v2328_v52  ;;  %v2333_v1 = vsel %vm2332_vm13, %v2327_v44, %v2331_v24  ;;  %v2334_v32 = vsel %vm11105_vm2, %v7131_v51, 2147483647  ;;  %v11109_v18 = vld [vmem:[#allocation55_spill] sm:$0xff]  ;;  %vm11110_vm13 = vmmov %vm11105_vm2  ;;  %v11111_v24 = vld [vmem:[#allocation45_spill] sm:$0xff] }
 0x27a   : > { %v2337_v37 = vsel %vm11106_vm14, %v7137_v25, 2147483647  ;;  %v7265_v14 = vsel %vm1964_vm11, %v11107_v60, 512  ;;  %vm11108_vm6 = vcmp.eq.f32.partialorder %v11082_v47, %v6985_v54  ;;  %vm2335_vm4 = vcmp.lt.s32.totalorder %v2330_v53, %v2334_v32  ;;  %v11128_v40 = vld [vmem:[#allocation65_spill] sm:$0xff]  ;;  %v11152_v0 = vld [vmem:[#allocation156_spill] sm:$0xff] }
 0x27b   : > { %v7271_v15 = vsel %vm11108_vm6, %v6552_v41, 512  ;;  %vm2338_vm12 = vcmp.lt.s32.totalorder %v2333_v1, %v2337_v37  ;;  %vm1986_vm5 = vcmp.eq.f32.partialorder %v11109_v18, %v6985_v54  ;;  %v2336_v51 = vsel %vm2335_vm4, %v2330_v53, %v2334_v32  ;;  %v11115_v32 = vld [vmem:[#allocation145_spill] sm:$0xff]  ;;  %v11121_v41 = vld [vmem:[#allocation148_spill] sm:$0xff] }
 0x27c   : > { %v2339_v44 = vsel %vm2338_vm12, %v2333_v1, %v2337_v37  ;;  %v2340_v25 = vsel %vm11110_vm13, %v7143_v31, 2147483647  ;;  %v2343_v61 = vsel %vm11105_vm2, %v7157_v39, 2147483647  ;;  %v7283_v47 = vsel %vm1968_vm0, %v6555_v59, 512  ;;  %v11112_v31 = vld [vmem:[#allocation62_spill] sm:$0xff]  ;;  %vm11113_vm12 = vmmov %vm11105_vm2 }
 0x27d   : > { %v7289_v52 = vsel %vm1970_vm15, %v6558_v9, 512  ;;  %vm2341_vm11 = vcmp.lt.s32.totalorder %v2336_v51, %v2340_v25  ;;  %vm2344_vm14 = vcmp.lt.s32.totalorder %v2339_v44, %v2343_v61  ;;  %vm1988_vm6 = vcmp.eq.f32.partialorder %v11111_v24, %v6985_v54  ;;  %vm11114_vm0 = vmmov %vm11105_vm2  ;;  %v11116_v59 = vld [vmem:[#allocation146_spill] sm:$0xff] }
 0x27e   : > { %vm1990_vm4 = vcmp.eq.f32.partialorder %v11112_v31, %v6985_v54  ;;  %v2342_v39 = vsel %vm2341_vm11, %v2336_v51, %v2340_v25  ;;  %v2345_v53 = vsel %vm2344_vm14, %v2339_v44, %v2343_v61  ;;  %v2346_v8 = vsel %vm11113_vm12, %v7163_v43, 2147483647  ;;  %v11117_v43 = vld [vmem:[#allocation52_spill] sm:$0xff]  ;;  %vm11118_vm11 = vmmov %vm11114_vm0  ;;  %v11120_v61 = vld [vmem:[#allocation147_spill] sm:$0xff] }
 0x27f   : > { %v2349_v1 = vsel %vm11114_vm0, %v7175_v50, 2147483647  ;;  %v7306_v37 = vsel %vm1972_vm7, %v11115_v32, 512  ;;  %v7312_v51 = vsel %vm1974_vm3, %v11116_v59, 512  ;;  %vm2347_vm15 = vcmp.lt.s32.totalorder %v2342_v39, %v2346_v8  ;;  %vm11119_vm14 = vmmov %vm11114_vm0 }
 0x280   : > { %vm2350_vm13 = vcmp.lt.s32.totalorder %v2345_v53, %v2349_v1  ;;  %vm1992_vm2 = vcmp.eq.f32.partialorder %v11117_v43, %v6985_v54  ;;  %v2348_v50 = vsel %vm2347_vm15, %v2342_v39, %v2346_v8  ;;  %v2352_v25 = vsel %vm11118_vm11, %v7181_v49, 2147483647  ;;  %v11123_v49 = vld [vmem:[#allocation58_spill] sm:$0xff]  ;;  %v11153_v43 = vld [vmem:[#allocation157_spill] sm:$0xff] }
 0x281   : > { %v2351_v44 = vsel %vm2350_vm13, %v2345_v53, %v2349_v1  ;;  %v2355_v19 = vsel %vm11119_vm14, %v7193_v56, 2147483647  ;;  %v7324_v46 = vsel %vm1976_vm10, %v11120_v61, 512  ;;  %vm11122_vm7 = vcmp.eq.f32.partialorder %v11094_v36, %v6985_v54  ;;  %v11124_v56 = vld [vmem:[#allocation76_spill] sm:$0xff]  ;;  %vm11125_vm13 = vmmov %vm11118_vm11  ;;  %v11127_v1 = vld [vmem:[#allocation149_spill] sm:$0xff] }
 0x282   : > { %v7330_v60 = vsel %vm11122_vm7, %v11121_v41, 512  ;;  %vm2353_vm3 = vcmp.lt.s32.totalorder %v2348_v50, %v2352_v25  ;;  %vm2356_vm12 = vcmp.lt.s32.totalorder %v2351_v44, %v2355_v19  ;;  %vm1994_vm0 = vcmp.eq.f32.partialorder %v11123_v49, %v6985_v54  ;;  %vm11126_vm10 = vmmov %vm11118_vm11 }
 0x283   : > { %vm1996_vm15 = vcmp.eq.f32.partialorder %v11124_v56, %v6985_v54  ;;  %v2354_v39 = vsel %vm2353_vm3, %v2348_v50, %v2352_v25  ;;  %v2357_v53 = vsel %vm2356_vm12, %v2351_v44, %v2355_v19  ;;  %v2358_v42 = vsel %vm11125_vm13, %v7199_v12, 2147483647  ;;  %vm11129_vm3 = vmmov %vm11126_vm10  ;;  %v11131_v25 = vld [vmem:[#allocation150_spill] sm:$0xff]  ;;  %v11132_v19 = vld [vmem:[#allocation151_spill] sm:$0xff] }
 0x284   : > { %v2361_v8 = vsel %vm11126_vm10, %v7211_v22, 2147483647  ;;  %v2287_v36 = vrot.slane %v7109_v28, 4  ;;  %v7345_v62 = vsel %vm1980_vm9, %v11127_v1, 512  ;;  %vm2359_vm11 = vcmp.lt.s32.totalorder %v2354_v39, %v2358_v42  ;;  %vm11130_vm12 = vmmov %vm11129_vm3 }
 0x285   : > { %vm2362_vm14 = vcmp.lt.s32.totalorder %v2357_v53, %v2361_v8  ;;  %vm1998_vm7 = vcmp.eq.f32.partialorder %v11128_v40, %v6985_v54  ;;  %v2360_v50 = vsel %vm2359_vm11, %v2354_v39, %v2358_v42  ;;  %v2364_v12 = vsel %vm11129_vm3, %v7217_v45, 2147483647  ;;  %v11133_v39 = vld [vmem:[#allocation72_spill] sm:$0xff]  ;;  %v11134_v45 = vld [vmem:[#allocation71_spill] sm:$0xff] }
 0x286   : > { %v2363_v44 = vsel %vm2362_vm14, %v2357_v53, %v2361_v8  ;;  %v2367_v22 = vsel %vm11130_vm12, %v7229_v6, 2147483647  ;;  %v7357_v20 = vsel %vm1982_vm1, %v11131_v25, 512  ;;  %v7363_v29 = vsel %vm1984_vm8, %v11132_v19, 512  ;;  %vm11135_vm14 = vmmov %vm11129_vm3  ;;  %v11139_v8 = vld [vmem:[#allocation152_spill] sm:$0xff] }
 0x287   : > { %vm2365_vm9 = vcmp.lt.s32.totalorder %v2360_v50, %v2364_v12  ;;  %vm2368_vm13 = vcmp.lt.s32.totalorder %v2363_v44, %v2367_v22  ;;  %vm2000_vm10 = vcmp.eq.f32.partialorder %v11133_v39, %v6985_v54  ;;  %vm2002_vm11 = vcmp.eq.f32.partialorder %v11134_v45, %v6985_v54  ;;  %vm11136_vm1 = vmmov %vm11129_vm3  ;;  %v11163_v40 = vld [vmem:[#allocation160_spill] sm:$0xff]  ;;  %v11170_v45 = vld [vmem:[#allocation161_spill] sm:$0xff] }
 0x288   : > { %v2366_v6 = vsel %vm2365_vm9, %v2360_v50, %v2364_v12  ;;  %v2369_v53 = vsel %vm2368_vm13, %v2363_v44, %v2367_v22  ;;  %v2370_v30 = vsel %vm11135_vm14, %v7235_v34, 2147483647  ;;  %v2373_v42 = vsel %vm11136_vm1, %v7245_v35, 2147483647  ;;  %v11140_v50 = vld [vmem:[#allocation75_spill] sm:$0xff]  ;;  %vm11141_vm13 = vmmov %vm11136_vm1  ;;  %v11143_v22 = vld [vmem:[#allocation153_spill] sm:$0xff] }
 0x289   : > { %vm7374_vm3 = vcmp.lt.s32.totalorder %v7109_v28, %v2287_v36  ;;  %v7382_v26 = vsel %vm1986_vm5, %v11139_v8, 512  ;;  %vm2371_vm8 = vcmp.lt.s32.totalorder %v2366_v6, %v2370_v30  ;;  %vm2374_vm12 = vcmp.lt.s32.totalorder %v2369_v53, %v2373_v42  ;;  %vm11142_vm14 = vmmov %vm11136_vm1 }
 0x28a   : > { %vm2004_vm9 = vcmp.eq.f32.partialorder %v11140_v50, %v6985_v54  ;;  %v2372_v34 = vsel %vm2371_vm8, %v2366_v6, %v2370_v30  ;;  %v2375_v44 = vsel %vm2374_vm12, %v2369_v53, %v2373_v42  ;;  %v2376_v35 = vsel %vm11141_vm13, %v7251_v7, 2147483647  ;;  %v11145_v6 = vld [vmem:[#allocation84_spill] sm:$0xff]  ;;  %v11146_v7 = vld [vmem:[#allocation90_spill] sm:$0xff]  ;;  %v11148_v42 = vld [vmem:[#allocation155_spill] sm:$0xff] }
 0x28b   : > { %v2379_v12 = vsel %vm11142_vm14, %v7265_v14, 2147483647  ;;  %v2116_v18 = vsel %vm1988_vm6, %v11143_v22, 512  ;;  %v7398_v8 = vsel %vm1990_vm4, %v11144_v17, 512  ;;  %vm2377_vm5 = vcmp.lt.s32.totalorder %v2372_v34, %v2376_v35  ;;  %vm11147_vm6 = vmmov %vm11141_vm13  ;;  %v11174_v22 = vld [vmem:[#allocation163_spill] sm:$0xff] }
 0x28c   : > { %vm2380_vm1 = vcmp.lt.s32.totalorder %v2375_v44, %v2379_v12  ;;  %vm2006_vm8 = vcmp.eq.f32.partialorder %v11145_v6, %v6985_v54  ;;  %vm2008_vm12 = vcmp.eq.f32.partialorder %v11146_v7, %v6985_v54  ;;  %v2378_v14 = vsel %vm2377_vm5, %v2372_v34, %v2376_v35  ;;  %v11149_v34 = vld [vmem:[#allocation95_spill] sm:$0xff]  ;;  %v11178_v7 = vld [vmem:[#allocation164_spill] sm:$0xff] }
 0x28d   : > { %v2381_v53 = vsel %vm2380_vm1, %v2375_v44, %v2379_v12  ;;  %v2382_v24 = vsel %vm11141_vm13, %v7271_v15, 2147483647  ;;  %v2385_v30 = vsel %vm11147_vm6, %v7283_v47, 2147483647  ;;  %v2289_v31 = vsel %vm7374_vm3, %v7109_v28, %v2287_v36  ;;  %vm11150_vm1 = vmmov %vm11147_vm6  ;;  %v11154_v12 = vld [vmem:[#allocation100_spill] sm:$0xff] }
 0x28e   : > { %v2120_v17 = vsel %vm1992_vm2, %v11148_v42, 512  ;;  %vm2383_vm4 = vcmp.lt.s32.totalorder %v2378_v14, %v2382_v24  ;;  %vm2386_vm14 = vcmp.lt.s32.totalorder %v2381_v53, %v2385_v30  ;;  %vm2010_vm5 = vcmp.eq.f32.partialorder %v11149_v34, %v6985_v54  ;;  %vm11151_vm13 = vmmov %vm11150_vm1 }
 0x28f   : > { %v2384_v44 = vsel %vm2383_vm4, %v2378_v14, %v2382_v24  ;;  %v2387_v35 = vsel %vm2386_vm14, %v2381_v53, %v2385_v30  ;;  %v2388_v15 = vsel %vm11150_vm1, %v7289_v52, 2147483647  ;;  %v2391_v47 = vsel %vm11151_vm13, %v7306_v37, 2147483647  ;;  %v11155_v52 = vld [vmem:[#allocation105_spill] sm:$0xff]  ;;  %vm11156_vm14 = vmmov %vm11150_vm1  ;;  %v11158_v30 = vld [vmem:[#allocation158_spill] sm:$0xff] }
 0x290   : > { %v2122_v28 = vsel %vm1994_vm0, %v11152_v0, 512  ;;  %v2124_v36 = vsel %vm1996_vm15, %v11153_v43, 512  ;;  %vm2389_vm2 = vcmp.lt.s32.totalorder %v2384_v44, %v2388_v15  ;;  %vm2392_vm3 = vcmp.lt.s32.totalorder %v2387_v35, %v2391_v47  ;;  %vm11157_vm0 = vmmov %vm11150_vm1  ;;  %v11159_v43 = vld [vmem:[#allocation109_spill] sm:$0xff] }
 0x291   : > { %vm2012_vm6 = vcmp.eq.f32.partialorder %v11154_v12, %v6985_v54  ;;  %vm2014_vm4 = vcmp.eq.f32.partialorder %v11155_v52, %v6985_v54  ;;  %v2390_v14 = vsel %vm2389_vm2, %v2384_v44, %v2388_v15  ;;  %v2393_v37 = vsel %vm2392_vm3, %v2387_v35, %v2391_v47  ;;  %vm11160_vm2 = vmmov %vm11157_vm0 }
 0x292   : > { %v2394_v53 = vsel %vm11156_vm14, %v7312_v51, 2147483647  ;;  %v2397_v49 = vsel %vm11157_vm0, %v7324_v46, 2147483647  ;;  %v2290_v24 = vrot.slane %v2289_v31, 2  ;;  %v2126_v56 = vsel %vm1998_vm7, %v11158_v30, 512  ;;  %vm11161_vm3 = vmmov %vm11157_vm0 }
 0x293   : > { %vm2395_vm15 = vcmp.lt.s32.totalorder %v2390_v14, %v2394_v53  ;;  %vm2398_vm1 = vcmp.lt.s32.totalorder %v2393_v37, %v2397_v49  ;;  %vm2016_vm13 = vcmp.eq.f32.partialorder %v11159_v43, %v6985_v54  ;;  %v2400_v35 = vsel %vm11160_vm2, %v7330_v60, 2147483647  ;;  %v11162_v46 = vld [vmem:[#allocation159_spill] sm:$0xff] }
 0x294   : > { %v2396_v0 = vsel %vm2395_vm15, %v2390_v14, %v2394_v53  ;;  %v2399_v44 = vsel %vm2398_vm1, %v2393_v37, %v2397_v49  ;;  %v2403_v51 = vsel %vm11161_vm3, %v7345_v62, 2147483647  ;;  %v2128_v15 = vsel %vm2000_vm10, %v11162_v46, 512  ;;  %v11164_v14 = vld [vmem:[#allocation110_spill] sm:$0xff]  ;;  %v11165_v60 = vld [vmem:[#allocation111_spill] sm:$0xff]  ;;  %vm11166_vm1 = vmmov %vm11160_vm2 }
 0x295   : > { %v2130_v47 = vsel %vm2002_vm11, %v11163_v40, 512  ;;  %vm2401_vm7 = vcmp.lt.s32.totalorder %v2396_v0, %v2400_v35  ;;  %vm2404_vm14 = vcmp.lt.s32.totalorder %v2399_v44, %v2403_v51  ;;  %vm2018_vm0 = vcmp.eq.f32.partialorder %v11164_v14, %v6985_v54  ;;  %vm11167_vm10 = vmmov %vm11166_vm1  ;;  %v11184_v49 = vld [vmem:[#allocation125_spill] sm:$0xff] }
 0x296   : > { %vm2020_vm15 = vcmp.eq.f32.partialorder %v11165_v60, %v6985_v54  ;;  %v2402_v37 = vsel %vm2401_vm7, %v2396_v0, %v2400_v35  ;;  %v2405_v62 = vsel %vm2404_vm14, %v2399_v44, %v2403_v51  ;;  %v2406_v53 = vsel %vm11166_vm1, %v7357_v20, 2147483647  ;;  %v11171_v0 = vld [vmem:[#allocation121_spill] sm:$0xff]  ;;  %vm11172_vm14 = vmmov %vm11166_vm1  ;;  %v11173_v51 = vld [vmem:[#allocation162_spill] sm:$0xff] }
 0x297   : > { %v2409_v39 = vsel %vm11167_vm10, %v7363_v29, 2147483647  ;;  %vm7463_vm2 = vcmp.lt.s32.totalorder %v2289_v31, %v2290_v24  ;;  %v2132_v40 = vsel %vm2004_vm9, %v11170_v45, 512  ;;  %vm2407_vm11 = vcmp.lt.s32.totalorder %v2402_v37, %v2406_v53 }
 0x298   : > { %vm2410_vm3 = vcmp.lt.s32.totalorder %v2405_v62, %v2409_v39  ;;  %vm2022_vm7 = vcmp.eq.f32.partialorder %v11171_v0, %v6985_v54  ;;  %v2408_v44 = vsel %vm2407_vm11, %v2402_v37, %v2406_v53  ;;  %v2412_v20 = vsel %vm11172_vm14, %v7382_v26, 2147483647  ;;  %v11175_v37 = vld [vmem:[#allocation51_spill] sm:$0xff]  ;;  %vm11177_vm14 = vmmov %vm11166_vm1 }
 0x299   : > { %v2411_v35 = vsel %vm2410_vm3, %v2405_v62, %v2409_v39  ;;  %v2415_v29 = vsel %vm11166_vm1, %v2116_v18, 2147483647  ;;  %v2134_v42 = vsel %vm2006_vm8, %v11173_v51, 512  ;;  %v2136_v50 = vsel %vm2008_vm12, %v11174_v22, 512  ;;  %v11176_v62 = vld [vmem:[#allocation123_spill] sm:$0xff]  ;;  %v11179_v51 = vld [vmem:[#allocation122_spill] sm:$0xff] }
 0x29a   : > { %vm2413_vm9 = vcmp.lt.s32.totalorder %v2408_v44, %v2412_v20  ;;  %vm2416_vm10 = vcmp.lt.s32.totalorder %v2411_v35, %v2415_v29  ;;  %vm2024_vm11 = vcmp.eq.f32.partialorder %v11175_v37, %v6985_v54  ;;  %v2418_v53 = vsel %vm11177_vm14, %v7398_v8, 2147483647 }
 0x29b   : > { %v2414_v26 = vsel %vm2413_vm9, %v2408_v44, %v2412_v20  ;;  %v2417_v18 = vsel %vm2416_vm10, %v2411_v35, %v2415_v29  ;;  %v2421_v6 = vsel %vm11166_vm1, %v2120_v17, 2147483647  ;;  %v2292_v39 = vsel %vm7463_vm2, %v2289_v31, %v2290_v24  ;;  %vm11180_vm9 = vmmov %vm11166_vm1  ;;  %v11182_v17 = vld [vmem:[#allocation165_spill] sm:$0xff]  ;;  %v11183_v24 = vld [vmem:[#allocation166_spill] sm:$0xff] }
 0x29c   : > { %v2138_v22 = vsel %vm2010_vm5, %v11178_v7, 512  ;;  %vm2419_vm8 = vcmp.lt.s32.totalorder %v2414_v26, %v2418_v53  ;;  %vm2422_vm12 = vcmp.lt.s32.totalorder %v2417_v18, %v2421_v6  ;;  %vm2028_vm3 = vcmp.eq.f32.partialorder %v11179_v51, %v6985_v54  ;;  %vm11181_vm10 = vmmov %vm11166_vm1  ;;  %v11185_v29 = vld [vmem:[#allocation124_spill] sm:$0xff] }
 0x29d   : > { %v2420_v44 = vsel %vm2419_vm8, %v2414_v26, %v2418_v53  ;;  %v2423_v35 = vsel %vm2422_vm12, %v2417_v18, %v2421_v6  ;;  %v2424_v20 = vsel %vm11180_vm9, %v2122_v28, 2147483647  ;;  %v2427_v8 = vsel %vm11181_vm10, %v2124_v36, 2147483647  ;;  %vm11186_vm8 = vmmov %vm11180_vm9  ;;  %v11188_v53 = vld [vmem:[#allocation168_spill] sm:$0xff] }
 0x29e   : > { %v2140_v31 = vsel %vm2012_vm6, %v11182_v17, 512  ;;  %v2142_v34 = vsel %vm2014_vm4, %v11183_v24, 512  ;;  %vm2425_vm5 = vcmp.lt.s32.totalorder %v2420_v44, %v2424_v20  ;;  %vm2428_vm2 = vcmp.lt.s32.totalorder %v2423_v35, %v2427_v8  ;;  %vm11187_vm12 = vmmov %vm11186_vm8 }
 0x29f   : > { %vm2030_vm14 = vcmp.eq.f32.partialorder %v11184_v49, %v6985_v54  ;;  %vm2032_vm1 = vcmp.eq.f32.partialorder %v11185_v29, %v6985_v54  ;;  %v2426_v28 = vsel %vm2425_vm5, %v2420_v44, %v2424_v20  ;;  %v2429_v36 = vsel %vm2428_vm2, %v2423_v35, %v2427_v8  ;;  %vm11189_vm9 = vmmov %vm11186_vm8  ;;  %v11191_v44 = vld [vmem:[#allocation169_spill] sm:$0xff]  ;;  %v11214_v29 = vld [vmem:[#allocation127_spill] sm:$0xff] }
 0x2a0   : > { %v2430_v26 = vsel %vm11186_vm8, %v2126_v56, 2147483647  ;;  %v2433_v12 = vsel %vm11187_vm12, %v2128_v15, 2147483647  ;;  %v2293_v18 = vrot.slane %v2292_v39, 1  ;;  %v2144_v52 = vsel %vm2016_vm13, %v11188_v53, 512  ;;  %vm11190_vm10 = vmmov %vm11186_vm8 }
 0x2a1   : > { %vm2431_vm6 = vcmp.lt.s32.totalorder %v2426_v28, %v2430_v26  ;;  %vm2434_vm4 = vcmp.lt.s32.totalorder %v2429_v36, %v2433_v12  ;;  %v2436_v17 = vsel %vm11189_vm9, %v2130_v47, 2147483647  ;;  %v2439_v7 = vsel %vm11190_vm10, %v2132_v40, 2147483647  ;;  %v11192_v15 = vld [vmem:[#allocation170_spill] sm:$0xff]  ;;  %vm11193_vm2 = vmmov %vm11186_vm8 }
 0x2a2   : > { %v2432_v6 = vsel %vm2431_vm6, %v2426_v28, %v2430_v26  ;;  %v2435_v24 = vsel %vm2434_vm4, %v2429_v36, %v2433_v12  ;;  %v2146_v56 = vsel %vm2018_vm0, %v11191_v44, 512  ;;  %v2148_v35 = vsel %vm2020_vm15, %v11192_v15, 512  ;;  %vm11194_vm8 = vmmov %vm11193_vm2  ;;  %v11197_v28 = vld [vmem:[#allocation171_spill] sm:$0xff] }
 0x2a3   : > { %vm2437_vm5 = vcmp.lt.s32.totalorder %v2432_v6, %v2436_v17  ;;  %vm2440_vm13 = vcmp.lt.s32.totalorder %v2435_v24, %v2439_v7  ;;  %v2442_v8 = vsel %vm11193_vm2, %v2134_v42, 2147483647  ;;  %v2445_v47 = vsel %vm11194_vm8, %v2136_v50, 2147483647  ;;  %vm11198_vm15 = vmmov %vm11193_vm2  ;;  %v11200_v42 = vld [vmem:[#allocation81_spill] sm:$0xff] }
 0x2a4   : > { %v2438_v43 = vsel %vm2437_vm5, %v2432_v6, %v2436_v17  ;;  %v2441_v20 = vsel %vm2440_vm13, %v2435_v24, %v2439_v7  ;;  %vm7531_vm12 = vcmp.lt.s32.totalorder %v2292_v39, %v2293_v18  ;;  %v2150_v14 = vsel %vm2022_vm7, %v11197_v28, 512  ;;  %vm11199_vm4 = vmmov %vm11193_vm2  ;;  %v11201_v24 = vld [vmem:[#allocation77_spill] sm:$0xff] }
 0x2a5   : > { %vm2443_vm0 = vcmp.lt.s32.totalorder %v2438_v43, %v2442_v8  ;;  %vm2446_vm6 = vcmp.lt.s32.totalorder %v2441_v20, %v2445_v47  ;;  %v2448_v17 = vsel %vm11198_vm15, %v2138_v22, 2147483647  ;;  %v2451_v7 = vsel %vm11199_vm4, %v2140_v31, 2147483647  ;;  %vm11203_vm5 = vmmov %vm11193_vm2 }
 0x2a6   : > { %v2444_v60 = vsel %vm2443_vm0, %v2438_v43, %v2442_v8  ;;  %v2447_v36 = vsel %vm2446_vm6, %v2441_v20, %v2445_v47  ;;  %v2152_v50 = vsel %vm2024_vm11, %v11200_v42, 512  ;;  %vm11202_vm9 = vcmp.eq.f32.partialorder %v11176_v62, %v6985_v54  ;;  %vm11204_vm13 = vmmov %vm11193_vm2  ;;  %v11205_v43 = vld [vmem:[#allocation78_spill] sm:$0xff] }
 0x2a7   : > { %v2154_v26 = vsel %vm11202_vm9, %v11201_v24, 512  ;;  %vm2449_vm10 = vcmp.lt.s32.totalorder %v2444_v60, %v2448_v17  ;;  %vm2452_vm7 = vcmp.lt.s32.totalorder %v2447_v36, %v2451_v7  ;;  %v2454_v6 = vsel %vm11203_vm5, %v2142_v34, 2147483647  ;;  %vm11206_vm8 = vmmov %vm11199_vm4  ;;  %v11208_v34 = vld [vmem:[#allocation74_spill] sm:$0xff] }
 0x2a8   : > { %v2450_v0 = vsel %vm2449_vm10, %v2444_v60, %v2448_v17  ;;  %v2453_v12 = vsel %vm2452_vm7, %v2447_v36, %v2451_v7  ;;  %v2457_v22 = vsel %vm11204_vm13, %v2144_v52, 2147483647  ;;  %v7553_v31 = vsel %vm7531_vm12, %v2292_v39, %v2293_v18  ;;  %vm11207_vm0 = vmmov %vm11199_vm4  ;;  %v11209_v39 = vld [vmem:[#allocation172_spill] sm:$0xff] }
 0x2a9   : > { %v2156_v37 = vsel %vm2028_vm3, %v11205_v43, 512  ;;  %vm2455_vm11 = vcmp.lt.s32.totalorder %v2450_v0, %v2454_v6  ;;  %vm2458_vm2 = vcmp.lt.s32.totalorder %v2453_v12, %v2457_v22  ;;  %v2460_v8 = vsel %vm11206_vm8, %v2146_v56, 2147483647  ;;  %vm11210_vm6 = vmmov %vm11207_vm0 }
 0x2aa   : > { %v2456_v62 = vsel %vm2455_vm11, %v2450_v0, %v2454_v6  ;;  %v2459_v20 = vsel %vm2458_vm2, %v2453_v12, %v2457_v22  ;;  %v2463_v47 = vsel %vm11207_vm0, %v2148_v35, 2147483647  ;;  %v2158_v52 = vsel %vm2030_vm14, %v11208_v34, 512  ;;  %vm11211_vm15 = vmmov %vm11207_vm0  ;;  %v11217_v6 = vld [vmem:[#allocation126_spill] sm:$0xff] }
 0x2ab   : > { %v2160_v18 = vsel %vm2032_vm1, %v11209_v39, 512  ;;  %vm2461_vm12 = vcmp.lt.s32.totalorder %v2456_v62, %v2460_v8  ;;  %vm2464_vm3 = vcmp.lt.s32.totalorder %v2459_v20, %v2463_v47  ;;  %v2466_v60 = vsel %vm11210_vm6, %v2150_v14, 2147483647  ;;  %vm11212_vm10 = vmmov %vm11207_vm0 }
 0x2ac   : > { %v2462_v51 = vsel %vm2461_vm12, %v2456_v62, %v2460_v8  ;;  %v2465_v40 = vsel %vm2464_vm3, %v2459_v20, %v2463_v47  ;;  %v2469_v56 = vsel %vm11211_vm15, %v2152_v50, 2147483647  ;;  %v2472_v35 = vsel %vm11212_vm10, %v2154_v26, 2147483647  ;;  %vm11213_vm7 = vmmov %vm11207_vm0 }
 0x2ad   : > { %vm2467_vm4 = vcmp.lt.s32.totalorder %v2462_v51, %v2466_v60  ;;  %vm2470_vm9 = vcmp.lt.s32.totalorder %v2465_v40, %v2469_v56  ;;  %v2475_v54 = vsel %vm11213_vm7, %v2156_v37, 2147483647  ;;  %v2498_v17 = vunpack.c.0.s8 %v11214_v29  ;;  %vm11215_vm11 = vmmov %vm11207_vm0 }
 0x2ae   : > { %v2468_v49 = vsel %vm2467_vm4, %v2462_v51, %v2466_v60  ;;  %v2471_v36 = vsel %vm2470_vm9, %v2465_v40, %v2469_v56  ;;  %v2478_v50 = vsel %vm11215_vm11, %v2158_v52, 2147483647  ;;  %vm11216_vm2 = vmmov %vm11207_vm0  ;;  %vm2517_vm3 = vcmp.eq.s32.totalorder %v11057_v58, %v7553_v31 }
 0x2af   : > { %vm2473_vm5 = vcmp.lt.s32.totalorder %v2468_v49, %v2472_v35  ;;  %vm2476_vm13 = vcmp.lt.s32.totalorder %v2471_v36, %v2475_v54  ;;  %v2481_v26 = vsel %vm11216_vm2, %v2160_v18, 2147483647  ;;  %v7581_v22 = vsub.s32 %v2498_v17, %v11217_v6 }
 0x2b0   : > { %v2474_v14 = vsel %vm2473_vm5, %v2468_v49, %v2472_v35  ;;  %v2477_v7 = vsel %vm2476_vm13, %v2471_v36, %v2475_v54  ;;  %vm2515_vm6 = vcmp.eq.s32.totalorder %v11217_v6, %v7553_v31  ;;  %vm10393_vm15 = vcmp.eq.s32.totalorder %v11060_v2, %v7553_v31 }
 0x2b1   : > { %vm2479_vm8 = vcmp.lt.s32.totalorder %v2474_v14, %v2478_v50  ;;  %vm2482_vm0 = vcmp.lt.s32.totalorder %v2477_v7, %v2481_v26  ;;  %vm10392_vm4 = vcmp.eq.s32.totalorder %v11061_v21, %v7553_v31  ;;  %vm10403_vm9 = vcmp.eq.s32.totalorder %v6558_v9, %v7553_v31 }
 0x2b2   : > { %v2480_v0 = vsel %vm2479_vm8, %v2474_v14, %v2478_v50  ;;  %v2483_v12 = vsel %vm2482_vm0, %v2477_v7, %v2481_v26  ;;  %vm10404_vm10 = vcmp.eq.s32.totalorder %v11115_v32, %v7553_v31  ;;  %vm10391_vm7 = vcmp.eq.s32.totalorder %v6454_v38, %v7553_v31  ;;  %v11222_v14 = vld [vmem:[#allocation131_spill] sm:$0xff]  ;;  %v11223_v7 = vld [vmem:[#allocation132_spill] sm:$0xff] }
 0x2b3   : > { %vm2484_vm12 = vcmp.lt.s32.totalorder %v2480_v0, %v2483_v12  ;;  %vm10390_vm5 = vcmp.eq.s32.totalorder %v6457_v63, %v7553_v31  ;;  %vm10388_vm13 = vcmp.eq.s32.totalorder %v6460_v11, %v7553_v31  ;;  %v11218_v20 = vmov 0.0  }
 0x2b4   : > { %v2485_v37 = vsel %vm2484_vm12, %v2480_v0, %v2483_v12  ;;  %v7605_v8 = vsel %vm2517_vm3, 1.0, %v11218_v20  ;;  %vm10387_vm2 = vcmp.eq.s32.totalorder %v6463_v55, %v7553_v31  ;;  %vm10389_vm8 = vcmp.eq.s32.totalorder %v6468_v5, %v7553_v31  ;;  %v11224_v0 = vld [vmem:[#allocation133_spill] sm:$0xff]  ;;  %v11225_v12 = vld [vmem:[#allocation134_spill] sm:$0xff] }
 0x2b5   : > { %v2486_v62 = vrot.slane %v2485_v37, 4  ;;  %v7615_v52 = vsel %vm2515_vm6, 1.0, %v11218_v20  ;;  %v7621_v18 = vsel %vm10393_vm15, 1.0, %v11218_v20  ;;  %v7627_v51 = vsel %vm10392_vm4, 1.0, %v11218_v20 }
 0x2b6   : > { %v7633_v60 = vsel %vm10391_vm7, 1.0, %v11218_v20  ;;  %v7639_v56 = vsel %vm10390_vm5, 1.0, %v11218_v20  ;;  %v7645_v35 = vsel %vm10388_vm13, 1.0, %v11218_v20  ;;  %v7651_v49 = vsel %vm10387_vm2, 1.0, %v11218_v20 }
 0x2b7   : > { %vm2487_vm11 = vcmp.lt.s32.totalorder %v2485_v37, %v2486_v62  ;;  %vm10407_vm0 = vcmp.eq.s32.totalorder %v6471_v23, %v7553_v31  ;;  %v7659_v36 = vsel %vm10389_vm8, 1.0, %v11218_v20  ;;  %vm10394_vm12 = vcmp.eq.s32.totalorder %v6474_v48, %v7553_v31 }
 0x2b8   : > { %v2488_v47 = vsel %vm2487_vm11, %v2485_v37, %v2486_v62  ;;  %vm10402_vm1 = vcmp.eq.s32.totalorder %v6477_v33, %v7553_v31  ;;  %vm10401_vm14 = vcmp.eq.s32.totalorder %v6480_v10, %v7553_v31  ;;  %vm10397_vm2 = vcmp.eq.s32.totalorder %v6483_v16, %v7553_v31 }
 0x2b9   : > { %v2489_v40 = vrot.slane %v2488_v47, 2  ;;  %v11219_v54 = vlaneseq  ;;  %vm10395_vm7 = vcmp.eq.s32.totalorder %v6486_v3, %v7553_v31  ;;  %vm10396_vm4 = vcmp.eq.s32.totalorder %v11222_v14, %v7553_v31 }
 0x2ba   : > { %vm10400_vm15 = vcmp.eq.s32.totalorder %v11223_v7, %v7553_v31  ;;  %v7688_v26 = vsel %vm10407_vm0, 1.0, %v11218_v20  ;;  %vm10399_vm5 = vcmp.eq.s32.totalorder %v11225_v12, %v7553_v31  ;;  %v7698_v37 = vsel %vm10394_vm12, 1.0, %v11218_v20 }
 0x2bb   : > { %vm2490_vm11 = vcmp.lt.s32.totalorder %v2488_v47, %v2489_v40  ;;  %vm7670_vm13 = vcmp.lt.s32.totalorder %v11219_v54, 192  ;;  %v7704_v62 = vsel %vm10402_vm1, 1.0, %v11218_v20  ;;  %v7722_v54 = vsel %vm10395_vm7, 1.0, %v11218_v20  ;;  %vm7744_vm7 = vmpackc.low %vm2517_vm3, %vm2515_vm6 }
 0x2bc   : > { %v2491_v17 = vsel %vm2490_vm11, %v2488_v47, %v2489_v40  ;;  %vm10398_vm11 = vcmp.eq.s32.totalorder %v11224_v0, %v7553_v31  ;;  %v7710_v47 = vsel %vm10401_vm14, 1.0, %v11218_v20  ;;  %v7716_v40 = vsel %vm10397_vm2, 1.0, %v11218_v20 }
 0x2bd   : > { %v2492_v50 = vrot.slane %v2491_v17, 1  ;;  %v7728_v34 = vsel %vm10396_vm4, 1.0, %v11218_v20  ;;  %v7734_v24 = vsel %vm10400_vm15, 1.0, %v11218_v20  ;;  %v11226_v43 = vmov 0 }
 0x2be   : > { %v11227_v43 = vsel %vm7744_vm7, 4294967295, %v11226_v43  ;;  %v11230_v42 = vmov 0  ;;  %v11233_v15 = vmov 0  ;;  %v11236_v53 = vmov 0 }
 0x2bf   : > { %vm2493_vm12 = vcmp.lt.s32.totalorder %v2491_v17, %v2492_v50  ;;  %11228 = vst [vmem:[#allocation82_spill] sm:$0xff] %v11227_v43  ;;  %vm11242_vm0 = vcmask 523264   ;;  %v11244_v43 = vmov 1.0|1.0  }
 0x2c0   : > { %v7736_v39 = vsel %vm2493_vm12, %v2491_v17, %v2492_v50  ;;  %v7756_v17 = vsel %vm10398_vm11, 1.0, %v11218_v20  ;;  %vm10416_vm12 = vcmp.eq.s32.totalorder %v6501_v57, %v7553_v31  ;;  %v7764_v50 = vsel %vm10399_vm5, 1.0, %v11218_v20  ;;  %vm7781_vm5 = vmpackc.low %vm10404_vm10, %vm10403_vm9 }
 0x2c1   : > { %11229 = vst [vmem:[#allocation79_spill] sm:$0xff] %v7764_v50  ;;  %v2495_v28 = vcombine.low %v7553_v31, %v7736_v39  ;;  %vm2516_vm3 = vcmp.eq.s32.totalorder %v11217_v6, %v7736_v39  ;;  %vm2518_vm6 = vcmp.eq.s32.totalorder %v11057_v58, %v7736_v39  ;;  %vm10405_vm11 = vcmp.eq.s32.totalorder %v6558_v9, %v7736_v39  ;;  %vm11243_vm2 = vmmov %vm11242_vm0 }
 0x2c2   : > { %v11231_v42 = vsel %vm7781_vm5, 4294967295, %v11230_v42  ;;  %v4150_v44 = vsel %vm2516_vm3, 1.0, %v11218_v20  ;;  %v4152_v6 = vsel %vm2518_vm6, 1.0, %v11218_v20  ;;  %vm7787_vm15 = vmpackc.low %vm2518_vm6, %vm2516_vm3  ;;  %vm10406_vm14 = vcmp.eq.s32.totalorder %v11115_v32, %v7736_v39 }
 0x2c3   : > { %11232 = vst [vmem:[#allocation86_spill] sm:$0xff] %v11231_v42  ;;  %v11234_v15 = vsel %vm7787_vm15, 4294967295, %v11233_v15  ;;  %v2502_v58 = vrot.slane %v2495_v28, %v7581_v22  ;;  %v10411_v50 = vmov 1.0|1.0   ;;  %vm7805_vm3 = vmpackc.low %vm10406_vm14, %vm10405_vm11  ;;  %vm2520_vm6 = vcmp.eq.s32.totalorder %v11060_v2, %v7736_v39 }
 0x2c4   : > { %11235 = vst [vmem:[#allocation83_spill] sm:$0xff] %v11234_v15  ;;  %4294 = vmatprep.subr.msk.bf16.mxu1 %vm7787_vm15, %v10411_v50  ;;  %v11237_v53 = vsel %vm7805_vm3, 4294967295, %v11236_v53  ;;  %vm2522_vm9 = vcmp.eq.s32.totalorder %v11061_v21, %v7736_v39  ;;  %vm10414_vm10 = vcmp.eq.s32.totalorder %v11116_v59, %v7736_v39  ;;  %4502 = vmatprep.subr.msk.bf16.mxu0 %vm7805_vm3, %v10411_v50  ;;  %v11239_v28 = vmov 0 }
 0x2c5   : > { %11238 = vst [vmem:[#allocation88_spill] sm:$0xff] %v11237_v53  ;;  %4296 = vmatpush1.bf16.msk.msra.mxu1 %vm7744_vm7, %v10411_v50  ;;  %vm7830_vm11 = vmpackc.low %vm2522_vm9, %vm2520_vm6  ;;  %vm10415_vm14 = vcmp.eq.s32.totalorder %v11120_v61, %v7736_v39  ;;  %v3534_v9 = vsel %vm11242_vm0, %v4152_v6, 0.0  ;;  %v3530_v15 = vsel %vm11243_vm2, %v4150_v44, 0.0  ;;  %v2509_v50 = vrot.slane %v2502_v58, %v7581_v22  ;;  %4504 = vmatpush1.bf16.msk.msra.mxu0 %vm7781_vm5, %v11244_v43 }
 0x2c6   : > { %v11240_v28 = vsel %vm7830_vm11, 4294967295, %v11239_v28  ;;  %4298 = vmatprep.subr.msk.bf16.mxu1 %vm7830_vm11, %v11244_v43  ;;  %vm7857_vm2 = vmpackc.low %vm10415_vm14, %vm10414_vm10  ;;  %v11245_v44 = vmov 0  ;;  %v3535_v22 = vadd.f32 %v7605_v8, %v3534_v9  ;;  %v3531_v6 = vadd.f32 %v7615_v52, %v3530_v15 }
 0x2c7   : > { %11241 = vst [vmem:[#allocation87_spill] sm:$0xff] %v11240_v28  ;;  %v11246_v44 = vsel %vm7857_vm2, 4294967295, %v11245_v44  ;;  %v7867_v58 = vsel %vm10416_vm12, 1.0, %v11218_v20  ;;  %4506 = vmatprep.subr.msk.bf16.mxu0 %vm7857_vm2, %v11244_v43  ;;  %vm11248_vm0 = vcmp.eq.s32.totalorder %v11060_v2, %v7553_v31  ;;  %vm11249_vm10 = vcmp.eq.s32.totalorder %v11061_v21, %v7553_v31  ;;  %2514 = vst.msk [vmem:[%s388_s18] sm:$0x3] %vm7670_vm13, %v2509_v50  ;;  %v11296_v28 = vld [vmem:[#allocation136_spill] sm:$0xff] }
 0x2c8   : > { %11247 = vst [vmem:[#allocation91_spill] sm:$0xff] %v11246_v44  ;;  %vm7878_vm14 = vmpackc.low %vm11249_vm10, %vm11248_vm0  ;;  %v11250_v9 = vmov 0  ;;  %vm2526_vm12 = vcmp.eq.s32.totalorder %v6457_v63, %v7736_v39  ;;  %3536 = vadd.xlane.f32.xlu0 %v3535_v22  ;;  %3532 = vadd.xlane.f32.xlu1 %v3531_v6  ;;  %vm11253_vm10 = vcmp.eq.s32.totalorder %v11116_v59, %v7553_v31  ;;  %v11255_v15 = vmov 0  ;;  %v11265_v22 = vld [vmem:[#allocation152_spill] sm:$0xff]  ;;  %v11266_v6 = vld [vmem:[#allocation153_spill] sm:$0xff] }
 0x2c9   : > { %v11251_v9 = vsel %vm7878_vm14, 4294967295, %v11250_v9  ;;  %vm11254_vm0 = vcmp.eq.s32.totalorder %v11120_v61, %v7553_v31  ;;  %v4154_v8 = vsel %vm2520_vm6, 1.0, %v11218_v20  ;;  %v4156_v52 = vsel %vm2522_vm9, 1.0, %v11218_v20  ;;  %4300 = vmatpush1.bf16.msk.msra.mxu1 %vm7878_vm14, %v11244_v43  ;;  %v11267_v59 = vld [vmem:[#allocation135_spill] sm:$0xff]  ;;  %v11330_v44 = vld [vmem:[#allocation140_spill] sm:$0xff] }
 0x2ca   : > { %11252 = vst [vmem:[#allocation89_spill] sm:$0xff] %v11251_v9  ;;  %vm7898_vm1 = vmpackc.low %vm11254_vm0, %vm11253_vm10  ;;  %vm11258_vm13 = vcmp.eq.s32.totalorder %v6504_v13, %v7553_v31  ;;  %vm11259_vm6 = vcmp.eq.s32.totalorder %v6454_v38, %v7736_v39  ;;  %v11260_v2 = vmov 0  ;;  %vm11263_vm0 = vcmask 523264  }
 0x2cb   : > { %v11256_v15 = vsel %vm7898_vm1, 4294967295, %v11255_v15  ;;  %v7914_v29 = vsel %vm11258_vm13, 1.0, %v11218_v20  ;;  %vm7927_vm9 = vmpackc.low %vm2526_vm12, %vm11259_vm6  ;;  %v3538_v21 = vsel %vm11263_vm0, %v4154_v8, 0.0  ;;  %4508 = vmatpush1.bf16.msk.msra.mxu0 %vm7898_vm1, %v11244_v43  ;;  %vm11268_vm6 = vcmp.eq.s32.totalorder %v11121_v41, %v7736_v39 }
 0x2cc   : > { %11257 = vst [vmem:[#allocation93_spill] sm:$0xff] %v11256_v15  ;;  %v11261_v2 = vsel %vm7927_vm9, 4294967295, %v11260_v2  ;;  %vm11264_vm13 = vmmov %vm11263_vm0  ;;  %4302 = vmatprep.subr.msk.bf16.mxu1 %vm7927_vm9, %v11244_v43  ;;  %vm11269_vm0 = vcmp.eq.s32.totalorder %v11127_v1, %v7736_v39  ;;  %v11270_v8 = vmov 0  ;;  %vm11273_vm8 = vcmp.eq.s32.totalorder %v6454_v38, %v7736_v39  ;;  %v11329_v15 = vld [vmem:[#allocation157_spill] sm:$0xff] }
 0x2cd   : > { %11262 = vst [vmem:[#allocation92_spill] sm:$0xff] %v11261_v2  ;;  %v3542_v50 = vsel %vm11264_vm13, %v4156_v52, 0.0  ;;  %vm7953_vm13 = vmpackc.low %vm11269_vm0, %vm11268_vm6  ;;  %v3539_v52 = vadd.f32 %v7621_v18, %v3538_v21  ;;  %v4158_v2 = vsel %vm11273_vm8, 1.0, %v11218_v20  ;;  %vm11274_vm6 = vcmp.eq.s32.totalorder %v6454_v38, %v7553_v31 }
 0x2ce   : > { %v11271_v8 = vsel %vm7953_vm13, 4294967295, %v11270_v8  ;;  %v3543_v9 = vadd.f32 %v7627_v51, %v3542_v50  ;;  %4510 = vmatprep.subr.msk.bf16.mxu0 %vm7953_vm13, %v11244_v43  ;;  %vm11275_vm0 = vcmp.eq.s32.totalorder %v6457_v63, %v7553_v31  ;;  %v11276_v18 = vmov 0 }
 0x2cf   : > { %11272 = vst [vmem:[#allocation96_spill] sm:$0xff] %v11271_v8  ;;  %vm7974_vm10 = vmpackc.low %vm11275_vm0, %vm11274_vm6  ;;  %vm11279_vm14 = vcmask 523264   ;;  %v4160_v38 = vsel %vm2526_vm12, 1.0, %v11218_v20  ;;  %3540 = vadd.xlane.f32.xlu0 %v3539_v52  ;;  %vm11280_vm6 = vcmp.eq.s32.totalorder %v11121_v41, %v7553_v31  ;;  %vm11281_vm0 = vcmp.eq.s32.totalorder %v11127_v1, %v7553_v31  ;;  %v11294_v41 = vld [vmem:[#allocation154_spill] sm:$0xff]  ;;  %v11297_v8 = vld [vmem:[#allocation137_spill] sm:$0xff] }
 0x2d0   : > { %v11277_v18 = vsel %vm7974_vm10, 4294967295, %v11276_v18  ;;  %v3546_v51 = vsel %vm11279_vm14, %v4158_v2, 0.0  ;;  %3544 = vadd.xlane.f32.xlu1 %v3543_v9  ;;  %vm7993_vm9 = vmpackc.low %vm11281_vm0, %vm11280_vm6  ;;  %v11282_v21 = vmov 0  ;;  %vm11287_vm12 = vcmp.eq.s32.totalorder %v6528_v27, %v7553_v31  ;;  %4304 = vmatpush1.bf16.msk.msra.mxu1 %vm7974_vm10, %v11244_v43 }
 0x2d1   : > { %11278 = vst [vmem:[#allocation94_spill] sm:$0xff] %v11277_v18  ;;  %v11283_v21 = vsel %vm7993_vm9, 4294967295, %v11282_v21  ;;  %vm11285_vm8 = vmmov %vm11279_vm14  ;;  %vm11286_vm14 = vcmp.eq.s32.totalorder %v6507_v4, %v7553_v31  ;;  %v8008_v9 = vsel %vm11287_vm12, 1.0, %v11218_v20  ;;  %vm11288_vm6 = vcmp.eq.s32.totalorder %v11267_v59, %v7553_v31  ;;  %v11295_v18 = vld [vmem:[#allocation155_spill] sm:$0xff]  ;;  %4512 = vmatpush1.bf16.msk.msra.mxu0 %vm7993_vm9, %v11244_v43 }
 0x2d2   : > { %11284 = vst [vmem:[#allocation98_spill] sm:$0xff] %v11283_v21  ;;  %v3550_v50 = vsel %vm11285_vm8, %v4160_v38, 0.0  ;;  %v8002_v63 = vsel %vm11286_vm14, 1.0, %v11218_v20  ;;  %v8014_v2 = vsel %vm11288_vm6, 1.0, %v11218_v20  ;;  %vm11289_vm8 = vcmp.eq.s32.totalorder %v6460_v11, %v7736_v39 }
 0x2d3   : > { %vm11290_vm0 = vcmp.eq.s32.totalorder %v6463_v55, %v7736_v39  ;;  %v11291_v52 = vmov 0  ;;  %v3547_v38 = vadd.f32 %v7633_v60, %v3546_v51  ;;  %vm11299_vm4 = vcmp.eq.s32.totalorder %v11132_v19, %v7736_v39  ;;  %vm11303_vm10 = vmmov %vm11289_vm8 }
 0x2d4   : > { %vm8025_vm14 = vmpackc.low %vm11290_vm0, %vm11289_vm8  ;;  %vm11298_vm0 = vcmp.eq.s32.totalorder %v11131_v25, %v7736_v39  ;;  %v11300_v60 = vmov 0  ;;  %v3551_v51 = vadd.f32 %v7639_v56, %v3550_v50  ;;  %vm11304_vm12 = vcmp.eq.s32.totalorder %v6463_v55, %v7736_v39 }
 0x2d5   : > { %v11292_v52 = vsel %vm8025_vm14, 4294967295, %v11291_v52  ;;  %4306 = vmatprep.subr.msk.bf16.mxu1 %vm8025_vm14, %v11244_v43  ;;  %vm8052_vm6 = vmpackc.low %vm11299_vm4, %vm11298_vm0  ;;  %v4164_v21 = vsel %vm11304_vm12, 1.0, %v11218_v20  ;;  %vm11305_vm4 = vcmp.eq.s32.totalorder %v6460_v11, %v7553_v31  ;;  %vm11306_vm0 = vcmp.eq.s32.totalorder %v6463_v55, %v7553_v31  ;;  %3548 = vadd.xlane.f32.xlu0 %v3547_v38  ;;  %v11321_v38 = vld [vmem:[#allocation139_spill] sm:$0xff] }
 0x2d6   : > { %11293 = vst [vmem:[#allocation97_spill] sm:$0xff] %v11292_v52  ;;  %v11301_v60 = vsel %vm8052_vm6, 4294967295, %v11300_v60  ;;  %v4162_v52 = vsel %vm11303_vm10, 1.0, %v11218_v20  ;;  %4514 = vmatprep.subr.msk.bf16.mxu0 %vm8052_vm6, %v11244_v43  ;;  %vm8076_vm8 = vmpackc.low %vm11306_vm0, %vm11305_vm4  ;;  %v11307_v56 = vmov 0  ;;  %vm11310_vm14 = vcmask 523264   ;;  %3552 = vadd.xlane.f32.xlu1 %v3551_v51 }
 0x2d7   : > { %11302 = vst [vmem:[#allocation101_spill] sm:$0xff] %v11301_v60  ;;  %v11308_v56 = vsel %vm8076_vm8, 4294967295, %v11307_v56  ;;  %v3554_v50 = vsel %vm11310_vm14, %v4162_v52, 0.0  ;;  %vm11311_vm11 = vmmov %vm11310_vm14  ;;  %vm11312_vm7 = vcmp.eq.s32.totalorder %v11131_v25, %v7553_v31  ;;  %vm11313_vm4 = vcmp.eq.s32.totalorder %v11132_v19, %v7553_v31  ;;  %v11320_v52 = vld [vmem:[#allocation138_spill] sm:$0xff]  ;;  %4308 = vmatpush1.bf16.msk.msra.mxu1 %vm8076_vm8, %v11244_v43 }
 0x2d8   : > { %11309 = vst [vmem:[#allocation99_spill] sm:$0xff] %v11308_v56  ;;  %v3558_v60 = vsel %vm11311_vm11, %v4164_v21, 0.0  ;;  %vm8092_vm0 = vmpackc.low %vm11313_vm4, %vm11312_vm7  ;;  %v11314_v11 = vmov 0  ;;  %vm11317_vm12 = vcmp.eq.s32.totalorder %v6468_v5, %v7736_v39  ;;  %vm11318_vm11 = vcmp.eq.s32.totalorder %v11296_v28, %v7553_v31  ;;  %v11328_v56 = vld [vmem:[#allocation156_spill] sm:$0xff] }
 0x2d9   : > { %v11315_v11 = vsel %vm8092_vm0, 4294967295, %v11314_v11  ;;  %v4166_v55 = vsel %vm11317_vm12, 1.0, %v11218_v20  ;;  %v8104_v21 = vsel %vm11318_vm11, 1.0, %v11218_v20  ;;  %vm11322_vm4 = vmmov %vm11317_vm12  ;;  %vm11323_vm12 = vcmp.eq.s32.totalorder %v6471_v23, %v7736_v39  ;;  %4516 = vmatpush1.bf16.msk.msra.mxu0 %vm8092_vm0, %v11244_v43 }
 0x2da   : > { %11316 = vst [vmem:[#allocation103_spill] sm:$0xff] %v11315_v11  ;;  %11319 = vst [vmem:[#allocation102_spill] sm:$0xff] %v8104_v21  ;;  %v11324_v51 = vmov 0  ;;  %vm11332_vm8 = vcmp.eq.s32.totalorder %v11266_v6, %v7736_v39  ;;  %v11333_v42 = vmov 0  ;;  %v3555_v53 = vadd.f32 %v7645_v35, %v3554_v50  ;;  %v11337_v11 = vld [vmem:[#allocation141_spill] sm:$0xff] }
 0x2db   : > { %vm8119_vm10 = vmpackc.low %vm11323_vm12, %vm11322_vm4  ;;  %v3559_v21 = vadd.f32 %v7651_v49, %v3558_v60  ;;  %vm11336_vm4 = vcmp.eq.s32.totalorder %v11297_v8, %v7553_v31  ;;  %v11340_v35 = vmov 0  ;;  %v11355_v50 = vmov 0 }
 0x2dc   : > { %v11325_v51 = vsel %vm8119_vm10, 4294967295, %v11324_v51  ;;  %vm11327_vm14 = vmmov %vm11323_vm12  ;;  %4310 = vmatprep.subr.msk.bf16.mxu1 %vm8119_vm10, %v11244_v43  ;;  %vm11343_vm10 = vcmask 523264   ;;  %3556 = vadd.xlane.f32.xlu0 %v3555_v53  ;;  %vm11359_vm12 = vcmp.eq.s32.totalorder %v11330_v44, %v7553_v31 }
 0x2dd   : > { %11326 = vst [vmem:[#allocation106_spill] sm:$0xff] %v11325_v51  ;;  %v4168_v25 = vsel %vm11327_vm14, 1.0, %v11218_v20  ;;  %vm11331_vm14 = vcmp.eq.s32.totalorder %v11265_v22, %v7736_v39  ;;  %v8159_v51 = vsel %vm11336_vm4, 1.0, %v11218_v20  ;;  %v3562_v49 = vsel %vm11343_vm10, %v4166_v55, 0.0  ;;  %vm11344_vm15 = vmmov %vm11343_vm10  ;;  %3560 = vadd.xlane.f32.xlu1 %v3559_v21 }
 0x2de   : > { %vm8149_vm7 = vmpackc.low %vm11332_vm8, %vm11331_vm14  ;;  %vm11338_vm8 = vcmp.eq.s32.totalorder %v6468_v5, %v7553_v31  ;;  %vm11339_vm14 = vcmp.eq.s32.totalorder %v6471_v23, %v7553_v31  ;;  %v3566_v60 = vsel %vm11344_vm15, %v4168_v25, 0.0  ;;  %v11347_v5 = vmov 0 }
 0x2df   : > { %v11334_v42 = vsel %vm8149_vm7, 4294967295, %v11333_v42  ;;  %4518 = vmatprep.subr.msk.bf16.mxu0 %vm8149_vm7, %v11244_v43  ;;  %vm8172_vm11 = vmpackc.low %vm11339_vm14, %vm11338_vm8  ;;  %vm11345_vm7 = vcmp.eq.s32.totalorder %v11265_v22, %v7553_v31  ;;  %vm11346_vm8 = vcmp.eq.s32.totalorder %v11266_v6, %v7553_v31  ;;  %vm11350_vm10 = vcmp.eq.s32.totalorder %v6474_v48, %v7736_v39 }
 0x2e0   : > { %11335 = vst [vmem:[#allocation104_spill] sm:$0xff] %v11334_v42  ;;  %v11341_v35 = vsel %vm8172_vm11, 4294967295, %v11340_v35  ;;  %vm8188_vm14 = vmpackc.low %vm11346_vm8, %vm11345_vm7  ;;  %v4170_v23 = vsel %vm11350_vm10, 1.0, %v11218_v20  ;;  %vm11351_vm15 = vcmp.eq.s32.totalorder %v6477_v33, %v7736_v39  ;;  %vm11352_vm7 = vcmp.eq.s32.totalorder %v11320_v52, %v7553_v31  ;;  %4312 = vmatpush1.bf16.msk.msra.mxu1 %vm8172_vm11, %v11244_v43 }
 0x2e1   : > { %11342 = vst [vmem:[#allocation108_spill] sm:$0xff] %v11341_v35  ;;  %v11348_v5 = vsel %vm8188_vm14, 4294967295, %v11347_v5  ;;  %v4172_v25 = vsel %vm11351_vm15, 1.0, %v11218_v20  ;;  %v8206_v53 = vsel %vm11352_vm7, 1.0, %v11218_v20  ;;  %vm11353_vm8 = vmmov %vm11350_vm10  ;;  %vm11358_vm7 = vcmp.eq.s32.totalorder %v11321_v38, %v7553_v31  ;;  %4520 = vmatpush1.bf16.msk.msra.mxu0 %vm8188_vm14, %v11244_v43 }
 0x2e2   : > { %11349 = vst [vmem:[#allocation107_spill] sm:$0xff] %v11348_v5  ;;  %vm11354_vm10 = vmmov %vm11351_vm15  ;;  %v8227_v55 = vsel %vm11358_vm7, 1.0, %v11218_v20  ;;  %v8233_v21 = vsel %vm11359_vm12, 1.0, %v11218_v20  ;;  %vm11363_vm12 = vcmp.eq.s32.totalorder %v11295_v18, %v7736_v39  ;;  %v11364_v35 = vmov 0 }
 0x2e3   : > { %vm8217_vm4 = vmpackc.low %vm11354_vm10, %vm11353_vm8  ;;  %vm11360_vm8 = vcmp.eq.s32.totalorder %v11337_v11, %v7553_v31  ;;  %vm11362_vm10 = vcmp.eq.s32.totalorder %v11294_v41, %v7736_v39  ;;  %v3563_v42 = vadd.f32 %v7659_v36, %v3562_v49  ;;  %vm11367_vm15 = vcmp.eq.s32.totalorder %v11115_v32, %v7553_v31 }
 0x2e4   : > { %v11356_v50 = vsel %vm8217_vm4, 4294967295, %v11355_v50  ;;  %v8239_v22 = vsel %vm11360_vm8, 1.0, %v11218_v20  ;;  %4314 = vmatprep.subr.msk.bf16.mxu1 %vm8217_vm4, %v11244_v43  ;;  %vm8253_vm7 = vmpackc.low %vm11363_vm12, %vm11362_vm10  ;;  %vm11368_vm10 = vcmp.eq.s32.totalorder %v6474_v48, %v7553_v31  ;;  %vm11369_vm12 = vcmp.eq.s32.totalorder %v6477_v33, %v7553_v31 }
 0x2e5   : > { %11357 = vst [vmem:[#allocation28_spill] sm:$0xff] %v11356_v50  ;;  %11361 = vst [vmem:[#allocation46_spill] sm:$0xff] %v8239_v22  ;;  %v11365_v35 = vsel %vm8253_vm7, 4294967295, %v11364_v35  ;;  %v3567_v22 = vadd.f32 %v7688_v26, %v3566_v60  ;;  %v8265_v50 = vsel %vm11367_vm15, 1.0, %v11218_v20  ;;  %4522 = vmatprep.subr.msk.bf16.mxu0 %vm8253_vm7, %v11244_v43  ;;  %v11370_v36 = vmov 0  ;;  %3564 = vadd.xlane.f32.xlu0 %v3563_v42 }
 0x2e6   : > { %11366 = vst [vmem:[#allocation31_spill] sm:$0xff] %v11365_v35  ;;  %vm8276_vm4 = vmpackc.low %vm11369_vm12, %vm11368_vm10  ;;  %vm11373_vm11 = vcmask 523264   ;;  %vm11375_vm7 = vcmp.eq.s32.totalorder %v6480_v10, %v7736_v39  ;;  %vm11376_vm10 = vcmp.eq.s32.totalorder %v11294_v41, %v7553_v31  ;;  %vm11377_vm12 = vcmp.eq.s32.totalorder %v11295_v18, %v7553_v31 }
 0x2e7   : > { %v11371_v36 = vsel %vm8276_vm4, 4294967295, %v11370_v36  ;;  %v3570_v26 = vsel %vm11373_vm11, %v4170_v23, 0.0  ;;  %vm11374_vm15 = vmmov %vm11373_vm11  ;;  %v4174_v60 = vsel %vm11375_vm7, 1.0, %v11218_v20  ;;  %3568 = vadd.xlane.f32.xlu1 %v3567_v22  ;;  %v11378_v48 = vmov 0  ;;  %4316 = vmatpush1.bf16.msk.msra.mxu1 %vm8276_vm4, %v11244_v43 }
 0x2e8   : > { %11372 = vst [vmem:[#allocation33_spill] sm:$0xff] %v11371_v36  ;;  %v3574_v49 = vsel %vm11374_vm15, %v4172_v25, 0.0  ;;  %vm8294_vm14 = vmpackc.low %vm11377_vm12, %vm11376_vm10  ;;  %vm11381_vm15 = vcmp.eq.s32.totalorder %v6483_v16, %v7736_v39  ;;  %vm11382_vm7 = vcmp.eq.s32.totalorder %v11120_v61, %v7553_v31  ;;  %vm11383_vm10 = vcmp.eq.s32.totalorder %v11127_v1, %v7553_v31 }
 0x2e9   : > { %v11379_v48 = vsel %vm8294_vm14, 4294967295, %v11378_v48  ;;  %v4176_v33 = vsel %vm11381_vm15, 1.0, %v11218_v20  ;;  %v8308_v42 = vsel %vm11382_vm7, 1.0, %v11218_v20  ;;  %v8314_v22 = vsel %vm11383_vm10, 1.0, %v11218_v20  ;;  %4524 = vmatpush1.bf16.msk.msra.mxu0 %vm8294_vm14, %v11244_v43 }
 0x2ea   : > { %11380 = vst [vmem:[#allocation35_spill] sm:$0xff] %v11379_v48  ;;  %vm11384_vm12 = vcmp.eq.s32.totalorder %v11120_v61, %v7736_v39  ;;  %vm11385_vm15 = vcmp.eq.s32.totalorder %v11127_v1, %v7736_v39  ;;  %vm11386_vm7 = vcmp.eq.s32.totalorder %v6480_v10, %v7736_v39  ;;  %vm11387_vm10 = vcmp.eq.s32.totalorder %v6483_v16, %v7736_v39  ;;  %v11391_v1 = vld [vmem:[#allocation160_spill] sm:$0xff] }
 0x2eb   : > { %v8320_v23 = vsel %vm11384_vm12, 1.0, %v11218_v20  ;;  %v8326_v25 = vsel %vm11385_vm15, 1.0, %v11218_v20  ;;  %vm8337_vm11 = vmpackc.low %vm11387_vm10, %vm11386_vm7  ;;  %v11388_v61 = vmov 0  ;;  %vm11392_vm4 = vcmp.eq.s32.totalorder %v11132_v19, %v7553_v31 }
 0x2ec   : > { %v11389_v61 = vsel %vm8337_vm11, 4294967295, %v11388_v61  ;;  %v8351_v41 = vsel %vm11392_vm4, 1.0, %v11218_v20  ;;  %4318 = vmatprep.subr.msk.bf16.mxu1 %vm8337_vm11, %v11244_v43  ;;  %vm11393_vm7 = vcmp.eq.s32.totalorder %v11328_v56, %v7736_v39  ;;  %vm11394_vm10 = vcmp.eq.s32.totalorder %v11329_v15, %v7736_v39 }
 0x2ed   : > { %11390 = vst [vmem:[#allocation37_spill] sm:$0xff] %v11389_v61  ;;  %vm8365_vm8 = vmpackc.low %vm11394_vm10, %vm11393_vm7  ;;  %v11395_v36 = vmov 0  ;;  %v3571_v35 = vadd.f32 %v7698_v37, %v3570_v26  ;;  %v3575_v5 = vadd.f32 %v7704_v62, %v3574_v49  ;;  %vm11397_vm15 = vcmask 523264  }
 0x2ee   : > { %v11396_v36 = vsel %vm8365_vm8, 4294967295, %v11395_v36  ;;  %v3578_v61 = vsel %vm11397_vm15, %v4174_v60, 0.0  ;;  %4526 = vmatprep.subr.msk.bf16.mxu0 %vm8365_vm8, %v11244_v43  ;;  %vm11398_vm12 = vcmp.eq.s32.totalorder %v6480_v10, %v7553_v31  ;;  %vm11399_vm7 = vcmp.eq.s32.totalorder %v6483_v16, %v7553_v31  ;;  %vm11403_vm4 = vmmov %vm11397_vm15 }
 0x2ef   : > { %vm8383_vm10 = vmpackc.low %vm11399_vm7, %vm11398_vm12  ;;  %v11400_v48 = vmov 0  ;;  %v3582_v37 = vsel %vm11403_vm4, %v4176_v33, 0.0  ;;  %vm11404_vm8 = vcmp.eq.s32.totalorder %v6486_v3, %v7736_v39  ;;  %vm11405_vm12 = vcmp.eq.s32.totalorder %v11132_v19, %v7736_v39  ;;  %3572 = vadd.xlane.f32.xlu0 %v3571_v35  ;;  %3576 = vadd.xlane.f32.xlu1 %v3575_v5  ;;  %v11419_v33 = vld [vmem:[#allocation162_spill] sm:$0xff] }
 0x2f0   : > { %v11401_v48 = vsel %vm8383_vm10, 4294967295, %v11400_v48  ;;  %v4178_v10 = vsel %vm11404_vm8, 1.0, %v11218_v20  ;;  %v8400_v16 = vsel %vm11405_vm12, 1.0, %v11218_v20  ;;  %vm11406_vm7 = vcmp.eq.s32.totalorder %v11266_v6, %v7736_v39  ;;  %4320 = vmatpush1.bf16.msk.msra.mxu1 %vm8383_vm10, %v11244_v43 }
 0x2f1   : > { %11402 = vst [vmem:[#allocation39_spill] sm:$0xff] %v11401_v48  ;;  %v8406_v62 = vsel %vm11406_vm7, 1.0, %v11218_v20  ;;  %vm11407_vm4 = vcmp.eq.s32.totalorder %v11328_v56, %v7553_v31  ;;  %vm11408_vm8 = vcmp.eq.s32.totalorder %v11329_v15, %v7553_v31  ;;  %v11409_v26 = vmov 0  ;;  %v11420_v56 = vld [vmem:[#allocation163_spill] sm:$0xff] }
 0x2f2   : > { %vm8414_vm15 = vmpackc.low %vm11408_vm8, %vm11407_vm4  ;;  %vm11412_vm7 = vcmp.eq.s32.totalorder %v11222_v14, %v7736_v39  ;;  %vm11413_vm11 = vcmp.eq.s32.totalorder %v11295_v18, %v7736_v39  ;;  %vm11414_vm4 = vcmp.eq.s32.totalorder %v11329_v15, %v7736_v39  ;;  %vm11415_vm8 = vcmp.eq.s32.totalorder %v6486_v3, %v7736_v39 }
 0x2f3   : > { %v11410_v26 = vsel %vm8414_vm15, 4294967295, %v11409_v26  ;;  %v4180_v19 = vsel %vm11412_vm7, 1.0, %v11218_v20  ;;  %v8428_v35 = vsel %vm11413_vm11, 1.0, %v11218_v20  ;;  %v8434_v5 = vsel %vm11414_vm4, 1.0, %v11218_v20  ;;  %vm8445_vm12 = vmpackc.low %vm11412_vm7, %vm11415_vm8  ;;  %4528 = vmatpush1.bf16.msk.msra.mxu0 %vm8414_vm15, %v11244_v43 }
 0x2f4   : > { %11411 = vst [vmem:[#allocation41_spill] sm:$0xff] %v11410_v26  ;;  %v11416_v49 = vmov 0  ;;  %v3579_v60 = vadd.f32 %v7710_v47, %v3578_v61  ;;  %4322 = vmatprep.subr.msk.bf16.mxu1 %vm8445_vm12, %v11244_v43  ;;  %vm11421_vm8 = vcmp.eq.s32.totalorder %v11158_v30, %v7736_v39  ;;  %vm11422_vm7 = vcmp.eq.s32.totalorder %v11162_v46, %v7736_v39  ;;  %v11449_v26 = vld [vmem:[#allocation165_spill] sm:$0xff] }
 0x2f5   : > { %v11417_v49 = vsel %vm8445_vm12, 4294967295, %v11416_v49  ;;  %vm8468_vm11 = vmpackc.low %vm11422_vm7, %vm11421_vm8  ;;  %v11423_v47 = vmov 0  ;;  %v3583_v61 = vadd.f32 %v7716_v40, %v3582_v37  ;;  %vm11426_vm4 = vcmask 523264  }
 0x2f6   : > { %11418 = vst [vmem:[#allocation44_spill] sm:$0xff] %v11417_v49  ;;  %v11424_v47 = vsel %vm8468_vm11, 4294967295, %v11423_v47  ;;  %v3586_v48 = vsel %vm11426_vm4, %v4178_v10, 0.0  ;;  %vm11427_vm12 = vcmp.eq.s32.totalorder %v11223_v7, %v7736_v39  ;;  %4530 = vmatprep.subr.msk.bf16.mxu0 %vm8468_vm11, %v11244_v43  ;;  %vm11428_vm8 = vcmp.eq.s32.totalorder %v6486_v3, %v7553_v31  ;;  %vm11433_vm10 = vmmov %vm11426_vm4  ;;  %3580 = vadd.xlane.f32.xlu0 %v3579_v60 }
 0x2f7   : > { %11425 = vst [vmem:[#allocation47_spill] sm:$0xff] %v11424_v47  ;;  %v4182_v49 = vsel %vm11427_vm12, 1.0, %v11218_v20  ;;  %vm11429_vm7 = vcmp.eq.s32.totalorder %v11222_v14, %v7553_v31  ;;  %v11430_v40 = vmov 0  ;;  %v3590_v37 = vsel %vm11433_vm10, %v4180_v19, 0.0  ;;  %3584 = vadd.xlane.f32.xlu1 %v3583_v61  ;;  %v11448_v47 = vld [vmem:[#allocation164_spill] sm:$0xff] }
 0x2f8   : > { %vm8489_vm15 = vmpackc.low %vm11429_vm7, %vm11428_vm8  ;;  %vm11434_vm11 = vcmp.eq.s32.totalorder %v11224_v0, %v7736_v39  ;;  %vm11435_vm8 = vcmp.eq.s32.totalorder %v11162_v46, %v7736_v39  ;;  %vm11436_vm7 = vcmp.eq.s32.totalorder %v11158_v30, %v7553_v31  ;;  %vm11437_vm10 = vcmp.eq.s32.totalorder %v11162_v46, %v7553_v31 }
 0x2f9   : > { %v11431_v40 = vsel %vm8489_vm15, 4294967295, %v11430_v40  ;;  %v4184_v3 = vsel %vm11434_vm11, 1.0, %v11218_v20  ;;  %v8506_v14 = vsel %vm11435_vm8, 1.0, %v11218_v20  ;;  %vm8514_vm12 = vmpackc.low %vm11437_vm10, %vm11436_vm7  ;;  %v11438_v10 = vmov 0  ;;  %4324 = vmatpush1.bf16.msk.msra.mxu1 %vm8489_vm15, %v11244_v43 }
 0x2fa   : > { %11432 = vst [vmem:[#allocation63_spill] sm:$0xff] %v11431_v40  ;;  %v11439_v10 = vsel %vm8514_vm12, 4294967295, %v11438_v10  ;;  %vm11440_vm8 = vcmp.eq.s32.totalorder %v11225_v12, %v7736_v39  ;;  %vm11441_vm7 = vcmp.eq.s32.totalorder %v11223_v7, %v7736_v39  ;;  %vm11442_vm10 = vmmov %vm11434_vm11  ;;  %v11443_v60 = vmov 0  ;;  %4532 = vmatpush1.bf16.msk.msra.mxu0 %vm8514_vm12, %v11244_v43 }
 0x2fb   : > { %v4186_v19 = vsel %vm11440_vm8, 1.0, %v11218_v20  ;;  %vm8535_vm14 = vmpackc.low %vm11442_vm10, %vm11441_vm7  ;;  %vm11446_vm4 = vcmp.eq.s32.totalorder %v11170_v45, %v7736_v39  ;;  %v3587_v30 = vadd.f32 %v7722_v54, %v3586_v48  ;;  %vm11447_vm8 = vcmask 523264  }
 0x2fc   : > { %v11444_v60 = vsel %vm8535_vm14, 4294967295, %v11443_v60  ;;  %v8543_v61 = vsel %vm11446_vm4, 1.0, %v11218_v20  ;;  %v3594_v40 = vsel %vm11447_vm8, %v4182_v49, 0.0  ;;  %4326 = vmatprep.subr.msk.bf16.mxu1 %vm8535_vm14, %v11244_v43  ;;  %vm11450_vm4 = vcmp.eq.s32.totalorder %v11391_v1, %v7736_v39 }
 0x2fd   : > { %11445 = vst [vmem:[#allocation10_spill] sm:$0xff] %v11444_v60  ;;  %vm11451_vm10 = vcmp.eq.s32.totalorder %v11170_v45, %v7736_v39  ;;  %v11452_v54 = vmov 0  ;;  %v3591_v48 = vadd.f32 %v7728_v34, %v3590_v37  ;;  %vm11455_vm15 = vcmask 523264   ;;  %3588 = vadd.xlane.f32.xlu0 %v3587_v30 }
 0x2fe   : > { %vm8565_vm8 = vmpackc.low %vm11451_vm10, %vm11450_vm4  ;;  %v3598_v49 = vsel %vm11455_vm15, %v4184_v3, 0.0  ;;  %vm11456_vm11 = vcmp.eq.s32.totalorder %v6501_v57, %v7736_v39  ;;  %vm11457_vm4 = vcmp.eq.s32.totalorder %v11223_v7, %v7553_v31  ;;  %vm11458_vm10 = vcmp.eq.s32.totalorder %v11224_v0, %v7553_v31 }
 0x2ff   : > { %v11453_v54 = vsel %vm8565_vm8, 4294967295, %v11452_v54  ;;  %v4188_v60 = vsel %vm11456_vm11, 1.0, %v11218_v20  ;;  %4534 = vmatprep.subr.msk.bf16.mxu0 %vm8565_vm8, %v11244_v43  ;;  %vm8586_vm14 = vmpackc.low %vm11458_vm10, %vm11457_vm4  ;;  %v11459_v34 = vmov 0  ;;  %vm11462_vm15 = vcmp.eq.s32.totalorder %v11420_v56, %v7736_v39  ;;  %3592 = vadd.xlane.f32.xlu1 %v3591_v48  ;;  %v11477_v48 = vld [vmem:[#allocation168_spill] sm:$0xff] }
 0x300   : > { %11454 = vst [vmem:[#allocation11_spill] sm:$0xff] %v11453_v54  ;;  %v11460_v34 = vsel %vm8586_vm14, 4294967295, %v11459_v34  ;;  %v8594_v37 = vsel %vm11462_vm15, 1.0, %v11218_v20  ;;  %vm11463_vm7 = vcmask 523264   ;;  %vm11464_vm8 = vcmp.eq.s32.totalorder %v6504_v13, %v7736_v39  ;;  %4328 = vmatpush1.bf16.msk.msra.mxu1 %vm8586_vm14, %v11244_v43 }
 0x301   : > { %11461 = vst [vmem:[#allocation67_spill] sm:$0xff] %v11460_v34  ;;  %v3602_v3 = vsel %vm11463_vm7, %v4186_v19, 0.0  ;;  %v4190_v7 = vsel %vm11464_vm8, 1.0, %v11218_v20  ;;  %vm11465_vm4 = vcmp.eq.s32.totalorder %v11391_v1, %v7553_v31  ;;  %vm11466_vm10 = vcmp.eq.s32.totalorder %v11170_v45, %v7553_v31  ;;  %v11478_v1 = vld [vmem:[#allocation166_spill] sm:$0xff]  ;;  %vm11486_vm14 = vmmov %vm11463_vm7 }
 0x302   : > { %vm8609_vm15 = vmpackc.low %vm11466_vm10, %vm11465_vm4  ;;  %v11467_v0 = vmov 0  ;;  %v3595_v54 = vadd.f32 %v7734_v24, %v3594_v40  ;;  %vm11470_vm11 = vcmp.eq.s32.totalorder %v6507_v4, %v7736_v39  ;;  %vm11471_vm4 = vcmp.eq.s32.totalorder %v11225_v12, %v7736_v39 }
 0x303   : > { %v11468_v0 = vsel %vm8609_vm15, 4294967295, %v11467_v0  ;;  %v4192_v30 = vsel %vm11470_vm11, 1.0, %v11218_v20  ;;  %vm11472_vm10 = vcmp.eq.s32.totalorder %v6501_v57, %v7736_v39  ;;  %v11473_v24 = vmov 0  ;;  %vm11476_vm11 = vmmov %vm11463_vm7  ;;  %4536 = vmatpush1.bf16.msk.msra.mxu0 %vm8609_vm15, %v11244_v43 }
 0x304   : > { %11469 = vst [vmem:[#allocation13_spill] sm:$0xff] %v11468_v0  ;;  %vm8631_vm12 = vmpackc.low %vm11472_vm10, %vm11471_vm4  ;;  %v3599_v40 = vadd.f32 %v7756_v17, %v3598_v49  ;;  %v3606_v19 = vsel %vm11476_vm11, %v4188_v60, 0.0  ;;  %vm11479_vm4 = vcmp.eq.s32.totalorder %v11419_v33, %v7736_v39  ;;  %vm11480_vm10 = vcmp.eq.s32.totalorder %v11420_v56, %v7736_v39  ;;  %v11485_v49 = vld [vmem:[#allocation79_spill] sm:$0xff]  ;;  %3596 = vadd.xlane.f32.xlu0 %v3595_v54 }
 0x305   : > { %v11474_v24 = vsel %vm8631_vm12, 4294967295, %v11473_v24  ;;  %4330 = vmatprep.subr.msk.bf16.mxu1 %vm8631_vm12, %v11244_v43  ;;  %vm8657_vm11 = vmpackc.low %vm11480_vm10, %vm11479_vm4  ;;  %v11481_v17 = vmov 0  ;;  %vm11484_vm0 = vcmp.eq.s32.totalorder %v11449_v26, %v7736_v39  ;;  %v3603_v34 = vadd.f32 %v11485_v49, %v3602_v3  ;;  %v11507_v49 = vld [vmem:[#allocation169_spill] sm:$0xff] }
 0x306   : > { %11475 = vst [vmem:[#allocation64_spill] sm:$0xff] %v11474_v24  ;;  %v11482_v17 = vsel %vm8657_vm11, 4294967295, %v11481_v17  ;;  %v8665_v60 = vsel %vm11484_vm0, 1.0, %v11218_v20  ;;  %v3610_v24 = vsel %vm11486_vm14, %v4190_v7, 0.0  ;;  %4538 = vmatprep.subr.msk.bf16.mxu0 %vm8657_vm11, %v11244_v43  ;;  %vm11487_vm4 = vcmp.eq.s32.totalorder %v11225_v12, %v7553_v31  ;;  %vm11492_vm0 = vmmov %vm11486_vm14  ;;  %3600 = vadd.xlane.f32.xlu1 %v3599_v40  ;;  %v11501_v40 = vld [vmem:[#allocation170_spill] sm:$0xff] }
 0x307   : > { %11483 = vst [vmem:[#allocation80_spill] sm:$0xff] %v11482_v17  ;;  %vm11488_vm10 = vcmp.eq.s32.totalorder %v6501_v57, %v7553_v31  ;;  %v11489_v0 = vmov 0  ;;  %v3614_v3 = vsel %vm11492_vm0, %v4192_v30, 0.0  ;;  %vm11493_vm8 = vcmp.eq.s32.totalorder %v6528_v27, %v7736_v39  ;;  %v11538_v17 = vld [vmem:[#allocation171_spill] sm:$0xff] }
 0x308   : > { %vm8680_vm7 = vmpackc.low %vm11488_vm10, %vm11487_vm4  ;;  %v4194_v7 = vsel %vm11493_vm8, 1.0, %v11218_v20  ;;  %vm11494_vm12 = vcmp.eq.s32.totalorder %v11267_v59, %v7736_v39  ;;  %vm11495_vm4 = vcmp.eq.s32.totalorder %v11419_v33, %v7553_v31  ;;  %vm11496_vm10 = vcmp.eq.s32.totalorder %v11420_v56, %v7553_v31  ;;  %3604 = vadd.xlane.f32.xlu0 %v3603_v34 }
 0x309   : > { %v11490_v0 = vsel %vm8680_vm7, 4294967295, %v11489_v0  ;;  %v4196_v12 = vsel %vm11494_vm12, 1.0, %v11218_v20  ;;  %vm8701_vm0 = vmpackc.low %vm11496_vm10, %vm11495_vm4  ;;  %v11497_v57 = vmov 0  ;;  %v3607_v30 = vadd.f32 %v7867_v58, %v3606_v19  ;;  %4332 = vmatpush1.bf16.msk.msra.mxu1 %vm8680_vm7, %v11244_v43 }
 0x30a   : > { %11491 = vst [vmem:[#allocation70_spill] sm:$0xff] %v11490_v0  ;;  %v11498_v57 = vsel %vm8701_vm0, 4294967295, %v11497_v57  ;;  %vm11500_vm12 = vcmp.eq.s32.totalorder %v11477_v48, %v7736_v39  ;;  %vm11502_vm4 = vcmp.eq.s32.totalorder %v6504_v13, %v7736_v39  ;;  %vm11503_vm10 = vcmp.eq.s32.totalorder %v6507_v4, %v7736_v39  ;;  %4540 = vmatpush1.bf16.msk.msra.mxu0 %vm8701_vm0, %v11244_v43 }
 0x30b   : > { %11499 = vst [vmem:[#allocation19_spill] sm:$0xff] %v11498_v57  ;;  %v8712_v54 = vsel %vm11500_vm12, 1.0, %v11218_v20  ;;  %vm8725_vm8 = vmpackc.low %vm11503_vm10, %vm11502_vm4  ;;  %v11504_v58 = vmov 0  ;;  %v3611_v19 = vadd.f32 %v7914_v29, %v3610_v24  ;;  %vm11508_vm4 = vcmp.eq.s32.totalorder %v11296_v28, %v7736_v39  ;;  %3608 = vadd.xlane.f32.xlu1 %v3607_v30 }
 0x30c   : > { %v11505_v58 = vsel %vm8725_vm8, 4294967295, %v11504_v58  ;;  %v4198_v33 = vsel %vm11508_vm4, 1.0, %v11218_v20  ;;  %4334 = vmatprep.subr.msk.bf16.mxu1 %vm8725_vm8, %v11244_v43  ;;  %vm11509_vm10 = vcmp.eq.s32.totalorder %v11448_v47, %v7736_v39  ;;  %vm11510_vm14 = vcmp.eq.s32.totalorder %v11449_v26, %v7736_v39 }
 0x30d   : > { %11506 = vst [vmem:[#allocation16_spill] sm:$0xff] %v11505_v58  ;;  %vm8754_vm12 = vmpackc.low %vm11510_vm14, %vm11509_vm10  ;;  %v11511_v29 = vmov 0  ;;  %v3615_v24 = vadd.f32 %v8002_v63, %v3614_v3  ;;  %vm11514_vm4 = vcmask 523264   ;;  %vm11516_vm7 = vcmp.eq.s32.totalorder %v11297_v8, %v7736_v39  ;;  %3612 = vadd.xlane.f32.xlu0 %v3611_v19 }
 0x30e   : > { %v11512_v29 = vsel %vm8754_vm12, 4294967295, %v11511_v29  ;;  %v3618_v0 = vsel %vm11514_vm4, %v4194_v7, 0.0  ;;  %vm11515_vm11 = vmmov %vm11514_vm4  ;;  %v4200_v58 = vsel %vm11516_vm7, 1.0, %v11218_v20  ;;  %4542 = vmatprep.subr.msk.bf16.mxu0 %vm8754_vm12, %v11244_v43  ;;  %vm11517_vm14 = vcmp.eq.s32.totalorder %v6504_v13, %v7553_v31  ;;  %v11523_v7 = vld [vmem:[#allocation81_spill] sm:$0xff] }
 0x30f   : > { %11513 = vst [vmem:[#allocation113_spill] sm:$0xff] %v11512_v29  ;;  %v3622_v57 = vsel %vm11515_vm11, %v4196_v12, 0.0  ;;  %vm11518_vm10 = vcmp.eq.s32.totalorder %v6507_v4, %v7553_v31  ;;  %v11519_v63 = vmov 0  ;;  %vm11522_vm7 = vcmp.eq.s32.totalorder %v11501_v40, %v7736_v39  ;;  %3616 = vadd.xlane.f32.xlu1 %v3615_v24  ;;  %v11563_v24 = vld [vmem:[#allocation142_spill] sm:$0xff] }
 0x310   : > { %vm8774_vm8 = vmpackc.low %vm11518_vm10, %vm11517_vm14  ;;  %v8784_v3 = vsel %vm11522_vm7, 1.0, %v11218_v20  ;;  %vm11524_vm14 = vcmp.eq.s32.totalorder %v11448_v47, %v7553_v31  ;;  %vm11525_vm10 = vcmp.eq.s32.totalorder %v11449_v26, %v7553_v31  ;;  %v11526_v13 = vmov 0 }
 0x311   : > { %v11520_v63 = vsel %vm8774_vm8, 4294967295, %v11519_v63  ;;  %vm8796_vm11 = vmpackc.low %vm11525_vm10, %vm11524_vm14  ;;  %vm11530_vm12 = vcmp.eq.s32.totalorder %v11320_v52, %v7736_v39  ;;  %vm11531_vm0 = vcmp.eq.s32.totalorder %v11321_v38, %v7736_v39  ;;  %4336 = vmatpush1.bf16.msk.msra.mxu1 %vm8774_vm8, %v11244_v43  ;;  %vm11532_vm14 = vcmp.eq.s32.totalorder %v6528_v27, %v7736_v39 }
 0x312   : > { %11521 = vst [vmem:[#allocation112_spill] sm:$0xff] %v11520_v63  ;;  %v11527_v13 = vsel %vm8796_vm11, 4294967295, %v11526_v13  ;;  %vm11529_vm7 = vmmov %vm11514_vm4  ;;  %v4202_v34 = vsel %vm11530_vm12, 1.0, %v11218_v20  ;;  %v4204_v12 = vsel %vm11531_vm0, 1.0, %v11218_v20  ;;  %vm11533_vm10 = vcmp.eq.s32.totalorder %v11267_v59, %v7736_v39  ;;  %v11539_v63 = vld [vmem:[#allocation78_spill] sm:$0xff]  ;;  %4544 = vmatpush1.bf16.msk.msra.mxu0 %vm8796_vm11, %v11244_v43 }
 0x313   : > { %11528 = vst [vmem:[#allocation115_spill] sm:$0xff] %v11527_v13  ;;  %v3626_v4 = vsel %vm11529_vm7, %v4198_v33, 0.0  ;;  %vm8820_vm7 = vmpackc.low %vm11533_vm10, %vm11532_vm14  ;;  %v11534_v33 = vmov 0  ;;  %v3619_v30 = vadd.f32 %v8008_v9, %v3618_v0  ;;  %v3623_v47 = vadd.f32 %v8014_v2, %v3622_v57 }
 0x314   : > { %v11535_v33 = vsel %vm8820_vm7, 4294967295, %v11534_v33  ;;  %vm11537_vm12 = vmmov %vm11514_vm4  ;;  %4338 = vmatprep.subr.msk.bf16.mxu1 %vm8820_vm7, %v11244_v43  ;;  %vm11540_vm14 = vcmp.eq.s32.totalorder %v11478_v1, %v7736_v39  ;;  %vm11541_vm10 = vcmp.eq.s32.totalorder %v11477_v48, %v7736_v39  ;;  %v11542_v9 = vmov 0 }
 0x315   : > { %11536 = vst [vmem:[#allocation114_spill] sm:$0xff] %v11535_v33  ;;  %v3630_v29 = vsel %vm11537_vm12, %v4200_v58, 0.0  ;;  %vm8845_vm12 = vmpackc.low %vm11541_vm10, %vm11540_vm14  ;;  %vm11547_vm7 = vcmp.eq.s32.totalorder %v11330_v44, %v7736_v39  ;;  %vm11548_vm14 = vcmp.eq.s32.totalorder %v6528_v27, %v7553_v31  ;;  %vm11549_vm10 = vcmp.eq.s32.totalorder %v11267_v59, %v7553_v31  ;;  %3620 = vadd.xlane.f32.xlu0 %v3619_v30 }
 0x316   : > { %v11543_v9 = vsel %vm8845_vm12, 4294967295, %v11542_v9  ;;  %vm11545_vm0 = vmmov %vm11514_vm4  ;;  %v4206_v57 = vsel %vm11547_vm7, 1.0, %v11218_v20  ;;  %4546 = vmatprep.subr.msk.bf16.mxu0 %vm8845_vm12, %v11244_v43  ;;  %v11550_v58 = vmov 0  ;;  %v11559_v59 = vmov 0  ;;  %3624 = vadd.xlane.f32.xlu1 %v3623_v47 }
 0x317   : > { %11544 = vst [vmem:[#allocation117_spill] sm:$0xff] %v11543_v9  ;;  %v3634_v2 = vsel %vm11545_vm0, %v4202_v34, 0.0  ;;  %vm11546_vm8 = vmmov %vm11545_vm0  ;;  %v11555_v9 = vld [vmem:[#allocation172_spill] sm:$0xff]  ;;  %vm11556_vm0 = vcmp.eq.s32.totalorder %v11337_v11, %v7736_v39  ;;  %vm11570_vm11 = vcmask 523264   ;;  %vm11578_vm12 = vcmask 523264  }
 0x318   : > { %v3638_v0 = vsel %vm11546_vm8, %v4204_v12, 0.0  ;;  %vm8866_vm4 = vmpackc.low %vm11549_vm10, %vm11548_vm14  ;;  %vm11553_vm8 = vcmp.eq.s32.totalorder %v11523_v7, %v7736_v39  ;;  %v11554_v12 = vld [vmem:[#allocation102_spill] sm:$0xff]  ;;  %v4208_v27 = vsel %vm11556_vm0, 1.0, %v11218_v20  ;;  %vm11557_vm14 = vcmp.eq.s32.totalorder %v11478_v1, %v7553_v31 }
 0x319   : > { %v11551_v58 = vsel %vm8866_vm4, 4294967295, %v11550_v58  ;;  %v8874_v34 = vsel %vm11553_vm8, 1.0, %v11218_v20  ;;  %v3627_v33 = vadd.f32 %v11554_v12, %v3626_v4  ;;  %vm11558_vm10 = vcmp.eq.s32.totalorder %v11477_v48, %v7553_v31  ;;  %v11561_v12 = vld [vmem:[#allocation77_spill] sm:$0xff]  ;;  %4340 = vmatpush1.bf16.msk.msra.mxu1 %vm8866_vm4, %v11244_v43 }
 0x31a   : > { %11552 = vst [vmem:[#allocation116_spill] sm:$0xff] %v11551_v58  ;;  %vm8889_vm8 = vmpackc.low %vm11558_vm10, %vm11557_vm14  ;;  %v3631_v4 = vadd.f32 %v8159_v51, %v3630_v29  ;;  %vm11562_vm0 = vcmp.eq.s32.totalorder %v11539_v63, %v7736_v39  ;;  %vm11564_vm14 = vcmp.eq.s32.totalorder %v11296_v28, %v7736_v39  ;;  %vm11565_vm10 = vcmp.eq.s32.totalorder %v11297_v8, %v7736_v39  ;;  %v11569_v58 = vld [vmem:[#allocation143_spill] sm:$0xff] }
 0x31b   : > { %v11560_v59 = vsel %vm8889_vm8, 4294967295, %v11559_v59  ;;  %v8900_v19 = vsel %vm11562_vm0, 1.0, %v11218_v20  ;;  %vm8913_vm7 = vmpackc.low %vm11565_vm10, %vm11564_vm14  ;;  %v11566_v51 = vmov 0  ;;  %v8918_v29 = vadd.f32 %v8206_v53, %v3634_v2  ;;  %4548 = vmatpush1.bf16.msk.msra.mxu0 %vm8889_vm8, %v11244_v43  ;;  %3628 = vadd.xlane.f32.xlu0 %v3627_v33 }
 0x31c   : > { %v11567_v51 = vsel %vm8913_vm7, 4294967295, %v11566_v51  ;;  %v8921_v1 = vadd.f32 %v8227_v55, %v3638_v0  ;;  %v8930_v13 = vsel %vm11570_vm11, %v4206_v57, 0.0  ;;  %vm11571_vm14 = vcmp.eq.s32.totalorder %v11115_v32, %v7736_v39  ;;  %4342 = vmatprep.subr.msk.bf16.mxu1 %vm8913_vm7, %v11244_v43  ;;  %vm11579_vm7 = vmmov %vm11578_vm12  ;;  %3632 = vadd.xlane.f32.xlu1 %v3631_v4 }
 0x31d   : > { %11568 = vst [vmem:[#allocation118_spill] sm:$0xff] %v11567_v51  ;;  %v4216_v53 = vsel %vm11571_vm14, 1.0, %v11218_v20  ;;  %vm11572_vm10 = vcmp.eq.s32.totalorder %v11507_v49, %v7736_v39  ;;  %vm11573_vm11 = vcmp.eq.s32.totalorder %v11501_v40, %v7736_v39  ;;  %v11574_v55 = vmov 0  ;;  %vm11580_vm8 = vmmov %vm11579_vm7  ;;  %v11585_v51 = vld [vmem:[#allocation74_spill] sm:$0xff] }
 0x31e   : > { %vm8948_vm4 = vmpackc.low %vm11573_vm11, %vm11572_vm10  ;;  %vm11577_vm14 = vcmp.eq.s32.totalorder %v11555_v9, %v7736_v39  ;;  %v8959_v2 = vsel %vm11578_vm12, %v4208_v27, 0.0  ;;  %v3662_v0 = vsel %vm11579_vm7, %v4216_v53, 0.0  ;;  %v3670_v57 = vsel %vm11580_vm8, %v8320_v23, 0.0 }
 0x31f   : > { %v11575_v55 = vsel %vm8948_vm4, 4294967295, %v11574_v55  ;;  %v8956_v32 = vsel %vm11577_vm14, 1.0, %v11218_v20  ;;  %4550 = vmatprep.subr.msk.bf16.mxu0 %vm8948_vm4, %v11244_v43  ;;  %vm11581_vm10 = vcmp.eq.s32.totalorder %v11296_v28, %v7553_v31  ;;  %vm11582_vm11 = vcmp.eq.s32.totalorder %v11297_v8, %v7553_v31  ;;  %vm11587_vm14 = vmmov %vm11579_vm7  ;;  %3636 = vadd.xlane.f32.xlu0 %v8918_v29 }
 0x320   : > { %11576 = vst [vmem:[#allocation167_spill] sm:$0xff] %v11575_v55  ;;  %vm8975_vm12 = vmpackc.low %vm11582_vm11, %vm11581_vm10  ;;  %v11583_v27 = vmov 0  ;;  %vm11586_vm8 = vcmp.eq.s32.totalorder %v11563_v24, %v7736_v39  ;;  %v8988_v53 = vadd.f32 %v8265_v50, %v3662_v0  ;;  %v8991_v28 = vadd.f32 %v8308_v42, %v3670_v57  ;;  %3640 = vadd.xlane.f32.xlu1 %v8921_v1 }
 0x321   : > { %v11584_v27 = vsel %vm8975_vm12, 4294967295, %v11583_v27  ;;  %v8985_v23 = vsel %vm11586_vm8, 1.0, %v11218_v20  ;;  %v3678_v8 = vsel %vm11587_vm14, %v8326_v25, 0.0  ;;  %vm11588_vm10 = vcmp.eq.s32.totalorder %v11507_v49, %v7553_v31  ;;  %vm11592_vm8 = vmmov %vm11587_vm14  ;;  %4344 = vmatpush1.bf16.msk.msra.mxu1 %vm8975_vm12, %v11244_v43 }
 0x322   : > { %vm11589_vm11 = vcmp.eq.s32.totalorder %v11501_v40, %v7553_v31  ;;  %v11590_v55 = vmov 0  ;;  %v9006_v50 = vadd.f32 %v8314_v22, %v3678_v8  ;;  %v3686_v42 = vsel %vm11592_vm8, %v8400_v16, 0.0  ;;  %vm11594_vm0 = vmmov %vm11592_vm8 }
 0x323   : > { %vm9001_vm7 = vmpackc.low %vm11589_vm11, %vm11588_vm10  ;;  %vm11593_vm14 = vcmp.eq.s32.totalorder %v11266_v6, %v7553_v31  ;;  %v3694_v47 = vsel %vm11594_vm0, %v8406_v62, 0.0  ;;  %vm11595_vm10 = vcmp.eq.s32.totalorder %v11320_v52, %v7736_v39  ;;  %vm11596_vm11 = vcmp.eq.s32.totalorder %v11321_v38, %v7736_v39 }
 0x324   : > { %v11591_v55 = vsel %vm9001_vm7, 4294967295, %v11590_v55  ;;  %v4231_v25 = vsel %vm11593_vm14, 1.0, %v11218_v20  ;;  %vm9025_vm4 = vmpackc.low %vm11596_vm11, %vm11595_vm10  ;;  %v11597_v22 = vmov 0  ;;  %v9034_v6 = vadd.f32 %v8351_v41, %v3686_v42  ;;  %4552 = vmatpush1.bf16.msk.msra.mxu0 %vm9001_vm7, %v11244_v43 }
 0x325   : > { %v11598_v22 = vsel %vm9025_vm4, 4294967295, %v11597_v22  ;;  %v9036_v16 = vadd.f32 %v4231_v25, %v3694_v47  ;;  %vm11599_vm14 = vcmp.eq.s32.totalorder %v11295_v18, %v7553_v31  ;;  %vm11600_vm10 = vmmov %vm11594_vm0  ;;  %4346 = vmatprep.subr.msk.bf16.mxu1 %vm9025_vm4, %v11244_v43  ;;  %vm11601_vm11 = vcmp.eq.s32.totalorder %v11538_v17, %v7736_v39 }
 0x326   : > { %v4235_v62 = vsel %vm11599_vm14, 1.0, %v11218_v20  ;;  %v3702_v30 = vsel %vm11600_vm10, %v8428_v35, 0.0  ;;  %vm11602_vm0 = vcmp.eq.s32.totalorder %v11523_v7, %v7736_v39  ;;  %v11603_v41 = vmov 0 }
 0x327   : > { %vm9056_vm8 = vmpackc.low %vm11602_vm0, %vm11601_vm11  ;;  %v9060_v18 = vadd.f32 %v4235_v62, %v3702_v30  ;;  %vm11605_vm14 = vcmp.eq.s32.totalorder %v11329_v15, %v7553_v31  ;;  %v3710_v0 = vsel %vm11600_vm10, %v8434_v5, 0.0  ;;  %vm11606_vm4 = vcmp.eq.s32.totalorder %v11162_v46, %v7553_v31 }
 0x328   : > { %v11604_v41 = vsel %vm9056_vm8, 4294967295, %v11603_v41  ;;  %v4239_v35 = vsel %vm11605_vm14, 1.0, %v11218_v20  ;;  %v4243_v57 = vsel %vm11606_vm4, 1.0, %v11218_v20  ;;  %4554 = vmatprep.subr.msk.bf16.mxu0 %vm9056_vm8, %v11244_v43  ;;  %vm11607_vm0 = vcmp.eq.s32.totalorder %v11320_v52, %v7553_v31  ;;  %vm11611_vm14 = vmmov %vm11600_vm10 }
 0x329   : > { %vm11608_vm11 = vcmp.eq.s32.totalorder %v11321_v38, %v7553_v31  ;;  %v11609_v15 = vmov 0  ;;  %v9085_v5 = vadd.f32 %v4239_v35, %v3710_v0  ;;  %v3718_v46 = vsel %vm11611_vm14, %v8506_v14, 0.0 }
 0x32a   : > { %vm9081_vm12 = vmpackc.low %vm11608_vm11, %vm11607_vm0  ;;  %vm11612_vm4 = vcmp.eq.s32.totalorder %v11170_v45, %v7553_v31  ;;  %v3726_v52 = vsel %vm11600_vm10, %v8543_v61, 0.0  ;;  %vm11613_vm0 = vcmp.eq.s32.totalorder %v11538_v17, %v7553_v31  ;;  %vm11614_vm11 = vcmp.eq.s32.totalorder %v11523_v7, %v7553_v31 }
 0x32b   : > { %v11610_v15 = vsel %vm9081_vm12, 4294967295, %v11609_v15  ;;  %v4247_v8 = vsel %vm11612_vm4, 1.0, %v11218_v20  ;;  %vm9101_vm8 = vmpackc.low %vm11614_vm11, %vm11613_vm0  ;;  %v11615_v38 = vmov 0  ;;  %v9105_v14 = vadd.f32 %v4243_v57, %v3718_v46  ;;  %4348 = vmatpush1.bf16.msk.msra.mxu1 %vm9081_vm12, %v11244_v43  ;;  %v11654_v46 = vld [vmem:[#allocation46_spill] sm:$0xff] }
 0x32c   : > { %v11616_v38 = vsel %vm9101_vm8, 4294967295, %v11615_v38  ;;  %v9107_v42 = vadd.f32 %v4247_v8, %v3726_v52  ;;  %vm11617_vm14 = vcmp.eq.s32.totalorder %v11420_v56, %v7553_v31  ;;  %vm11618_vm4 = vmmov %vm11600_vm10  ;;  %vm11619_vm10 = vcmp.eq.s32.totalorder %v11330_v44, %v7736_v39  ;;  %4556 = vmatpush1.bf16.msk.msra.mxu0 %vm9101_vm8, %v11244_v43 }
 0x32d   : > { %v4251_v45 = vsel %vm11617_vm14, 1.0, %v11218_v20  ;;  %v3734_v61 = vsel %vm11618_vm4, %v8594_v37, 0.0  ;;  %vm11620_vm0 = vcmp.eq.s32.totalorder %v11337_v11, %v7736_v39  ;;  %v11621_v33 = vmov 0 }
 0x32e   : > { %vm9124_vm11 = vmpackc.low %vm11620_vm0, %vm11619_vm10  ;;  %v9128_v4 = vadd.f32 %v4251_v45, %v3734_v61  ;;  %vm11623_vm14 = vcmp.eq.s32.totalorder %v11449_v26, %v7553_v31  ;;  %v3742_v37 = vsel %vm11618_vm4, %v8665_v60, 0.0  ;;  %vm11624_vm12 = vcmp.eq.s32.totalorder %v11477_v48, %v7553_v31 }
 0x32f   : > { %v11622_v33 = vsel %vm9124_vm11, 4294967295, %v11621_v33  ;;  %v4255_v56 = vsel %vm11623_vm14, 1.0, %v11218_v20  ;;  %v4259_v25 = vsel %vm11624_vm12, 1.0, %v11218_v20  ;;  %4350 = vmatprep.subr.msk.bf16.mxu1 %vm9124_vm11, %v11244_v43  ;;  %vm11625_vm10 = vcmp.eq.s32.totalorder %v11561_v12, %v7736_v39  ;;  %vm11629_vm12 = vmmov %vm11618_vm4 }
 0x330   : > { %vm11626_vm0 = vcmp.eq.s32.totalorder %v11539_v63, %v7736_v39  ;;  %v11627_v26 = vmov 0  ;;  %v9156_v48 = vadd.f32 %v4255_v56, %v3742_v37  ;;  %v3750_v60 = vsel %vm11629_vm12, %v8712_v54, 0.0  ;;  %vm11631_vm11 = vmmov %vm11629_vm12  ;;  %v4698_v56 = vld [vmem:[%s10053_s3] ss:$16 sps:$4 sm:$0xff]  }
 0x331   : > { %vm9152_vm14 = vmpackc.low %vm11626_vm0, %vm11625_vm10  ;;  %vm11630_vm4 = vcmp.eq.s32.totalorder %v11501_v40, %v7553_v31  ;;  %v3758_v62 = vsel %vm11631_vm11, %v8784_v3, 0.0  ;;  %vm11632_vm10 = vcmp.eq.s32.totalorder %v11330_v44, %v7553_v31  ;;  %vm11633_vm0 = vcmp.eq.s32.totalorder %v11337_v11, %v7553_v31 }
 0x332   : > { %v11628_v26 = vsel %vm9152_vm14, 4294967295, %v11627_v26  ;;  %v4263_v47 = vsel %vm11630_vm4, 1.0, %v11218_v20  ;;  %4558 = vmatprep.subr.msk.bf16.mxu0 %vm9152_vm14, %v11244_v43  ;;  %vm9175_vm8 = vmpackc.low %vm11633_vm0, %vm11632_vm10  ;;  %v11634_v54 = vmov 0  ;;  %v9179_v30 = vadd.f32 %v4259_v25, %v3750_v60  ;;  %v4701_v25 = vld [vmem:[%s10053_s3 + $0x24] ss:$16 sps:$4 sm:$0xff]  }
 0x333   : > { %v11635_v54 = vsel %vm9175_vm8, 4294967295, %v11634_v54  ;;  %v9181_v40 = vadd.f32 %v4263_v47, %v3758_v62  ;;  %vm11636_vm11 = vcmp.eq.s32.totalorder %v11523_v7, %v7553_v31  ;;  %v3766_v35 = vsel %vm11629_vm12, %v8874_v34, 0.0  ;;  %4352 = vmatpush1.bf16.msk.msra.mxu1 %vm9175_vm8, %v11244_v43  ;;  %v4724_v60 = vld [vmem:[%s10052_s2 + $0xc] ss:$16 sps:$4 sm:$0xff]   ;;  %v4728_v47 = vld [vmem:[%s10052_s2 + $0x44] ss:$16 sps:$4 sm:$0xff]  }
 0x334   : > { %v4267_v3 = vsel %vm11636_vm11, 1.0, %v11218_v20  ;;  %vm11637_vm4 = vcmp.eq.s32.totalorder %v11561_v12, %v7553_v31  ;;  %vm11638_vm10 = vcmp.eq.s32.totalorder %v11539_v63, %v7553_v31  ;;  %v11639_v44 = vmov 0  ;;  %3406 = vmatprep.mubr.bf16.mxu0 %v4724_v60  ;;  %v11715_v60 = vld [vmem:[#allocation92_spill] sm:$0xff] }
 0x335   : > { %vm9197_vm0 = vmpackc.low %vm11638_vm10, %vm11637_vm4  ;;  %vm11641_vm11 = vcmp.eq.s32.totalorder %v11569_v58, %v7736_v39  ;;  %v9205_v7 = vadd.f32 %v4267_v3, %v3766_v35  ;;  %vm11643_vm14 = vcmask 523264   ;;  %vm11644_vm4 = vcmp.eq.s32.totalorder %v11563_v24, %v7736_v39  ;;  %v4703_v3 = vld [vmem:[%s10053_s3 + $0x20] ss:$16 sps:$4 sm:$0xff]  }
 0x336   : > { %v11640_v44 = vsel %vm9197_vm0, 4294967295, %v11639_v44  ;;  %v4212_v11 = vsel %vm11641_vm11, 1.0, %v11218_v20  ;;  %vm11642_vm12 = vmmov %vm11638_vm10  ;;  %v3774_v34 = vsel %vm11643_vm14, %v8900_v19, 0.0  ;;  %v11646_v29 = vmov 0  ;;  %4560 = vmatpush1.bf16.msk.msra.mxu0 %vm9197_vm0, %v11244_v43 }
 0x337   : > { %v4271_v1 = vsel %vm11642_vm12, 1.0, %v11218_v20  ;;  %vm11645_vm10 = vmmov %vm11641_vm11  ;;  %vm11648_vm14 = vcmp.eq.s32.totalorder %v11555_v9, %v7553_v31  ;;  %vm11649_vm8 = vcmask 523264   ;;  %v11652_v57 = vmov 0 }
 0x338   : > { %vm9222_vm11 = vmpackc.low %vm11645_vm10, %vm11644_vm4  ;;  %v9228_v63 = vadd.f32 %v4271_v1, %v3774_v34  ;;  %v4275_v19 = vsel %vm11648_vm14, 1.0, %v11218_v20  ;;  %v3782_v0 = vsel %vm11649_vm8, %v8956_v32, 0.0  ;;  %vm11650_vm4 = vcmp.eq.s32.totalorder %v11585_v51, %v7736_v39 }
 0x339   : > { %v11647_v29 = vsel %vm9222_vm11, 4294967295, %v11646_v29  ;;  %4354 = vmatprep.subr.msk.bf16.mxu1 %vm9222_vm11, %v11244_v43  ;;  %vm11651_vm10 = vcmp.eq.s32.totalorder %v11555_v9, %v7736_v39  ;;  %v3643_v32 = vadd.f32 %v8233_v21, %v8930_v13  ;;  %v3647_v8 = vadd.f32 %v11654_v46, %v8959_v2  ;;  %vm11655_vm14 = vmmov %vm11649_vm8  ;;  %v11677_v46 = vld [vmem:[#allocation31_spill] sm:$0xff] }
 0x33a   : > { %vm9248_vm12 = vmpackc.low %vm11651_vm10, %vm11650_vm4  ;;  %v9256_v52 = vadd.f32 %v4275_v19, %v3782_v0  ;;  %v3650_v45 = vsel %vm11649_vm8, %v8985_v23, 0.0  ;;  %v3654_v61 = vsel %vm11655_vm14, %v4212_v11, 0.0  ;;  %vm11656_vm4 = vcmp.eq.s32.totalorder %v11563_v24, %v7553_v31  ;;  %v4704_v11 = vld [vmem:[%s10053_s3 + $0x44] ss:$16 sps:$4 sm:$0xff]   ;;  %v4706_v19 = vld [vmem:[%s10053_s3 + $0x40] ss:$16 sps:$4 sm:$0xff]  }
 0x33b   : > { %v11653_v57 = vsel %vm9248_vm12, 4294967295, %v11652_v57  ;;  %4562 = vmatprep.subr.msk.bf16.mxu0 %vm9248_vm12, %v11244_v43  ;;  %3644 = vadd.xlane.f32.xlu0 %v3643_v32  ;;  %vm11657_vm10 = vcmp.eq.s32.totalorder %v11569_v58, %v7553_v31  ;;  %vm11660_vm8 = vcmp.eq.s32.totalorder %v11585_v51, %v7553_v31  ;;  %vm11661_vm14 = vcmp.eq.s32.totalorder %v11555_v9, %v7553_v31  ;;  %v4722_v58 = vld [vmem:[%s10052_s2 + $0x8] ss:$16 sps:$4 sm:$0xff]   ;;  %v11673_v32 = vld [vmem:[#allocation104_spill] sm:$0xff] }
 0x33c   : > { %3648 = vadd.xlane.f32.xlu1 %v3647_v8  ;;  %vm9270_vm11 = vmpackc.low %vm11657_vm10, %vm11656_vm4  ;;  %v11662_v13 = vmov 0  ;;  %v4209_v2 = vsel %vm11656_vm4, 1.0, %v11218_v20  ;;  %v4211_v23 = vsel %vm11657_vm10, 1.0, %v11218_v20  ;;  %v11671_v0 = vld [vmem:[#allocation103_spill] sm:$0xff]  ;;  %vm11678_vm10 = vnez %v11677_v46  ;;  %v4709_v8 = vld [vmem:[%s10053_s3 + $0x60] ss:$16 sps:$4 sm:$0xff]  }
 0x33d   : > { %4356 = vmatpush1.bf16.msk.msra.mxu1 %vm9270_vm11, %v11244_v43  ;;  %vm9283_vm12 = vmpackc.low %vm11661_vm14, %vm11660_vm8  ;;  %v3651_v37 = vadd.f32 %v4209_v2, %v3650_v45  ;;  %v3655_v24 = vadd.f32 %v4211_v23, %v3654_v61  ;;  %vm11672_vm8 = vnez %v11671_v0  ;;  %vm11674_vm14 = vnez %v11673_v32  ;;  %v11679_v45 = vld [vmem:[#allocation35_spill] sm:$0xff]  ;;  %v11690_v23 = vld [vmem:[#allocation80_spill] sm:$0xff] }
 0x33e   : > { %v11663_v13 = vsel %vm9283_vm12, 4294967295, %v11662_v13  ;;  %4564 = vmatpush1.bf16.msk.msra.mxu0 %vm9283_vm12, %v11244_v43  ;;  %4358 = vmatprep.subr.msk.bf16.mxu1 %vm7805_vm3, %v11244_v43  ;;  %v11684_v61 = vld [vmem:[#allocation47_spill] sm:$0xff] }
 0x33f   : > { %3652 = vadd.xlane.f32.xlu0 %v3651_v37  ;;  %v11687_v2 = vld [vmem:[#allocation11_spill] sm:$0xff]  ;;  %v11698_v37 = vld [vmem:[#allocation117_spill] sm:$0xff] }
 0x340   : > { %3656 = vadd.xlane.f32.xlu1 %v3655_v24  ;;  %3108 = vmatmul.mubr.bf16.vlgmr.msra.gmra.mrb[0].mxu1 %v4698_v56  ;;  %v11694_v56 = vld [vmem:[#allocation113_spill] sm:$0xff]  ;;  %v11711_v24 = vld [vmem:[#allocation87_spill] sm:$0xff] }
 0x341   : > { %4360 = vmatpush1.bf16.msk.msra.mxu1 %vm7781_vm5, %v11244_v43  ;;  %3117 = vmatprep.mubr.bf16.mxu1 %v4701_v25  ;;  %v11713_v25 = vld [vmem:[#allocation89_spill] sm:$0xff] }
 0x342   : > { %4362 = vmatprep.subr.msk.bf16.mxu1 %vm7857_vm2, %v11244_v43  ;;  %3407 = vmatmul.mubr.bf16.vlgmr.msra.gmra.mrb[128].mxu0 %v4722_v58  ;;  %v4715_v58 = vld [vmem:[%s10053_s3 + $0x4c] ss:$16 sps:$4 sm:$0xff]  }
 0x344   : > { %3664 = vadd.xlane.f32.xlu1 %v8988_v53  ;;  %v4731_v53 = vld [vmem:[%s10052_s2 + $0x64] ss:$16 sps:$4 sm:$0xff]  }
 0x345   : > { %4364 = vmatpush1.bf16.msk.msra.mxu1 %vm7898_vm1, %v11244_v43 }
 0x346   : > { %4366 = vmatprep.subr.msk.bf16.mxu1 %vm7953_vm13, %v11244_v43 }
 0x348   : > { %3672 = vadd.xlane.f32.xlu1 %v8991_v28  ;;  %3118 = vmatmul.mubr.bf16.gmra.mrb[4].mxu1 %v4703_v3  ;;  %v4707_v28 = vld [vmem:[%s10053_s3 + $0x64] ss:$16 sps:$4 sm:$0xff]  }
 0x349   : > { %4368 = vmatpush1.bf16.msk.msra.mxu1 %vm7993_vm9, %v11244_v43  ;;  %3127 = vmatprep.mubr.bf16.mxu1 %v4704_v11  ;;  %v11717_v3 = vld [vmem:[#allocation94_spill] sm:$0xff]  ;;  %v2988_v11 = vld [vmem:[%s10053_s3 + $0x48] sm:$0xff] }
 0x34a   : > { %4370 = vmatprep.subr.msk.bf16.mxu1 %vm8052_vm6, %v11244_v43 }
 0x34c   : > { %3680 = vadd.xlane.f32.xlu1 %v9006_v50  ;;  %v11675_v50 = vld [vmem:[#allocation107_spill] sm:$0xff] }
 0x34d   : > { %4372 = vmatpush1.bf16.msk.msra.mxu1 %vm11672_vm8, %v11244_v43  ;;  %vm11676_vm4 = vnez %v11675_v50  ;;  %vm11685_vm8 = vnez %v11684_v61 }
 0x34e   : > { %4374 = vmatprep.subr.msk.bf16.mxu1 %vm11674_vm14, %v11244_v43  ;;  %vm11680_vm14 = vnez %v11679_v45 }
 0x350   : > { %3688 = vadd.xlane.f32.xlu1 %v9034_v6  ;;  %3128 = vmatmul.mubr.bf16.gmra.mrb[8].mxu1 %v4706_v19  ;;  %v4712_v6 = vld [vmem:[%s10053_s3 + $0xc] ss:$16 sps:$4 sm:$0xff]  }
 0x351   : > { %4376 = vmatpush1.bf16.msk.msra.mxu1 %vm11676_vm4, %v11244_v43  ;;  %3137 = vmatprep.mubr.bf16.mxu1 %v4707_v28  ;;  %vm11681_vm4 = vnez %v11396_v36  ;;  %v2990_v19 = vld [vmem:[%s10053_s3 + $0x58] sm:$0xff] }
 0x352   : > { %4378 = vmatprep.subr.msk.bf16.mxu1 %vm11678_vm10, %v11244_v43  ;;  %v11719_v28 = vld [vmem:[#allocation97_spill] sm:$0xff] }
 0x354   : > { %3696 = vadd.xlane.f32.xlu1 %v9036_v16  ;;  %v11682_v16 = vld [vmem:[#allocation41_spill] sm:$0xff] }
 0x355   : > { %4380 = vmatpush1.bf16.msk.msra.mxu1 %vm11680_vm14, %v11244_v43  ;;  %vm11683_vm10 = vnez %v11682_v16  ;;  %vm11686_vm14 = vnez %v11439_v10 }
 0x356   : > { %4382 = vmatprep.subr.msk.bf16.mxu1 %vm11681_vm4, %v11244_v43  ;;  %vm11688_vm4 = vnez %v11687_v2 }
 0x358   : > { %3704 = vadd.xlane.f32.xlu1 %v9060_v18  ;;  %3138 = vmatmul.mubr.bf16.gmra.mrb[12].mxu1 %v4709_v8  ;;  %v11689_v18 = vld [vmem:[#allocation13_spill] sm:$0xff]  ;;  %v4287_v8 = vcombine.low %v2988_v11, %v2990_v19  ;;  %v4721_v11 = vld [vmem:[%s10052_s2 + $0x4] ss:$16 sps:$4 sm:$0xff]  }
 0x359   : > { %4384 = vmatpush1.bf16.msk.msra.mxu1 %vm11683_vm10, %v11244_v43  ;;  %3180 = vmatprep.mubr.bf16.mxu1 %v4712_v6  ;;  %vm11691_vm10 = vnez %v11690_v23  ;;  %v11721_v6 = vld [vmem:[#allocation99_spill] sm:$0xff]  ;;  %v11731_v19 = vld [vmem:[#allocation37_spill] sm:$0xff] }
 0x35a   : > { %4386 = vmatprep.subr.msk.bf16.mxu1 %vm11685_vm8, %v11244_v43 }
 0x35c   : > { %3712 = vadd.xlane.f32.xlu1 %v9085_v5  ;;  %v11692_v5 = vld [vmem:[#allocation19_spill] sm:$0xff] }
 0x35d   : > { %4388 = vmatpush1.bf16.msk.msra.mxu1 %vm11686_vm14, %v11244_v43  ;;  %vm11693_vm8 = vnez %v11692_v5  ;;  %vm11695_vm14 = vnez %v11694_v56 }
 0x35e   : > { %4390 = vmatprep.subr.msk.bf16.mxu1 %vm11688_vm4, %v11244_v43 }
 0x360   : > { %3720 = vadd.xlane.f32.xlu1 %v9105_v14  ;;  %v11696_v14 = vld [vmem:[#allocation115_spill] sm:$0xff] }
 0x361   : > { %4392 = vmatpush1.bf16.msk.msra.mxu1 %vm8609_vm15, %v11244_v43  ;;  %vm11697_vm4 = vnez %v11696_v14  ;;  %vm11699_vm15 = vnez %v11698_v37 }
 0x362   : > { %4394 = vmatprep.subr.msk.bf16.mxu1 %vm11691_vm10, %v11244_v43  ;;  %vm11700_vm10 = vnez %v11560_v59 }
 0x364   : > { %3728 = vadd.xlane.f32.xlu1 %v9107_v42  ;;  %v11701_v42 = vld [vmem:[#allocation167_spill] sm:$0xff] }
 0x365   : > { %4396 = vmatpush1.bf16.msk.msra.mxu1 %vm11693_vm8, %v11244_v43  ;;  %vm11702_vm8 = vnez %v11701_v42 }
 0x366   : > { %4398 = vmatprep.subr.msk.bf16.mxu1 %vm11695_vm14, %v11244_v43 }
 0x368   : > { %3736 = vadd.xlane.f32.xlu1 %v9128_v4  ;;  %v4710_v4 = vld [vmem:[%s10053_s3 + $0x8] ss:$16 sps:$4 sm:$0xff]  }
 0x369   : > { %4400 = vmatpush1.bf16.msk.msra.mxu1 %vm11697_vm4, %v11244_v43  ;;  %vm11703_vm4 = vnez %v11604_v41  ;;  %v4734_v41 = vld [vmem:[%s10052_s2 + $0x28] ss:$16 sps:$4 sm:$0xff]  }
 0x36a   : > { %4402 = vmatprep.subr.msk.bf16.mxu1 %vm11699_vm15, %v11244_v43  ;;  %vm11704_vm15 = vnez %v11616_v38 }
 0x36c   : > { %3744 = vadd.xlane.f32.xlu1 %v9156_v48  ;;  %v4713_v48 = vld [vmem:[%s10053_s3 + $0x2c] ss:$16 sps:$4 sm:$0xff]  }
 0x36d   : > { %4404 = vmatpush1.bf16.msk.msra.mxu1 %vm11700_vm10, %v11244_v43  ;;  %vm11705_vm10 = vnez %v11628_v26 }
 0x36e   : > { %4406 = vmatprep.subr.msk.bf16.mxu1 %vm11702_vm8, %v11244_v43 }
 0x370   : > { %3752 = vadd.xlane.f32.xlu1 %v9179_v30  ;;  %v11707_v30 = vld [vmem:[#allocation83_spill] sm:$0xff] }
 0x371   : > { %4408 = vmatpush1.bf16.msk.msra.mxu1 %vm9001_vm7, %v11244_v43  ;;  %vm11706_vm7 = vnez %v11653_v57 }
 0x372   : > { %4410 = vmatprep.subr.msk.bf16.mxu1 %vm11703_vm4, %v11244_v43 }
 0x374   : > { %3760 = vadd.xlane.f32.xlu1 %v9181_v40  ;;  %v11709_v40 = vld [vmem:[#allocation82_spill] sm:$0xff] }
 0x375   : > { %4412 = vmatpush1.bf16.msk.msra.mxu1 %vm11704_vm15, %v11244_v43 }
 0x376   : > { %4414 = vmatprep.subr.msk.bf16.mxu1 %vm11705_vm10, %v11244_v43  ;;  %vm11718_vm10 = vnez %v11717_v3  ;;  %v11729_v3 = vld [vmem:[#allocation33_spill] sm:$0xff] }
 0x378   : > { %3768 = vadd.xlane.f32.xlu1 %v9205_v7  ;;  %v2984_v7 = vld [vmem:[%s10053_s3 + $0x28] sm:$0xff] }
 0x379   : > { %4416 = vmatpush1.bf16.msk.msra.mxu1 %vm9197_vm0, %v11244_v43  ;;  %vm11708_vm0 = vnez %v11707_v30  ;;  %v3537_v30 = vpop.xlane.xlu0 %3536 }
 0x37a   : > { %4418 = vmatprep.subr.msk.bf16.mxu1 %vm11706_vm7, %v11244_v43  ;;  %vm11710_vm7 = vnez %v11709_v40  ;;  %v3533_v40 = vpop.xlane.xlu1 %3532 }
 0x37c   : > { %3776 = vadd.xlane.f32.xlu1 %v9228_v63  ;;  %v2986_v63 = vld [vmem:[%s10053_s3 + $0x38] sm:$0xff] }
 0x37d   : > { %4420 = vmatpush1.bf16.msk.msra.mxu1 %vm9283_vm12, %v11244_v43  ;;  %vm11714_vm12 = vnez %v11713_v25  ;;  %v3541_v25 = vpop.xlane.xlu0 %3540 }
 0x37e   : > { %4438 = vmatprep.subr.msk.bf16.mxu1 %vm11708_vm0, %v11244_v43  ;;  %vm11712_vm0 = vnez %v11711_v24  ;;  %v2994_v24 = vld [vmem:[%s10053_s3 + $0x78] sm:$0xff] }
 0x380   : > { %3784 = vadd.xlane.f32.xlu1 %v9256_v52  ;;  %3181 = vmatmul.mubr.bf16.vlgmr.msra.gmra.mrb[0].mxu1 %v4710_v4  ;;  %v4283_v52 = vcombine.low %v2984_v7, %v2986_v63  ;;  %v4717_v4 = vld [vmem:[%s10053_s3 + $0x6c] ss:$16 sps:$4 sm:$0xff]   ;;  %v11725_v7 = vld [vmem:[#allocation108_spill] sm:$0xff] }
 0x381   : > { %4440 = vmatpush1.bf16.msk.msra.mxu1 %vm11710_vm7, %v11244_v43  ;;  %3190 = vmatprep.mubr.bf16.mxu1 %v4713_v48  ;;  %vm11716_vm7 = vnez %v11715_v60  ;;  %v11723_v48 = vld [vmem:[#allocation106_spill] sm:$0xff]  ;;  %v2992_v63 = vld [vmem:[%s10053_s3 + $0x68] sm:$0xff] }
 0x382   : > { %4442 = vmatprep.subr.msk.bf16.mxu1 %vm11712_vm0, %v11244_v43  ;;  %vm11722_vm0 = vnez %v11721_v6  ;;  %v4291_v60 = vcombine.low %v2992_v63, %v2994_v24  ;;  %v11733_v6 = vld [vmem:[#allocation39_spill] sm:$0xff] }
 0x385   : > { %4444 = vmatpush1.bf16.msk.msra.mxu1 %vm11714_vm12, %v11244_v43  ;;  %vm11720_vm12 = vnez %v11719_v28  ;;  %v3549_v28 = vpop.xlane.xlu0 %3548 }
 0x386   : > { %4446 = vmatprep.subr.msk.bf16.mxu1 %vm11716_vm7, %v11244_v43  ;;  %vm3786_vm7 = vcmask 7168  }
 0x387   : > { %3788 = vst.msk [vmem:[%s9492_s26 + $0x8] sm:$0xff] %vm3786_vm7, %v3537_v30  ;;  %3787 = vst.msk [vmem:[%s9492_s26] sm:$0xff] %vm3786_vm7, %v3533_v40  ;;  %v11737_v40 = vld [vmem:[#allocation63_spill] sm:$0xff] }
 0x388   : > { %3191 = vmatmul.mubr.bf16.gmra.mrb[4].mxu1 %v4283_v52  ;;  %v11727_v52 = vld [vmem:[#allocation28_spill] sm:$0xff]  ;;  %3789 = vst.msk [vmem:[%s9492_s26 + $0x10] sm:$0xff] %vm3786_vm7, %v3541_v25  ;;  %3791 = vst.msk [vmem:[%s9492_s26 + $0x20] sm:$0xff] %vm3786_vm7, %v3549_v28 }
 0x389   : > { %4448 = vmatpush1.bf16.msk.msra.mxu1 %vm11718_vm10, %v11244_v43  ;;  %3200 = vmatprep.mubr.bf16.mxu1 %v4715_v58  ;;  %vm11724_vm10 = vnez %v11723_v48  ;;  %v3545_v58 = vpop.xlane.xlu1 %3544  ;;  %v3557_v48 = vpop.xlane.xlu0 %3556  ;;  %v11743_v25 = vld [vmem:[#allocation64_spill] sm:$0xff] }
 0x38a   : > { %4450 = vmatprep.subr.msk.bf16.mxu1 %vm11720_vm12, %v11244_v43  ;;  %vm11726_vm12 = vnez %v11725_v7  ;;  %3790 = vst.msk [vmem:[%s9492_s26 + $0x18] sm:$0xff] %vm3786_vm7, %v3545_v58  ;;  %3793 = vst.msk [vmem:[%s9492_s26 + $0x30] sm:$0xff] %vm3786_vm7, %v3557_v48  ;;  %v11739_v7 = vld [vmem:[#allocation10_spill] sm:$0xff]  ;;  %vm11744_vm15 = vnez %v11743_v25 }
 0x38d   : > { %4452 = vmatpush1.bf16.msk.msra.mxu1 %vm11722_vm0, %v11244_v43  ;;  %vm11728_vm0 = vnez %v11727_v52  ;;  %v3565_v63 = vpop.xlane.xlu0 %3564  ;;  %v11741_v52 = vld [vmem:[#allocation67_spill] sm:$0xff] }
 0x38e   : > { %4454 = vmatprep.subr.msk.bf16.mxu1 %vm11724_vm10, %v11244_v43  ;;  %vm11730_vm10 = vnez %v11729_v3  ;;  %3795 = vst.msk [vmem:[%s9492_s26 + $0x40] sm:$0xff] %vm3786_vm7, %v3565_v63  ;;  %v11745_v3 = vld [vmem:[#allocation70_spill] sm:$0xff] }
 0x390   : > { %3201 = vmatmul.mubr.bf16.gmra.mrb[8].mxu1 %v4287_v8  ;;  %v3553_v8 = vpop.xlane.xlu1 %3552 }
 0x391   : > { %4456 = vmatpush1.bf16.msk.msra.mxu1 %vm11726_vm12, %v11244_v43  ;;  %3210 = vmatprep.mubr.bf16.mxu1 %v4717_v4  ;;  %vm11732_vm12 = vnez %v11731_v19  ;;  %3792 = vst.msk [vmem:[%s9492_s26 + $0x28] sm:$0xff] %vm3786_vm7, %v3553_v8  ;;  %v11735_v4 = vld [vmem:[#allocation44_spill] sm:$0xff]  ;;  %v3573_v58 = vpop.xlane.xlu0 %3572 }
 0x392   : > { %4458 = vmatprep.subr.msk.bf16.mxu1 %vm11728_vm0, %v11244_v43  ;;  %vm11734_vm0 = vnez %v11733_v6  ;;  %3797 = vst.msk [vmem:[%s9492_s26 + $0x50] sm:$0xff] %vm3786_vm7, %v3573_v58  ;;  %v11749_v8 = vld [vmem:[#allocation112_spill] sm:$0xff]  ;;  %v11751_v6 = vld [vmem:[#allocation114_spill] sm:$0xff] }
 0x394   : > { %v3561_v30 = vpop.xlane.xlu1 %3560 }
 0x395   : > { %4460 = vmatpush1.bf16.msk.msra.mxu1 %vm11730_vm10, %v11244_v43  ;;  %vm11736_vm10 = vnez %v11735_v4  ;;  %3794 = vst.msk [vmem:[%s9492_s26 + $0x38] sm:$0xff] %vm3786_vm7, %v3561_v30  ;;  %v3581_v19 = vpop.xlane.xlu0 %3580  ;;  %v11753_v30 = vld [vmem:[#allocation116_spill] sm:$0xff] }
 0x396   : > { %4462 = vmatprep.subr.msk.bf16.mxu1 %vm11732_vm12, %v11244_v43  ;;  %vm11738_vm12 = vnez %v11737_v40  ;;  %3799 = vst.msk [vmem:[%s9492_s26 + $0x60] sm:$0xff] %vm3786_vm7, %v3581_v19  ;;  %v11755_v40 = vld [vmem:[#allocation118_spill] sm:$0xff] }
 0x398   : > { %3211 = vmatmul.mubr.bf16.gmra.mrb[12].mxu1 %v4291_v60  ;;  %v3569_v24 = vpop.xlane.xlu1 %3568 }
 0x399   : > { %4464 = vmatpush1.bf16.msk.msra.mxu1 %vm11734_vm0, %v11244_v43  ;;  %3333 = vmatprep.mubr.bf16.mxu1 %v4721_v11  ;;  %vm11740_vm0 = vnez %v11739_v7  ;;  %3796 = vst.msk [vmem:[%s9492_s26 + $0x48] sm:$0xff] %vm3786_vm7, %v3569_v24  ;;  %v11747_v11 = vld [vmem:[#allocation16_spill] sm:$0xff]  ;;  %v3589_v4 = vpop.xlane.xlu0 %3588 }
 0x39a   : > { %4466 = vmatprep.subr.msk.bf16.mxu1 %vm11736_vm10, %v11244_v43  ;;  %vm11742_vm10 = vnez %v11741_v52  ;;  %3801 = vst.msk [vmem:[%s9492_s26 + $0x70] sm:$0xff] %vm3786_vm7, %v3589_v4 }
 0x39c   : > { %v3577_v60 = vpop.xlane.xlu1 %3576 }
 0x39d   : > { %4468 = vmatpush1.bf16.msk.msra.mxu1 %vm11738_vm12, %v11244_v43  ;;  %3798 = vst.msk [vmem:[%s9492_s26 + $0x58] sm:$0xff] %vm3786_vm7, %v3577_v60  ;;  %vm11746_vm12 = vnez %v11745_v3  ;;  %v3597_v7 = vpop.xlane.xlu0 %3596  ;;  %v4727_v60 = vld [vmem:[%s10052_s2 + $0x20] ss:$16 sps:$4 sm:$0xff]  }
 0x39e   : > { %4470 = vmatprep.subr.msk.bf16.mxu1 %vm11740_vm0, %v11244_v43  ;;  %vm11748_vm0 = vnez %v11747_v11  ;;  %3803 = vst.msk [vmem:[%s9492_s26 + $0x80] sm:$0xff] %vm3786_vm7, %v3597_v7  ;;  %v4730_v11 = vld [vmem:[%s10052_s2 + $0x40] ss:$16 sps:$4 sm:$0xff]  }
 0x3a0   : > { %v3585_v28 = vpop.xlane.xlu1 %3584 }
 0x3a1   : > { %4472 = vmatpush1.bf16.msk.msra.mxu1 %vm11742_vm10, %v11244_v43  ;;  %3800 = vst.msk [vmem:[%s9492_s26 + $0x68] sm:$0xff] %vm3786_vm7, %v3585_v28  ;;  %vm11752_vm10 = vnez %v11751_v6  ;;  %v3605_v24 = vpop.xlane.xlu0 %3604 }
 0x3a2   : > { %4474 = vmatprep.subr.msk.bf16.mxu1 %vm11744_vm15, %v11244_v43  ;;  %vm11750_vm15 = vnez %v11749_v8  ;;  %3805 = vst.msk [vmem:[%s9492_s26 + $0x90] sm:$0xff] %vm3786_vm7, %v3605_v24 }
 0x3a4   : > { %v3593_v48 = vpop.xlane.xlu1 %3592 }
 0x3a5   : > { %4476 = vmatpush1.bf16.msk.msra.mxu1 %vm11746_vm12, %v11244_v43  ;;  %3802 = vst.msk [vmem:[%s9492_s26 + $0x78] sm:$0xff] %vm3786_vm7, %v3593_v48  ;;  %vm11754_vm12 = vnez %v11753_v30  ;;  %v4743_v48 = vld [vmem:[%s4859_s12] sm:$0xff] }
 0x3a6   : > { %4478 = vmatprep.subr.msk.bf16.mxu1 %vm11748_vm0, %v11244_v43  ;;  %vm11756_vm0 = vnez %v11755_v40 }
 0x3a8   : > { %v3601_v63 = vpop.xlane.xlu1 %3600 }
 0x3a9   : > { %4480 = vmatpush1.bf16.msk.msra.mxu1 %vm11750_vm15, %v11244_v43  ;;  %3804 = vst.msk [vmem:[%s9492_s26 + $0x88] sm:$0xff] %vm3786_vm7, %v3601_v63  ;;  %vm11757_vm15 = vnez %v11584_v27  ;;  %v3613_v27 = vpop.xlane.xlu0 %3612  ;;  %v4744_v63 = vld [vmem:[%s4859_s12 + $0x8] sm:$0xff] }
 0x3aa   : > { %4482 = vmatprep.subr.msk.bf16.mxu1 %vm11752_vm10, %v11244_v43  ;;  %vm11758_vm10 = vnez %v11598_v22  ;;  %3807 = vst.msk [vmem:[%s9492_s26 + $0xa0] sm:$0xff] %vm3786_vm7, %v3613_v27  ;;  %v4745_v27 = vld [vmem:[%s4859_s12 + $0x10] sm:$0xff] }
 0x3ac   : > { %v3609_v52 = vpop.xlane.xlu1 %3608 }
 0x3ad   : > { %4484 = vmatpush1.bf16.msk.msra.mxu1 %vm11754_vm12, %v11244_v43  ;;  %3806 = vst.msk [vmem:[%s9492_s26 + $0x98] sm:$0xff] %vm3786_vm7, %v3609_v52  ;;  %vm11759_vm12 = vnez %v11610_v15  ;;  %v3621_v22 = vpop.xlane.xlu0 %3620 }
 0x3ae   : > { %4486 = vmatprep.subr.msk.bf16.mxu1 %vm11756_vm0, %v11244_v43  ;;  %vm11760_vm0 = vnez %v11622_v33  ;;  %v4719_v33 = vld [vmem:[%s10052_s2] ss:$16 sps:$4 sm:$0xff]   ;;  %3809 = vst.msk [vmem:[%s9492_s26 + $0xb0] sm:$0xff] %vm3786_vm7, %v3621_v22 }
 0x3b0   : > { %v3617_v25 = vpop.xlane.xlu1 %3616 }
 0x3b1   : > { %4488 = vmatpush1.bf16.msk.msra.mxu1 %vm11757_vm15, %v11244_v43  ;;  %3808 = vst.msk [vmem:[%s9492_s26 + $0xa8] sm:$0xff] %vm3786_vm7, %v3617_v25  ;;  %vm11761_vm15 = vnez %v11635_v54  ;;  %v4725_v54 = vld [vmem:[%s10052_s2 + $0x24] ss:$16 sps:$4 sm:$0xff]  }
 0x3b2   : > { %4490 = vmatprep.subr.msk.bf16.mxu1 %vm11758_vm10, %v11244_v43  ;;  %vm11762_vm10 = vnez %v11647_v29  ;;  %v3629_v29 = vpop.xlane.xlu0 %3628 }
 0x3b3   : > { %3811 = vst.msk [vmem:[%s9492_s26 + $0xc0] sm:$0xff] %vm3786_vm7, %v3629_v29 }
 0x3b4   : > { %v3625_v15 = vpop.xlane.xlu1 %3624 }
 0x3b5   : > { %4492 = vmatpush1.bf16.msk.msra.mxu1 %vm11759_vm12, %v11244_v43  ;;  %3810 = vst.msk [vmem:[%s9492_s26 + $0xb8] sm:$0xff] %vm3786_vm7, %v3625_v15  ;;  %vm11771_vm12 = vnez %v11439_v10  ;;  %v4746_v15 = vld [vmem:[%s4859_s12 + $0x18] sm:$0xff] }
 0x3b6   : > { %4494 = vmatprep.subr.msk.bf16.mxu1 %vm11760_vm0, %v11244_v43  ;;  %v3637_v21 = vpop.xlane.xlu0 %3636  ;;  %vm11772_vm0 = vnez %v11687_v2 }
 0x3b7   : > { %3813 = vst.msk [vmem:[%s9492_s26 + $0xd0] sm:$0xff] %vm3786_vm7, %v3637_v21 }
 0x3b8   : > { %v3633_v58 = vpop.xlane.xlu1 %3632 }
 0x3b9   : > { %4496 = vmatpush1.bf16.msk.msra.mxu1 %vm11761_vm15, %v11244_v43  ;;  %3812 = vst.msk [vmem:[%s9492_s26 + $0xc8] sm:$0xff] %vm3786_vm7, %v3633_v58  ;;  %vm11773_vm15 = vnez %v11689_v18 }
 0x3ba   : > { %4498 = vmatprep.subr.msk.bf16.mxu1 %vm11762_vm10, %v11244_v43  ;;  %vm11774_vm10 = vnez %v11690_v23 }
 0x3bc   : > { %v3641_v9 = vpop.xlane.xlu1 %3640 }
 0x3bd   : > { %4500 = vmatpush1.bf16.msk.msra.mxu1 %vm9270_vm11, %v11244_v43  ;;  %3814 = vst.msk [vmem:[%s9492_s26 + $0xd8] sm:$0xff] %vm3786_vm7, %v3641_v9  ;;  %vm11770_vm11 = vnez %v11684_v61 }
 0x3be   : > { %4586 = vmatprep.subr.msk.bf16.mxu1 %vm7805_vm3, %v11244_v43  ;;  %vm11765_vm3 = vnez %v11675_v50  ;;  %v4736_v50 = vld [vmem:[%s10052_s2 + $0x2c] ss:$16 sps:$4 sm:$0xff]  }
 0x3c0   : > { %3334 = vmatmul.mubr.bf16.vlgmr.msra.gmra.mrb[0].mxu1 %v4719_v33 }
 0x3c1   : > { %4602 = vmatpush1.bf16.msk.msra.mxu1 %vm7781_vm5, %v11244_v43  ;;  %3343 = vmatprep.mubr.bf16.mxu1 %v4725_v54  ;;  %vm11764_vm5 = vnez %v11673_v32  ;;  %v4733_v32 = vld [vmem:[%s10052_s2 + $0x60] ss:$16 sps:$4 sm:$0xff]  }
 0x3c2   : > { %4587 = vmatprep.subr.msk.bf16.mxu1 %vm7857_vm2, %v11244_v43  ;;  %vm11766_vm2 = vnez %v11677_v46 }
 0x3c5   : > { %4603 = vmatpush1.bf16.msk.msra.mxu1 %vm7898_vm1, %v11244_v43  ;;  %vm11763_vm1 = vnez %v11671_v0 }
 0x3c6   : > { %4588 = vmatprep.subr.msk.bf16.mxu1 %vm7953_vm13, %v11244_v43  ;;  %vm11768_vm13 = vnez %v11396_v36 }
 0x3c8   : > { %v3645_v62 = vpop.xlane.xlu0 %3644  ;;  %3344 = vmatmul.mubr.bf16.gmra.mrb[4].mxu1 %v4727_v60 }
 0x3c9   : > { %v3649_v3 = vpop.xlane.xlu1 %3648  ;;  %3815 = vst.msk [vmem:[%s9492_s26 + $0xe0] sm:$0xff] %vm3786_vm7, %v3645_v62  ;;  %4604 = vmatpush1.bf16.msk.msra.mxu1 %vm7993_vm9, %v11244_v43  ;;  %3353 = vmatprep.mubr.bf16.mxu1 %v4728_v47  ;;  %vm11767_vm9 = vnez %v11679_v45 }
 0x3ca   : > { %3816 = vst.msk [vmem:[%s9492_s26 + $0xe8] sm:$0xff] %vm3786_vm7, %v3649_v3  ;;  %4589 = vmatprep.subr.msk.bf16.mxu1 %vm8052_vm6, %v11244_v43  ;;  %vm11769_vm6 = vnez %v11682_v16 }
 0x3cc   : > { %v3653_v35 = vpop.xlane.xlu0 %3652 }
 0x3cd   : > { %v3657_v1 = vpop.xlane.xlu1 %3656  ;;  %3817 = vst.msk [vmem:[%s9492_s26 + $0xf0] sm:$0xff] %vm3786_vm7, %v3653_v35  ;;  %4605 = vmatpush1.bf16.msk.msra.mxu1 %vm11763_vm1, %v11244_v43  ;;  %vm11775_vm1 = vnez %v11692_v5  ;;  %v4742_v5 = vld [vmem:[%s10052_s2 + $0x68] ss:$16 sps:$4 sm:$0xff]   ;;  %v4747_v35 = vld [vmem:[%s4859_s12 + $0x20] sm:$0xff] }
 0x3ce   : > { %3818 = vst.msk [vmem:[%s9492_s26 + $0xf8] sm:$0xff] %vm3786_vm7, %v3657_v1  ;;  %4590 = vmatprep.subr.msk.bf16.mxu1 %vm11764_vm5, %v11244_v43  ;;  %vm11776_vm5 = vnez %v11696_v14 }
 0x3d0   : > { %3354 = vmatmul.mubr.bf16.gmra.mrb[8].mxu1 %v4730_v11 }
 0x3d1   : > { %v3665_v34 = vpop.xlane.xlu1 %3664  ;;  %4606 = vmatpush1.bf16.msk.msra.mxu1 %vm11765_vm3, %v11244_v43  ;;  %3363 = vmatprep.mubr.bf16.mxu1 %v4731_v53  ;;  %vm11777_vm3 = vnez %v11698_v37  ;;  %v4748_v53 = vld [vmem:[%s4859_s12 + $0x28] sm:$0xff] }
 0x3d2   : > { %3820 = vst.msk [vmem:[%s9492_s26 + $0x108] sm:$0xff] %vm3786_vm7, %v3665_v34  ;;  %4591 = vmatprep.subr.msk.bf16.mxu1 %vm11766_vm2, %v11244_v43  ;;  %vm11778_vm2 = vnez %v11560_v59 }
 0x3d5   : > { %v3673_v0 = vpop.xlane.xlu1 %3672  ;;  %4607 = vmatpush1.bf16.msk.msra.mxu1 %vm11767_vm9, %v11244_v43  ;;  %vm11780_vm9 = vnez %v11616_v38  ;;  %v4737_v38 = vld [vmem:[%s10052_s2 + $0x4c] ss:$16 sps:$4 sm:$0xff]  }
 0x3d6   : > { %3822 = vst.msk [vmem:[%s9492_s26 + $0x118] sm:$0xff] %vm3786_vm7, %v3673_v0  ;;  %4592 = vmatprep.subr.msk.bf16.mxu1 %vm11768_vm13, %v11244_v43  ;;  %vm11782_vm13 = vnez %v11640_v44 }
 0x3d8   : > { %3364 = vmatmul.mubr.bf16.gmra.mrb[12].mxu1 %v4733_v32 }
 0x3d9   : > { %v3681_v46 = vpop.xlane.xlu1 %3680  ;;  %4608 = vmatpush1.bf16.msk.msra.mxu1 %vm11769_vm6, %v11244_v43  ;;  %3416 = vmatprep.mubr.bf16.mxu1 %v4736_v50  ;;  %vm11784_vm6 = vnez %v11663_v13  ;;  %v4749_v50 = vld [vmem:[%s4859_s12 + $0x30] sm:$0xff] }
 0x3da   : > { %3824 = vst.msk [vmem:[%s9492_s26 + $0x128] sm:$0xff] %vm3786_vm7, %v3681_v46  ;;  %4593 = vmatprep.subr.msk.bf16.mxu1 %vm11770_vm11, %v11244_v43  ;;  %vm11785_vm11 = vcmask 523264  }
 0x3dd   : > { %v3689_v45 = vpop.xlane.xlu1 %3688  ;;  %4609 = vmatpush1.bf16.msk.msra.mxu1 %vm11771_vm12, %v11244_v43  ;;  %vm11786_vm12 = vmmov %vm11785_vm11 }
 0x3de   : > { %3826 = vst.msk [vmem:[%s9492_s26 + $0x138] sm:$0xff] %vm3786_vm7, %v3689_v45  ;;  %4594 = vmatprep.subr.msk.bf16.mxu1 %vm11772_vm0, %v11244_v43  ;;  %vm11787_vm0 = vmmov %vm11785_vm11 }
 0x3e1   : > { %v3697_v36 = vpop.xlane.xlu1 %3696  ;;  %4610 = vmatpush1.bf16.msk.msra.mxu1 %vm11773_vm15, %v11244_v43  ;;  %vm11788_vm15 = vmmov %vm11787_vm0 }
 0x3e2   : > { %3828 = vst.msk [vmem:[%s9492_s26 + $0x148] sm:$0xff] %vm3786_vm7, %v3697_v36  ;;  %4595 = vmatprep.subr.msk.bf16.mxu1 %vm11774_vm10, %v11244_v43  ;;  %vm11789_vm10 = vmmov %vm11787_vm0 }
 0x3e5   : > { %v3705_v16 = vpop.xlane.xlu1 %3704  ;;  %4611 = vmatpush1.bf16.msk.msra.mxu1 %vm11775_vm1, %v11244_v43  ;;  %vm11790_vm1 = vmmov %vm11787_vm0 }
 0x3e6   : > { %3830 = vst.msk [vmem:[%s9492_s26 + $0x158] sm:$0xff] %vm3786_vm7, %v3705_v16  ;;  %4596 = vmatprep.subr.msk.bf16.mxu1 %vm11695_vm14, %v11244_v43  ;;  %vm11779_vm14 = vnez %v11591_v55  ;;  %v4750_v16 = vld [vmem:[%s4859_s12 + $0x38] sm:$0xff] }
 0x3e9   : > { %v3713_v10 = vpop.xlane.xlu1 %3712  ;;  %4612 = vmatpush1.bf16.msk.msra.mxu1 %vm11776_vm5, %v11244_v43  ;;  %vm11791_vm5 = vmmov %vm11787_vm0 }
 0x3ea   : > { %3832 = vst.msk [vmem:[%s9492_s26 + $0x168] sm:$0xff] %vm3786_vm7, %v3713_v10  ;;  %4597 = vmatprep.subr.msk.bf16.mxu1 %vm11777_vm3, %v11244_v43  ;;  %vm11792_vm3 = vmmov %vm11787_vm0 }
 0x3ed   : > { %v3721_v61 = vpop.xlane.xlu1 %3720  ;;  %4613 = vmatpush1.bf16.msk.msra.mxu1 %vm11778_vm2, %v11244_v43  ;;  %vm11793_vm2 = vmmov %vm11787_vm0 }
 0x3ee   : > { %3834 = vst.msk [vmem:[%s9492_s26 + $0x178] sm:$0xff] %vm3786_vm7, %v3721_v61  ;;  %4598 = vmatprep.subr.msk.bf16.mxu1 %vm11702_vm8, %v11244_v43  ;;  %vm11781_vm8 = vnez %v11628_v26 }
 0x3f1   : > { %v3729_v2 = vpop.xlane.xlu1 %3728  ;;  %4614 = vmatpush1.bf16.msk.msra.mxu1 %vm11779_vm14, %v11244_v43  ;;  %vm11794_vm14 = vmmov %vm11787_vm0 }
 0x3f2   : > { %3836 = vst.msk [vmem:[%s9492_s26 + $0x188] sm:$0xff] %vm3786_vm7, %v3729_v2  ;;  %4599 = vmatprep.subr.msk.bf16.mxu1 %vm11703_vm4, %v11244_v43  ;;  %vm11783_vm4 = vnez %v11653_v57  ;;  %v4739_v57 = vld [vmem:[%s10052_s2 + $0x48] ss:$16 sps:$4 sm:$0xff]  }
 0x3f5   : > { %v3737_v18 = vpop.xlane.xlu1 %3736  ;;  %4615 = vmatpush1.bf16.msk.msra.mxu1 %vm11780_vm9, %v11244_v43  ;;  %vm11795_vm9 = vmmov %vm11787_vm0 }
 0x3f6   : > { %3838 = vst.msk [vmem:[%s9492_s26 + $0x198] sm:$0xff] %vm3786_vm7, %v3737_v18  ;;  %4600 = vmatprep.subr.msk.bf16.mxu1 %vm11781_vm8, %v11244_v43  ;;  %vm11796_vm8 = vmmov %vm11787_vm0 }
 0x3f9   : > { %v3745_v59 = vpop.xlane.xlu1 %3744  ;;  %4616 = vmatpush1.bf16.msk.msra.mxu1 %vm11782_vm13, %v11244_v43  ;;  %vm11797_vm13 = vmmov %vm11787_vm0 }
 0x3fa   : > { %3840 = vst.msk [vmem:[%s9492_s26 + $0x1a8] sm:$0xff] %vm3786_vm7, %v3745_v59  ;;  %4601 = vmatprep.subr.msk.bf16.mxu1 %vm11783_vm4, %v11244_v43  ;;  %vm11798_vm4 = vmmov %vm11787_vm0 }
 0x3fd   : > { %v3753_v55 = vpop.xlane.xlu1 %3752  ;;  %4617 = vmatpush1.bf16.msk.msra.mxu1 %vm11784_vm6, %v11244_v43  ;;  %v4740_v43 = vld [vmem:[%s10052_s2 + $0x6c] ss:$16 sps:$4 sm:$0xff]   ;;  %vm11799_vm6 = vmmov %vm11787_vm0 }
 0x3fe   : > { %3842 = vst.msk [vmem:[%s9492_s26 + $0x1b8] sm:$0xff] %vm3786_vm7, %v3753_v55 }
 0x400   : > { %3417 = vmatmul.mubr.bf16.vlgmr.msra.gmra.mrb[4].mxu1 %v4734_v41 }
 0x401   : > { %v3761_v26 = vpop.xlane.xlu1 %3760  ;;  %3426 = vmatprep.mubr.bf16.mxu1 %v4737_v38 }
 0x402   : > { %3844 = vst.msk [vmem:[%s9492_s26 + $0x1c8] sm:$0xff] %vm3786_vm7, %v3761_v26  ;;  %v4751_v26 = vld [vmem:[%s4859_s12 + $0x40] sm:$0xff] }
 0x405   : > { %v3769_v44 = vpop.xlane.xlu1 %3768 }
 0x406   : > { %3846 = vst.msk [vmem:[%s9492_s26 + $0x1d8] sm:$0xff] %vm3786_vm7, %v3769_v44 }
 0x408   : > { %3427 = vmatmul.mubr.bf16.gmra.mrb[8].mxu1 %v4739_v57 }
 0x409   : > { %v3777_v13 = vpop.xlane.xlu1 %3776  ;;  %3436 = vmatprep.mubr.bf16.mxu1 %v4740_v43 }
 0x40a   : > { %3848 = vst.msk [vmem:[%s9492_s26 + $0x1e8] sm:$0xff] %vm3786_vm7, %v3777_v13  ;;  %v4752_v13 = vld [vmem:[%s4859_s12 + $0x48] sm:$0xff] }
 0x40d   : > { %v3785_v23 = vpop.xlane.xlu1 %3784 }
 0x40e   : > { %3850 = vst.msk [vmem:[%s9492_s26 + $0x1f8] sm:$0xff] %vm3786_vm7, %v3785_v23 }
 0x410   : > { %3437 = vmatmul.mubr.bf16.gmra.mrb[12].mxu1 %v4742_v5 }
 0x415   : > { %v3408_v56 = vpop.f32.mrb[128].mxu0 }
 0x416   : > { %v3410_v14 = vpop.f32.mrb[129].mxu0 }
 0x417   : > { %v3412_v37 = vpop.f32.mrb[130].mxu0 }
 0x418   : > { %v3414_v42 = vpop.f32.mrb[131].mxu0 }
 0x493   : > { %v3335_v19 = vpop.f32.mrb[0].mxu1 }
 0x494   : > { %v4618_v28 = vadd.f32 %v3408_v56, %v3335_v19  ;;  %v3337_v8 = vpop.f32.mrb[1].mxu1 }
 0x495   : > { %v4619_v6 = vadd.f32 %v3410_v14, %v3337_v8  ;;  %v3339_v4 = vpop.f32.mrb[2].mxu1  ;;  %v4754_v8 = vld [vmem:[%s4859_s12 + $0x58] sm:$0xff] }
 0x496   : > { %3447 = vst [vmem:[%s9811_s15] sm:$0xff] %v4618_v28  ;;  %v3463_v30 = vsub.f32 %v4618_v28, %v4743_v48  ;;  %v4620_v40 = vadd.f32 %v3412_v37, %v3339_v4  ;;  %v3341_v7 = vpop.f32.mrb[3].mxu1  ;;  %v4753_v37 = vld [vmem:[%s4859_s12 + $0x50] sm:$0xff] }
 0x497   : > { %3448 = vst.msk [vmem:[%s9811_s15 + $0x8] sm:$0xff] %vm11785_vm11, %v4619_v6  ;;  %v3464_v24 = vsub.f32 %v4619_v6, %v4744_v63  ;;  %v4621_v52 = vadd.f32 %v3414_v42, %v3341_v7 }
 0x498   : > { %3449 = vst [vmem:[%s9811_s15 + $0x10] sm:$0xff] %v4620_v40  ;;  %v3465_v25 = vsub.f32 %v4620_v40, %v4745_v27  ;;  %v3479_v54 = vmul.f32 %v3463_v30, %v3463_v30 }
 0x499   : > { %v3480_v22 = vmul.f32 %v3464_v24, %v3464_v24  ;;  %3450 = vst.msk [vmem:[%s9811_s15 + $0x18] sm:$0xff] %vm11786_vm12, %v4621_v52  ;;  %v3466_v33 = vsub.f32 %v4621_v52, %v4746_v15  ;;  %v4755_v52 = vld [vmem:[%s4859_s12 + $0x60] sm:$0xff]  ;;  %v4756_v15 = vld [vmem:[%s4859_s12 + $0x68] sm:$0xff]  ;;  %vm11802_vm12 = vmmov %vm11787_vm0 }
 0x49a   : > { %v3481_v9 = vmul.f32 %v3465_v25, %v3465_v25 }
 0x49b   : > { %v3495_v29 = vsel %vm11787_vm0, %v3480_v22, 0.0  ;;  %v3482_v58 = vmul.f32 %v3466_v33, %v3466_v33 }
 0x49c   : > { %v3496_v21 = vadd.f32 %v3495_v29, %v3479_v54 }
 0x49d   : > { %v3498_v47 = vsel %vm11788_vm15, %v3482_v58, 0.0 }
 0x49e   : > { %v3497_v60 = vadd.f32 %v3496_v21, %v3481_v9  ;;  %v4757_v21 = vld [vmem:[%s4859_s12 + $0x70] sm:$0xff] }
 0x4a0   : > { %v3499_v62 = vadd.f32 %v3498_v47, %v3497_v60 }
 0x4d3   : > { %v3418_v3 = vpop.f32.mrb[4].mxu1 }
 0x4d4   : > { %3451 = vst [vmem:[%s9811_s15 + $0x20] sm:$0xff] %v3418_v3  ;;  %v3467_v1 = vsub.f32 %v3418_v3, %v4747_v35  ;;  %v3420_v11 = vpop.f32.mrb[5].mxu1 }
 0x4d5   : > { %3452 = vst.msk [vmem:[%s9811_s15 + $0x28] sm:$0xff] %vm11789_vm10, %v3420_v11  ;;  %v3468_v34 = vsub.f32 %v3420_v11, %v4748_v53  ;;  %v3422_v0 = vpop.f32.mrb[6].mxu1 }
 0x4d6   : > { %v3483_v32 = vmul.f32 %v3467_v1, %v3467_v1  ;;  %3453 = vst [vmem:[%s9811_s15 + $0x30] sm:$0xff] %v3422_v0  ;;  %v3469_v46 = vsub.f32 %v3422_v0, %v4749_v50  ;;  %v3424_v45 = vpop.f32.mrb[7].mxu1  ;;  %v11800_v0 = vld [vmem:[#allocation144_spill] sm:$0xff] }
 0x4d7   : > { %v3484_v36 = vmul.f32 %v3468_v34, %v3468_v34  ;;  %3454 = vst.msk [vmem:[%s9811_s15 + $0x38] sm:$0xff] %vm11790_vm1, %v3424_v45  ;;  %v3470_v10 = vsub.f32 %v3424_v45, %v4750_v16  ;;  %vm11801_vm11 = vcmp.eq.s32.totalorder %v11800_v0, %v7736_v39  ;;  %v11803_v16 = vld [vmem:[#allocation146_spill] sm:$0xff]  ;;  %vm11805_vm10 = vcmp.eq.s32.totalorder %v11800_v0, %v7553_v31  ;;  %vm11806_vm1 = vmmov %vm11787_vm0 }
 0x4d8   : > { %v3500_v61 = vadd.f32 %v3499_v62, %v3483_v32  ;;  %v3485_v55 = vmul.f32 %v3469_v46, %v3469_v46  ;;  %v4758_v62 = vld [vmem:[%s4859_s12 + $0x78] sm:$0xff]  ;;  %v4214_v32 = vsel %vm11801_vm11, 1.0, %v11218_v20  ;;  %vm11804_vm15 = vcmp.eq.s32.totalorder %v11803_v16, %v7736_v39 }
 0x4d9   : > { %v3501_v2 = vsel %vm11791_vm5, %v3484_v36, 0.0  ;;  %v3486_v18 = vmul.f32 %v3470_v10, %v3470_v10  ;;  %v3658_v36 = vsel %vm11787_vm0, %v4214_v32, 0.0  ;;  %v4218_v10 = vsel %vm11804_vm15, 1.0, %v11218_v20 }
 0x4da   : > { %v3502_v59 = vadd.f32 %v3501_v2, %v3500_v61  ;;  %v4213_v61 = vsel %vm11805_vm10, 1.0, %v11218_v20 }
 0x4db   : > { %v3428_v41 = vpop.f32.mrb[8].mxu1  ;;  %v3504_v43 = vsel %vm11792_vm3, %v3486_v18, 0.0  ;;  %v3659_v2 = vadd.f32 %v4213_v61, %v3658_v36  ;;  %v3666_v18 = vsel %vm11806_vm1, %v4218_v10, 0.0  ;;  %vm11809_vm3 = vcmp.eq.s32.totalorder %v11803_v16, %v7553_v31  ;;  %vm11825_vm1 = vmmov %vm11787_vm0 }
 0x4dc   : > { %v3503_v38 = vadd.f32 %v3502_v59, %v3485_v55  ;;  %3455 = vst [vmem:[%s9811_s15 + $0x40] sm:$0xff] %v3428_v41  ;;  %v3471_v44 = vsub.f32 %v3428_v41, %v4751_v26  ;;  %v3430_v57 = vpop.f32.mrb[9].mxu1  ;;  %v11807_v59 = vld [vmem:[#allocation148_spill] sm:$0xff]  ;;  %v4217_v41 = vsel %vm11809_vm3, 1.0, %v11218_v20 }
 0x4dd   : > { %3456 = vst.msk [vmem:[%s9811_s15 + $0x48] sm:$0xff] %vm11793_vm2, %v3430_v57  ;;  %v3472_v23 = vsub.f32 %v3430_v57, %v4752_v13  ;;  %v3432_v5 = vpop.f32.mrb[10].mxu1  ;;  %vm11808_vm5 = vcmp.eq.s32.totalorder %v11807_v59, %v7736_v39  ;;  %vm11810_vm2 = vmmov %vm11787_vm0 }
 0x4de   : > { %v3505_v56 = vadd.f32 %v3504_v43, %v3503_v38  ;;  %v3487_v14 = vmul.f32 %v3471_v44, %v3471_v44  ;;  %3457 = vst [vmem:[%s9811_s15 + $0x50] sm:$0xff] %v3432_v5  ;;  %v3473_v42 = vsub.f32 %v3432_v5, %v4753_v37  ;;  %v3434_v19 = vpop.f32.mrb[11].mxu1  ;;  %v4222_v55 = vsel %vm11808_vm5, 1.0, %v11218_v20  ;;  %v11811_v44 = vld [vmem:[#allocation150_spill] sm:$0xff]  ;;  %v11815_v5 = vld [vmem:[#allocation152_spill] sm:$0xff] }
 0x4df   : > { %v3488_v28 = vmul.f32 %v3472_v23, %v3472_v23  ;;  %3458 = vst.msk [vmem:[%s9811_s15 + $0x58] sm:$0xff] %vm11794_vm14, %v3434_v19  ;;  %v3474_v6 = vsub.f32 %v3434_v19, %v4754_v8  ;;  %v3667_v38 = vadd.f32 %v4217_v41, %v3666_v18  ;;  %v3674_v26 = vsel %vm11810_vm2, %v4222_v55, 0.0  ;;  %v11819_v19 = vld [vmem:[#allocation154_spill] sm:$0xff]  ;;  %vm11829_vm2 = vmmov %vm11787_vm0 }
 0x4e0   : > { %v3506_v4 = vadd.f32 %v3505_v56, %v3487_v14  ;;  %v3489_v7 = vmul.f32 %v3473_v42, %v3473_v42  ;;  %vm11812_vm14 = vcmp.eq.s32.totalorder %v11811_v44, %v7736_v39  ;;  %vm11820_vm11 = vcmp.eq.s32.totalorder %v11819_v19, %v7736_v39 }
 0x4e1   : > { %v3507_v48 = vsel %vm11795_vm9, %v3488_v28, 0.0  ;;  %v3490_v30 = vmul.f32 %v3474_v6, %v3474_v6  ;;  %v4226_v57 = vsel %vm11812_vm14, 1.0, %v11218_v20  ;;  %vm11813_vm9 = vcmp.eq.s32.totalorder %v11807_v59, %v7553_v31 }
 0x4e2   : > { %v3508_v40 = vadd.f32 %v3507_v48, %v3506_v4  ;;  %v4221_v43 = vsel %vm11813_vm9, 1.0, %v11218_v20  ;;  %v4234_v28 = vsel %vm11820_vm11, 1.0, %v11218_v20  ;;  %v11822_v48 = vld [vmem:[#allocation156_spill] sm:$0xff]  ;;  %vm11824_vm10 = vcmp.eq.s32.totalorder %v11819_v19, %v7553_v31 }
 0x4e3   : > { %v3438_v63 = vpop.f32.mrb[12].mxu1  ;;  %v3510_v22 = vsel %vm11796_vm8, %v3490_v30, 0.0  ;;  %v3675_v13 = vadd.f32 %v4221_v43, %v3674_v26  ;;  %vm11814_vm8 = vmmov %vm11787_vm0  ;;  %v3698_v4 = vsel %vm11787_vm0, %v4234_v28, 0.0  ;;  %vm11823_vm15 = vcmp.eq.s32.totalorder %v11822_v48, %v7736_v39 }
 0x4e4   : > { %v3509_v24 = vadd.f32 %v3508_v40, %v3489_v7  ;;  %3459 = vst [vmem:[%s9811_s15 + $0x60] sm:$0xff] %v3438_v63  ;;  %v3475_v27 = vsub.f32 %v3438_v63, %v4755_v52  ;;  %v3440_v25 = vpop.f32.mrb[13].mxu1  ;;  %v3682_v23 = vsel %vm11814_vm8, %v4226_v57, 0.0  ;;  %v4238_v30 = vsel %vm11823_vm15, 1.0, %v11218_v20  ;;  %vm11833_vm8 = vmmov %vm11787_vm0 }
 0x4e5   : > { %3460 = vst.msk [vmem:[%s9811_s15 + $0x68] sm:$0xff] %vm11797_vm13, %v3440_v25  ;;  %v3476_v33 = vsub.f32 %v3440_v25, %v4756_v15  ;;  %v3442_v54 = vpop.f32.mrb[14].mxu1  ;;  %vm11816_vm13 = vcmp.eq.s32.totalorder %v11815_v5, %v7736_v39  ;;  %v4233_v40 = vsel %vm11824_vm10, 1.0, %v11218_v20  ;;  %v3706_v63 = vsel %vm11825_vm1, %v4238_v30, 0.0  ;;  %v11830_v15 = vld [vmem:[#allocation160_spill] sm:$0xff]  ;;  %vm11844_vm1 = vmmov %vm11787_vm0 }
 0x4e6   : > { %v3511_v29 = vadd.f32 %v3510_v22, %v3509_v24  ;;  %v3491_v58 = vmul.f32 %v3475_v27, %v3475_v27  ;;  %3461 = vst [vmem:[%s9811_s15 + $0x70] sm:$0xff] %v3442_v54  ;;  %v3477_v9 = vsub.f32 %v3442_v54, %v4757_v21  ;;  %v3444_v60 = vpop.f32.mrb[15].mxu1  ;;  %v4230_v56 = vsel %vm11816_vm13, 1.0, %v11218_v20  ;;  %v11826_v24 = vld [vmem:[#allocation158_spill] sm:$0xff] }
 0x4e7   : > { %v3492_v47 = vmul.f32 %v3476_v33, %v3476_v33  ;;  %3462 = vst.msk [vmem:[%s9811_s15 + $0x78] sm:$0xff] %vm11798_vm4, %v3444_v60  ;;  %v3478_v3 = vsub.f32 %v3444_v60, %v4758_v62  ;;  %vm11817_vm4 = vcmp.eq.s32.totalorder %v11811_v44, %v7553_v31  ;;  %v3699_v7 = vadd.f32 %v4233_v40, %v3698_v4  ;;  %v11834_v21 = vld [vmem:[#allocation162_spill] sm:$0xff] }
 0x4e8   : > { %v3512_v35 = vadd.f32 %v3511_v29, %v3491_v58  ;;  %v3493_v34 = vmul.f32 %v3477_v9, %v3477_v9  ;;  %v4225_v14 = vsel %vm11817_vm4, 1.0, %v11218_v20  ;;  %vm11827_vm5 = vcmp.eq.s32.totalorder %v11826_v24, %v7736_v39 }
 0x4e9   : > { %v3513_v1 = vsel %vm11799_vm6, %v3492_v47, 0.0  ;;  %v3494_v11 = vmul.f32 %v3478_v3, %v3478_v3  ;;  %v3683_v37 = vadd.f32 %v4225_v14, %v3682_v23  ;;  %vm11818_vm6 = vmmov %vm11787_vm0  ;;  %v4242_v52 = vsel %vm11827_vm5, 1.0, %v11218_v20  ;;  %v11838_v3 = vld [vmem:[#allocation164_spill] sm:$0xff] }
 0x4ea   : > { %v3514_v53 = vadd.f32 %v3513_v1, %v3512_v35  ;;  %v3690_v42 = vsel %vm11818_vm6, %v4230_v56, 0.0  ;;  %vm11828_vm3 = vcmp.eq.s32.totalorder %v11822_v48, %v7553_v31  ;;  %v3714_v22 = vsel %vm11829_vm2, %v4242_v52, 0.0  ;;  %vm11837_vm6 = vmmov %vm11787_vm0 }
 0x4eb   : > { %v3516_v46 = vsel %vm11802_vm12, %v3494_v11, 0.0  ;;  %vm11821_vm12 = vcmp.eq.s32.totalorder %v11815_v5, %v7553_v31  ;;  %v4237_v27 = vsel %vm11828_vm3, 1.0, %v11218_v20  ;;  %vm11831_vm14 = vcmp.eq.s32.totalorder %v11830_v15, %v7736_v39  ;;  %vm11847_vm2 = vmmov %vm11787_vm0 }
 0x4ec   : > { %v3515_v50 = vadd.f32 %v3514_v53, %v3493_v34  ;;  %v4229_v8 = vsel %vm11821_vm12, 1.0, %v11218_v20  ;;  %v3707_v25 = vadd.f32 %v4237_v27, %v3706_v63  ;;  %v4246_v33 = vsel %vm11831_vm14, 1.0, %v11218_v20  ;;  %v11841_v34 = vld [vmem:[#allocation166_spill] sm:$0xff] }
 0x4ed   : > { %v3691_v6 = vadd.f32 %v4229_v8, %v3690_v42  ;;  %vm11832_vm9 = vcmp.eq.s32.totalorder %v11826_v24, %v7553_v31  ;;  %v3722_v58 = vsel %vm11833_vm8, %v4246_v33, 0.0  ;;  %vm11835_vm13 = vcmp.eq.s32.totalorder %v11834_v21, %v7736_v39  ;;  %vm11850_vm8 = vmmov %vm11787_vm0 }
 0x4ee   : > { %v3517_v45 = vadd.f32 %v3516_v46, %v3515_v50  ;;  %v4241_v54 = vsel %vm11832_vm9, 1.0, %v11218_v20  ;;  %v4250_v9 = vsel %vm11835_vm13, 1.0, %v11218_v20  ;;  %vm11836_vm4 = vcmp.eq.s32.totalorder %v11830_v15, %v7553_v31 }
 0x4ef   : > { %v3715_v29 = vadd.f32 %v4241_v54, %v3714_v22  ;;  %v4245_v60 = vsel %vm11836_vm4, 1.0, %v11218_v20  ;;  %v3730_v62 = vsel %vm11837_vm6, %v4250_v9, 0.0  ;;  %vm11839_vm11 = vcmp.eq.s32.totalorder %v11838_v3, %v7736_v39  ;;  %vm11853_vm6 = vmmov %vm11787_vm0 }
 0x4f0   : > { %3518 = vadd.xlane.f32.xlu0 %v3517_v45  ;;  %v3723_v47 = vadd.f32 %v4245_v60, %v3722_v58  ;;  %v4254_v35 = vsel %vm11839_vm11, 1.0, %v11218_v20  ;;  %vm11840_vm12 = vcmp.eq.s32.totalorder %v11834_v21, %v7553_v31  ;;  %vm11842_vm15 = vcmp.eq.s32.totalorder %v11841_v34, %v7736_v39 }
 0x4f1   : > { %v4249_v1 = vsel %vm11840_vm12, 1.0, %v11218_v20  ;;  %v3738_v53 = vsel %vm11787_vm0, %v4254_v35, 0.0  ;;  %v4258_v0 = vsel %vm11842_vm15, 1.0, %v11218_v20  ;;  %vm11843_vm10 = vcmp.eq.s32.totalorder %v11838_v3, %v7553_v31 }
 0x4f2   : > { %v3731_v11 = vadd.f32 %v4249_v1, %v3730_v62  ;;  %v4253_v32 = vsel %vm11843_vm10, 1.0, %v11218_v20  ;;  %v3746_v46 = vsel %vm11844_vm1, %v4258_v0, 0.0  ;;  %vm11845_vm5 = vcmp.eq.s32.totalorder %v11507_v49, %v7736_v39 }
 0x4f3   : > { %v3739_v50 = vadd.f32 %v4253_v32, %v3738_v53  ;;  %v4262_v45 = vsel %vm11845_vm5, 1.0, %v11218_v20  ;;  %vm11846_vm3 = vcmp.eq.s32.totalorder %v11841_v34, %v7553_v31  ;;  %vm11848_vm14 = vcmp.eq.s32.totalorder %v11538_v17, %v7736_v39 }
 0x4f4   : > { %3660 = vadd.xlane.f32.xlu0 %v3659_v2  ;;  %v4257_v36 = vsel %vm11846_vm3, 1.0, %v11218_v20  ;;  %v3754_v10 = vsel %vm11847_vm2, %v4262_v45, 0.0  ;;  %v4266_v61 = vsel %vm11848_vm14, 1.0, %v11218_v20  ;;  %vm11849_vm9 = vcmp.eq.s32.totalorder %v11507_v49, %v7553_v31 }
 0x4f5   : > { %v3747_v16 = vadd.f32 %v4257_v36, %v3746_v46  ;;  %v4261_v2 = vsel %vm11849_vm9, 1.0, %v11218_v20  ;;  %v3762_v59 = vsel %vm11850_vm8, %v4266_v61, 0.0  ;;  %vm11851_vm13 = vcmp.eq.s32.totalorder %v11561_v12, %v7736_v39 }
 0x4f6   : > { %v3755_v18 = vadd.f32 %v4261_v2, %v3754_v10  ;;  %v4270_v55 = vsel %vm11851_vm13, 1.0, %v11218_v20  ;;  %vm11852_vm4 = vcmp.eq.s32.totalorder %v11538_v17, %v7553_v31  ;;  %vm11854_vm11 = vcmp.eq.s32.totalorder %v11585_v51, %v7736_v39 }
 0x4f7   : > { %v4265_v41 = vsel %vm11852_vm4, 1.0, %v11218_v20  ;;  %v3770_v26 = vsel %vm11853_vm6, %v4270_v55, 0.0  ;;  %v4274_v49 = vsel %vm11854_vm11, 1.0, %v11218_v20  ;;  %vm11855_vm12 = vcmp.eq.s32.totalorder %v11561_v12, %v7553_v31 }
 0x4f8   : > { %3668 = vadd.xlane.f32.xlu0 %v3667_v38  ;;  %v3763_v38 = vadd.f32 %v4265_v41, %v3762_v59  ;;  %v4269_v44 = vsel %vm11855_vm12, 1.0, %v11218_v20  ;;  %v3778_v17 = vsel %vm11787_vm0, %v4274_v49, 0.0  ;;  %vm11856_vm15 = vcmp.eq.s32.totalorder %v11585_v51, %v7553_v31 }
 0x4f9   : > { %v3771_v57 = vadd.f32 %v4269_v44, %v3770_v26  ;;  %v4273_v43 = vsel %vm11856_vm15, 1.0, %v11218_v20  ;;  %vm3528_vm10 = vcmask 0  }
 0x4fc   : > { %3676 = vadd.xlane.f32.xlu0 %v3675_v13  ;;  %v3779_v13 = vadd.f32 %v4273_v43, %v3778_v17 }
 0x500   : > { %3684 = vadd.xlane.f32.xlu0 %v3683_v37 }
 0x504   : > { %3692 = vadd.xlane.f32.xlu0 %v3691_v6 }
 0x508   : > { %3700 = vadd.xlane.f32.xlu0 %v3699_v7 }
 0x50c   : > { %3708 = vadd.xlane.f32.xlu0 %v3707_v25 }
 0x510   : > { %3716 = vadd.xlane.f32.xlu0 %v3715_v29 }
 0x514   : > { %3724 = vadd.xlane.f32.xlu0 %v3723_v47 }
 0x518   : > { %3732 = vadd.xlane.f32.xlu0 %v3731_v11 }
 0x51c   : > { %3740 = vadd.xlane.f32.xlu0 %v3739_v50 }
 0x520   : > { %3748 = vadd.xlane.f32.xlu0 %v3747_v16 }
 0x524   : > { %3756 = vadd.xlane.f32.xlu0 %v3755_v18 }
 0x528   : > { %3764 = vadd.xlane.f32.xlu0 %v3763_v38 }
 0x52c   : > { %3772 = vadd.xlane.f32.xlu0 %v3771_v57 }
 0x530   : > { %3780 = vadd.xlane.f32.xlu0 %v3779_v13 }
 0x57d   : > { %v3519_v39 = vpop.xlane.xlu0 %3518 }
 0x57e   : > { %v3520_v23 = vrot.slane %v3519_v39, 4 }
 0x580   : > { %v3521_v5 = vadd.f32 %v3520_v23, %v3519_v39 }
 0x581   : > { %v3661_v12 = vpop.xlane.xlu0 %3660 }
 0x582   : > { %v3522_v56 = vrot.slane %v3521_v5, 2  ;;  %3819 = vst.msk [vmem:[%s9492_s26 + $0x100] sm:$0xff] %vm3786_vm7, %v3661_v12 }
 0x584   : > { %v3523_v14 = vadd.f32 %v3522_v56, %v3521_v5 }
 0x585   : > { %v3669_v37 = vpop.xlane.xlu0 %3668 }
 0x586   : > { %3821 = vst.msk [vmem:[%s9492_s26 + $0x110] sm:$0xff] %vm3786_vm7, %v3669_v37  ;;  %v3524_v31 = vrot.slane %v3523_v14, 1 }
 0x588   : > { %v3525_v20 = vadd.f32 %v3524_v31, %v3523_v14 }
 0x589   : > { %v3677_v51 = vpop.xlane.xlu0 %3676 }
 0x58a   : > { %3823 = vst.msk [vmem:[%s9492_s26 + $0x120] sm:$0xff] %vm3786_vm7, %v3677_v51 }
 0x58b   : > { %4666 = vpush %v3525_v20 }
 0x58d   : > { %v3685_v42 = vpop.xlane.xlu0 %3684 }
 0x58e   : > { %3825 = vst.msk [vmem:[%s9492_s26 + $0x130] sm:$0xff] %vm3786_vm7, %v3685_v42 }
 0x591   : > { %v3693_v19 = vpop.xlane.xlu0 %3692 }
 0x592   : > { %3827 = vst.msk [vmem:[%s9492_s26 + $0x140] sm:$0xff] %vm3786_vm7, %v3693_v19 }
 0x595   : > { %v3701_v28 = vpop.xlane.xlu0 %3700 }
 0x596   : > { %3829 = vst.msk [vmem:[%s9492_s26 + $0x150] sm:$0xff] %vm3786_vm7, %v3701_v28 }
 0x599   : > { %v3709_v8 = vpop.xlane.xlu0 %3708 }
 0x59a   : > { %3831 = vst.msk [vmem:[%s9492_s26 + $0x160] sm:$0xff] %vm3786_vm7, %v3709_v8 }
 0x59d   : > { %v3717_v6 = vpop.xlane.xlu0 %3716 }
 0x59e   : > { %3833 = vst.msk [vmem:[%s9492_s26 + $0x170] sm:$0xff] %vm3786_vm7, %v3717_v6 }
 0x5a1   : > { %v3725_v4 = vpop.xlane.xlu0 %3724 }
 0x5a2   : > { %3835 = vst.msk [vmem:[%s9492_s26 + $0x180] sm:$0xff] %vm3786_vm7, %v3725_v4 }
 0x5a5   : > { %v3733_v48 = vpop.xlane.xlu0 %3732 }
 0x5a6   : > { %3837 = vst.msk [vmem:[%s9492_s26 + $0x190] sm:$0xff] %vm3786_vm7, %v3733_v48 }
 0x5a9   : > { %v3741_v30 = vpop.xlane.xlu0 %3740 }
 0x5aa   : > { %3839 = vst.msk [vmem:[%s9492_s26 + $0x1a0] sm:$0xff] %vm3786_vm7, %v3741_v30 }
 0x5ad   : > { %v3749_v40 = vpop.xlane.xlu0 %3748 }
 0x5ae   : > { %3841 = vst.msk [vmem:[%s9492_s26 + $0x1b0] sm:$0xff] %vm3786_vm7, %v3749_v40 }
 0x5b1   : > { %v3757_v7 = vpop.xlane.xlu0 %3756 }
 0x5b2   : > { %3843 = vst.msk [vmem:[%s9492_s26 + $0x1c0] sm:$0xff] %vm3786_vm7, %v3757_v7 }
 0x5b5   : > { %v3765_v63 = vpop.xlane.xlu0 %3764 }
 0x5b6   : > { %3845 = vst.msk [vmem:[%s9492_s26 + $0x1d0] sm:$0xff] %vm3786_vm7, %v3765_v63 }
 0x5b9   : > { %v3773_v24 = vpop.xlane.xlu0 %3772 }
 0x5ba   : > { %3847 = vst.msk [vmem:[%s9492_s26 + $0x1e0] sm:$0xff] %vm3786_vm7, %v3773_v24 }
 0x5bc   : > { %s4667_s17 = spop %4666 }
 0x5bd   : > { %v3527_v52 = vstv %s4667_s17  ;;  %v3781_v27 = vpop.xlane.xlu0 %3780 }
 0x5be   : > { %3529 = vst.msk [vmem:[%s394_s16] sm:$0x1] %vm3528_vm10, %v3527_v52 }
 0x5bf   : > { %3849 = vst.msk [vmem:[%s9492_s26 + $0x1f0] sm:$0xff] %vm3786_vm7, %v3781_v27 }
 0x5c0 PF: > { %s19_s29 = sadd.s32 1, %s4781_s29   ;;  %s11857_s27 = smov %s4777_s28 }
 0x5c1   : > { %p16_p5 = scmp.ge.s32.totalorder %s19_s29, 4   ;;  %s11858_s28 = smov %s11860_s30 }
 0x5c3   :  { %18 = sbr.rel (!%p16_p5) target bundleno = 2 (0x2), region = 106 }

</bundles_post_ra>
